<compile_context>
chip_gen: v7x
topology: tpu7x:2x2x1
jax: 0.10.0
libtpu: 0.0.40
codegen_flags: <defaults>
</compile_context>

<pallas_src>
import functools
import math

import jax
import jax.numpy as jnp
from jax import lax
from jax.experimental import pallas as pl
from jax.experimental.pallas import tpu as pltpu


# ----------------------------------------------------------------------------
# Kernel A: cosine similarity -> softmax -> (hard-shrink) relu, plus per-tile
# partial column L1 sums for F.normalize(w_hat, p=1, dim=0).
# ----------------------------------------------------------------------------
def _weights_kernel(z_ref, memt_ref, what_ref, colsum_ref, *,
                    hard_shrink, shrink_thres, k_real, m_real, tm,
                    mask_cols, mask_rows, cos_eps, shrink_eps):
    z = z_ref[...]                     # (tm, C_pad) f32
    mem_t = memt_ref[...]              # (C_pad, K_pad) f32, unit-norm rows, pre-transposed

    # CosineSimilarity(dim=2): memory rows are pre-normalized in the wrapper, so
    # only the per-row z scale remains.  NOTE: torch clamps the *product*
    # ||z||*||m|| at eps; clamping ||z|| alone only differs for (near-)zero rows.
    z_norm = jnp.sqrt(jnp.sum(z * z, axis=-1, keepdims=True))             # (tm, 1)
    inv_zn = pl.reciprocal(jnp.maximum(z_norm, cos_eps), approx=False)    # (tm, 1)
    logits = jnp.dot(z * inv_zn, mem_t, preferred_element_type=jnp.float32)

    if mask_cols:
        # Padded (all-zero) memory slots must not receive softmax mass.
        col = lax.broadcasted_iota(jnp.int32, logits.shape, 1)
        logits = jnp.where(col < k_real, logits, -1e30)

    # softmax over the memory axis
    mx = jnp.max(logits, axis=-1, keepdims=True)
    e = jnp.exp(logits - mx)
    inv_den = pl.reciprocal(jnp.sum(e, axis=-1, keepdims=True), approx=False)
    w = e * inv_den

    if hard_shrink:
        # relu(w - lambd) * w / (|w - lambd| + 1e-15); keep this divide exact
        # (eps is 1e-15 and |diff| spans many magnitudes).
        diff = w - shrink_thres
        w_hat = jnp.maximum(diff, 0.0) * w / (jnp.abs(diff) + shrink_eps)
    else:
        w_hat = jnp.maximum(w, 0.0)

    if mask_rows:
        # Rows that only exist because M was padded to a tile multiple must not
        # pollute the column sums.
        row = lax.broadcasted_iota(jnp.int32, w_hat.shape, 0) + pl.program_id(0) * tm
        w_hat = jnp.where(row < m_real, w_hat, 0.0)

    what_ref[...] = w_hat
    # Per-tile partial column L1 sums; reduced across tiles in the wrapper so the
    # grid axis stays "parallel" (no resident accumulator).
    colsum_ref[...] = jnp.sum(jnp.abs(w_hat), axis=0, keepdims=True).reshape(
        1, 1, w_hat.shape[-1])


# ----------------------------------------------------------------------------
# Kernel B: column-wise L1 normalization (F.normalize(..., p=1, dim=0)) and the
# memory read-out z_hat = w_hat_norm @ memory.
# ----------------------------------------------------------------------------
def _output_kernel(what_ref, colsum_ref, mem_ref, whatn_ref, zhat_ref, *,
                   norm_eps):
    w = what_ref[...]                                           # (tm, K_pad)
    s = colsum_ref[...]                                         # (1,  K_pad)
    inv_s = pl.reciprocal(jnp.maximum(s, norm_eps), approx=False)
    wn = w * inv_s
    whatn_ref[...] = wn
    zhat_ref[...] = jnp.dot(wn, mem_ref[...],                   # (tm, C_pad)
                            preferred_element_type=jnp.float32)


# ----------------------------------------------------------------------------
# Wrapper helpers
# ----------------------------------------------------------------------------
def _round_up(x, m):
    return (x + m - 1) // m * m


def _vmem_capacity_bytes():
    try:
        return int(pltpu.get_tpu_info().vmem_capacity_bytes)
    except Exception:
        return 64 * 1024 * 1024            # conservative (v7x per-core VMEM)


def _choose_tm(m_rows, k_pad, c_pad, vmem_cap):
    """Largest row tile that keeps double-buffered streamed blocks inside VMEM."""
    # f32, double-buffered: pass 1 streams (tm,C) in + (tm,K) out;
    # pass 2 streams (tm,K) in + (tm,K) + (tm,C) out.  Take the larger.
    per_row = 4 * 2 * max(c_pad + k_pad, 2 * k_pad + c_pad)
    resident = 4 * 2 * k_pad * c_pad       # resident memory-bank block (x2 bufs)
    budget = max(vmem_cap // 3 - resident, per_row * 256)
    tm = max(8, (min(2048, budget // per_row) // 8) * 8)
    if m_rows <= tm:                       # small problem: single-shot grid=(1,)
        return max(8, _round_up(m_rows, 8))
    return int(tm)


def _vmem_limit(tm, k_pad, c_pad, vmem_cap):
    per_row = 4 * 2 * max(c_pad + k_pad, 2 * k_pad + c_pad)
    need = tm * per_row + 4 * 2 * k_pad * c_pad + (8 << 20)
    return int(min(max(need, 32 << 20), (vmem_cap * 3) // 4))


# ----------------------------------------------------------------------------
# Forward pass
# ----------------------------------------------------------------------------
@functools.partial(jax.jit, static_argnames=("hard_shrink", "lam", "tm"))
def memory_module_3d(z, memory, *, hard_shrink=True, lam=1.0, tm=None):
    """z: (N, C, D, H, W) f32, memory: (mem_dim, fea_dim) f32.
    Returns (z_output (N,C,D,H,W), w_hat (N*D*H*W, mem_dim))."""
    N, C, D, H, W = z.shape
    K, Cf = memory.shape
    assert Cf == C, "fea_dim mismatch"
    f32 = jnp.float32

    z_flat = jnp.transpose(z, (0, 2, 3, 4, 1)).reshape(-1, C).astype(f32)
    memory = memory.astype(f32)
    M = z_flat.shape[0]

    # ---- lane-dense padding + tile selection --------------------------------
    K_pad = _round_up(K, 128)
    C_pad = _round_up(C, 128)
    vmem_cap = _vmem_capacity_bytes()
    if tm is None:
        tm = _choose_tm(M, K_pad, C_pad, vmem_cap)
    M_pad = _round_up(M, tm)
    n_tiles = M_pad // tm
    vlim = _vmem_limit(tm, K_pad, C_pad, vmem_cap)

    z_p = jnp.pad(z_flat, ((0, M_pad - M), (0, C_pad - C)))
    mem_p = jnp.pad(memory, ((0, K_pad - K), (0, C_pad - C)))

    # Hoisted memory-bank prep (once, outside the grid loop): unit-normalize the
    # rows and transpose to (C_pad, K_pad) so kernel A contracts (tm,C)@(C,K)
    # with K on the lanes.  Padded (all-zero) rows stay zero.
    m_norm = jnp.sqrt(jnp.sum(mem_p * mem_p, axis=1, keepdims=True))
    mem_unit_t = (mem_p / jnp.maximum(m_norm, 1e-12)).T          # (C_pad, K_pad)

    shrink_thres = (lam / K) if hard_shrink else 0.0

    # ---- pass 1: attention weights + per-tile column L1 partial sums --------
    kernel_a = functools.partial(
        _weights_kernel,
        hard_shrink=hard_shrink, shrink_thres=shrink_thres,
        k_real=K, m_real=M, tm=tm,
        mask_cols=(K_pad != K), mask_rows=(M_pad != M),
        cos_eps=1e-8,        # torch CosineSimilarity eps (see clamp note in kernel)
        shrink_eps=1e-15)    # hard_shrink_relu epsilon

    what_raw, colsum_part = pl.pallas_call(
        kernel_a,
        out_shape=(jax.ShapeDtypeStruct((M_pad, K_pad), f32),
                   jax.ShapeDtypeStruct((n_tiles, 1, K_pad), f32)),
        grid_spec=pltpu.PrefetchScalarGridSpec(
            num_scalar_prefetch=0, grid=(n_tiles,),
            in_specs=[pl.BlockSpec((tm, C_pad), lambda i: (i, 0)),
                      pl.BlockSpec((C_pad, K_pad), lambda i: (0, 0))],
            out_specs=[pl.BlockSpec((tm, K_pad), lambda i: (i, 0)),
                       pl.BlockSpec((1, 1, K_pad), lambda i: (i, 0, 0))]),
        compiler_params=pltpu.CompilerParams(
            dimension_semantics=("parallel",),
            vmem_limit_bytes=vlim),
    )(z_p, mem_unit_t)

    colsum = jnp.sum(colsum_part, axis=0)                        # (1, K_pad)

    # ---- pass 2: column L1 normalization + memory read-out ------------------
    what_norm, z_hat = pl.pallas_call(
        functools.partial(_output_kernel, norm_eps=1e-12),       # F.normalize eps
        out_shape=(jax.ShapeDtypeStruct((M_pad, K_pad), f32),
                   jax.ShapeDtypeStruct((M_pad, C_pad), f32)),
        grid_spec=pltpu.PrefetchScalarGridSpec(
            num_scalar_prefetch=0, grid=(n_tiles,),
            in_specs=[pl.BlockSpec((tm, K_pad), lambda i: (i, 0)),
                      pl.BlockSpec((1, K_pad), lambda i: (0, 0)),
                      pl.BlockSpec((K_pad, C_pad), lambda i: (0, 0))],
            out_specs=[pl.BlockSpec((tm, K_pad), lambda i: (i, 0)),
                       pl.BlockSpec((tm, C_pad), lambda i: (i, 0))]),
        compiler_params=pltpu.CompilerParams(
            dimension_semantics=("parallel",),
            vmem_limit_bytes=vlim),
        input_output_aliases={0: 0},     # reuse the raw w_hat buffer for w_hat_norm
    )(what_raw, colsum, mem_p)

    w_hat = what_norm[:M, :K]
    z_out = jnp.transpose(z_hat[:M, :C].reshape(N, D, H, W, C), (0, 4, 1, 2, 3))
    return z_out, w_hat


# ----------------------------------------------------------------------------
# Deterministic parameter init (nn.init.kaiming_uniform_, a=0, fan_in mode)
# ----------------------------------------------------------------------------
def kaiming_uniform(key, shape):
    fan_in = shape[1]
    gain = math.sqrt(2.0)
    bound = gain * math.sqrt(3.0 / fan_in)
    return jax.random.uniform(key, shape, minval=-bound, maxval=bound,
                              dtype=jnp.float32)


# ----------------------------------------------------------------------------
# Pure-JAX reference (mirrors the PyTorch forward) for correctness checks.
# Also returns the pre-shrink softmax weights (for the discontinuity mask).
# ----------------------------------------------------------------------------
def reference(z, memory, hard_shrink=True, lam=1.0):
    N, C, D, H, W = z.shape
    K = memory.shape[0]
    zf = jnp.transpose(z, (0, 2, 3, 4, 1)).reshape(-1, C)
    zn = jnp.sqrt(jnp.sum(zf * zf, axis=1, keepdims=True))
    mn = jnp.sqrt(jnp.sum(memory * memory, axis=1, keepdims=True))
    logits = (zf @ memory.T) / jnp.maximum(zn * mn.T, 1e-8)
    w = jax.nn.softmax(logits, axis=1)
    if hard_shrink:
        thres = lam / K
        diff = w - thres
        w_hat = jnp.maximum(diff, 0.0) * w / (jnp.abs(diff) + 1e-15)
    else:
        w_hat = jnp.maximum(w, 0.0)
    w_hat = w_hat / jnp.maximum(
        jnp.sum(jnp.abs(w_hat), axis=0, keepdims=True), 1e-12)
    z_hat = w_hat @ memory
    z_out = jnp.transpose(z_hat.reshape(N, D, H, W, C), (0, 4, 1, 2, 3))
    return z_out, w_hat, w


if __name__ == "__main__":
    # Small shapes consistent with the module: fea_dim = C, mem_dim = K.
    N, C, D, H, W = 2, 32, 4, 8, 8          # M = N*D*H*W = 512
    mem_dim = 64

    key = jax.random.PRNGKey(0)
    k_mem, k_z = jax.random.split(key)
    memory = kaiming_uniform(k_mem, (mem_dim, C))
    z = jax.random.normal(k_z, (N, C, D, H, W), dtype=jnp.float32)

    # --- relu path (no discontinuity): strict check --------------------------
    z_out0, w0 = memory_module_3d(z, memory, hard_shrink=False)
    jax.block_until_ready((z_out0, w0))
    z_ref0, w_ref0, _ = reference(z, memory, hard_shrink=False)
    assert z_out0.shape == (N, C, D, H, W)
    assert w0.shape == (N * D * H * W, mem_dim)
    assert bool(jnp.allclose(w0, w_ref0, atol=1e-5, rtol=1e-5))
    assert bool(jnp.allclose(z_out0, z_ref0, atol=1e-5, rtol=1e-5))

    # --- hard-shrink path -----------------------------------------------------
    z_out, w_hat = memory_module_3d(z, memory, hard_shrink=True, lam=1.0)
    jax.block_until_ready((z_out, w_hat))
    z_ref, w_ref, w_soft = reference(z, memory, hard_shrink=True, lam=1.0)
    assert z_out.shape == (N, C, D, H, W)
    assert w_hat.shape == (N * D * H * W, mem_dim)

    # hard_shrink_relu is discontinuous at w == lam/K: softmax weights within a
    # few float ulps of the threshold can legitimately land on either side under
    # any reordering of f32 accumulation (kernel vs XLA reference), which then
    # shifts that column's L1 norm.  Exclude columns/rows touching that zone
    # from the strict comparison; everything else must match tightly.
    thres = 1.0 / mem_dim
    near = jnp.abs(w_soft - thres) < 1e-5
    assert float(jnp.mean(near)) < 0.05       # sanity: the zone must stay tiny
    bad_col = jnp.any(near, axis=0)           # column L1 norm may differ
    bad_row = jnp.any(near, axis=1)           # that row's read-out may differ
    ok_w = jnp.isclose(w_hat, w_ref, atol=5e-5, rtol=1e-4) | bad_col[None, :]
    ok_z = (jnp.isclose(z_out, z_ref, atol=5e-5, rtol=1e-4)
            | bad_row.reshape(N, 1, D, H, W))
    assert bool(jnp.all(ok_w))
    assert bool(jnp.all(ok_z))

    print("KERNEL_OK")
</pallas_src>

<mosaic_0001>
module attributes {stable_mosaic.version = 11 : i64} {
  func.func @_weights_kernel(%arg0: i32, %arg1: memref<512x128xf32, #tpu.memory_space<vmem>>, %arg2: memref<128x128xf32, #tpu.memory_space<vmem>>, %arg3: memref<512x128xf32, #tpu.memory_space<vmem>>, %arg4: memref<1x1x128xf32, #tpu.memory_space<vmem>>) attributes {dimension_semantics = [#tpu.dimension_semantics<parallel>], iteration_bounds = array<i64: 1>, scalar_prefetch = 0 : i64, scratch_operands = 0 : i64, tpu.core_type = #tpu.core_type<tc>, window_params = [{transform_indices = @transform_0, window_bounds = array<i64: 512, 128>}, {pipeline_mode = #tpu.pipeline_mode<synchronous>, transform_indices = @transform_1, window_bounds = array<i64: 128, 128>}, {transform_indices = @transform_2, window_bounds = array<i64: 512, 128>}, {transform_indices = @transform_3, window_bounds = array<i64: 1, 1, 128>}]} {
    %c0 = arith.constant 0 : index
    %c0_0 = arith.constant 0 : index
    %0 = vector.load %arg1[%c0, %c0_0] : memref<512x128xf32, #tpu.memory_space<vmem>>, vector<512x128xf32>
    %c0_1 = arith.constant 0 : index
    %c0_2 = arith.constant 0 : index
    %1 = vector.load %arg2[%c0_1, %c0_2] : memref<128x128xf32, #tpu.memory_space<vmem>>, vector<128x128xf32>
    %2 = arith.mulf %0, %0 : vector<512x128xf32>
    %cst = arith.constant dense<0.000000e+00> : vector<512xf32>
    %3 = vector.multi_reduction <add>, %2, %cst [1] : vector<512x128xf32> to vector<512xf32>
    %4 = vector.shape_cast %3 : vector<512xf32> to vector<512x1xf32>
    %5 = math.sqrt %4 : vector<512x1xf32>
    %cst_3 = arith.constant 9.99999993E-9 : f32
    %6 = vector.broadcast %cst_3 : f32 to vector<512x1xf32>
    %7 = arith.maximumf %5, %6 : vector<512x1xf32>
    %8 = tpu.reciprocal %7 : vector<512x1xf32> -> vector<512x1xf32>
    %9 = vector.broadcast %8 : vector<512x1xf32> to vector<512x128xf32>
    %10 = arith.mulf %0, %9 : vector<512x128xf32>
    %cst_4 = arith.constant dense<0.000000e+00> : vector<512x128xf32>
    %11 = tpu.matmul %10, %1, %cst_4 {dimension_numbers = #tpu.dot_dimension_numbers<[1], [0], [0], [1], [0, 0, 1, 1], [], []>} : vector<512x128xf32>, vector<128x128xf32>, vector<512x128xf32> -> vector<512x128xf32>
    %12 = tpu.iota {dimensions = array<i32: 1>} : vector<512x128xi32>
    %c64_i32 = arith.constant 64 : i32
    %13 = vector.broadcast %c64_i32 : i32 to vector<512x128xi32>
    %14 = arith.cmpi slt, %12, %13 : vector<512x128xi32>
    %cst_5 = arith.constant -1.000000e+30 : f32
    %15 = vector.broadcast %cst_5 : f32 to vector<512x128xf32>
    %16 = arith.select %14, %11, %15 : vector<512x128xi1>, vector<512x128xf32>
    %cst_6 = arith.constant dense<0xFF800000> : vector<512xf32>
    %17 = vector.multi_reduction <maximumf>, %16, %cst_6 [1] : vector<512x128xf32> to vector<512xf32>
    %18 = vector.shape_cast %17 : vector<512xf32> to vector<512x1xf32>
    %19 = vector.broadcast %18 : vector<512x1xf32> to vector<512x128xf32>
    %20 = arith.subf %16, %19 : vector<512x128xf32>
    %21 = math.exp %20 : vector<512x128xf32>
    %cst_7 = arith.constant dense<0.000000e+00> : vector<512xf32>
    %22 = vector.multi_reduction <add>, %21, %cst_7 [1] : vector<512x128xf32> to vector<512xf32>
    %23 = vector.shape_cast %22 : vector<512xf32> to vector<512x1xf32>
    %24 = tpu.reciprocal %23 : vector<512x1xf32> -> vector<512x1xf32>
    %25 = vector.broadcast %24 : vector<512x1xf32> to vector<512x128xf32>
    %26 = arith.mulf %21, %25 : vector<512x128xf32>
    %cst_8 = arith.constant 0.000000e+00 : f32
    %27 = vector.broadcast %cst_8 : f32 to vector<512x128xf32>
    %28 = arith.maximumf %26, %27 : vector<512x128xf32>
    %c0_9 = arith.constant 0 : index
    %c0_10 = arith.constant 0 : index
    %29 = vector.load %arg3[%c0_9, %c0_10] : memref<512x128xf32, #tpu.memory_space<vmem>>, vector<512x128xf32>
    tpu.vector_store %arg3[%c0_9, %c0_10], %28 {strides = array<i32>} : memref<512x128xf32, #tpu.memory_space<vmem>>, vector<512x128xf32>,
    %30 = math.absf %28 : vector<512x128xf32>
    %cst_11 = arith.constant dense<0.000000e+00> : vector<128xf32>
    %31 = vector.multi_reduction <add>, %30, %cst_11 [0] : vector<512x128xf32> to vector<128xf32>
    %32 = vector.shape_cast %31 : vector<128xf32> to vector<1x128xf32>
    %33 = vector.shape_cast %32 : vector<1x128xf32> to vector<1x1x128xf32>
    %c0_12 = arith.constant 0 : index
    %c0_13 = arith.constant 0 : index
    %c0_14 = arith.constant 0 : index
    %34 = vector.load %arg4[%c0_12, %c0_13, %c0_14] : memref<1x1x128xf32, #tpu.memory_space<vmem>>, vector<1x1x128xf32>
    tpu.vector_store %arg4[%c0_12, %c0_13, %c0_14], %33 {strides = array<i32>} : memref<1x1x128xf32, #tpu.memory_space<vmem>>, vector<1x1x128xf32>,
    return
  }
  func.func @transform_0(%arg0: i32) -> (i32, i32) {
    %c0_i32 = arith.constant 0 : i32
    %c0_i32_0 = arith.constant 0 : i32
    return %arg0, %c0_i32 : i32, i32
  }
  func.func @transform_1(%arg0: i32) -> (i32, i32) {
    %c0_i32 = arith.constant 0 : i32
    %c0_i32_0 = arith.constant 0 : i32
    %c0_i32_1 = arith.constant 0 : i32
    return %c0_i32, %c0_i32_0 : i32, i32
  }
  func.func @transform_2(%arg0: i32) -> (i32, i32) {
    %c0_i32 = arith.constant 0 : i32
    %c0_i32_0 = arith.constant 0 : i32
    return %arg0, %c0_i32 : i32, i32
  }
  func.func @transform_3(%arg0: i32) -> (i32, i32, i32) {
    %c0_i32 = arith.constant 0 : i32
    %c0_i32_0 = arith.constant 0 : i32
    %c0_i32_1 = arith.constant 0 : i32
    return %arg0, %c0_i32, %c0_i32_0 : i32, i32, i32
  }
}

module attributes {stable_mosaic.version = 11 : i64} {
  func.func @_output_kernel(%arg0: i32, %arg1: memref<512x128xf32, #tpu.memory_space<vmem>>, %arg2: memref<1x128xf32, #tpu.memory_space<vmem>>, %arg3: memref<128x128xf32, #tpu.memory_space<vmem>>, %arg4: memref<512x128xf32, #tpu.memory_space<vmem>>, %arg5: memref<512x128xf32, #tpu.memory_space<vmem>>) attributes {dimension_semantics = [#tpu.dimension_semantics<parallel>], iteration_bounds = array<i64: 1>, scalar_prefetch = 0 : i64, scratch_operands = 0 : i64, tpu.core_type = #tpu.core_type<tc>, window_params = [{transform_indices = @transform_0, window_bounds = array<i64: 512, 128>}, {pipeline_mode = #tpu.pipeline_mode<synchronous>, transform_indices = @transform_1, window_bounds = array<i64: 1, 128>}, {pipeline_mode = #tpu.pipeline_mode<synchronous>, transform_indices = @transform_2, window_bounds = array<i64: 128, 128>}, {transform_indices = @transform_3, window_bounds = array<i64: 512, 128>}, {transform_indices = @transform_4, window_bounds = array<i64: 512, 128>}]} {
    %c0 = arith.constant 0 : index
    %c0_0 = arith.constant 0 : index
    %0 = vector.load %arg1[%c0, %c0_0] : memref<512x128xf32, #tpu.memory_space<vmem>>, vector<512x128xf32>
    %c0_1 = arith.constant 0 : index
    %c0_2 = arith.constant 0 : index
    %1 = vector.load %arg2[%c0_1, %c0_2] : memref<1x128xf32, #tpu.memory_space<vmem>>, vector<1x128xf32>
    %cst = arith.constant 9.99999996E-13 : f32
    %2 = vector.broadcast %cst : f32 to vector<1x128xf32>
    %3 = arith.maximumf %1, %2 : vector<1x128xf32>
    %4 = tpu.reciprocal %3 : vector<1x128xf32> -> vector<1x128xf32>
    %5 = vector.broadcast %4 : vector<1x128xf32> to vector<512x128xf32>
    %6 = arith.mulf %0, %5 : vector<512x128xf32>
    %c0_3 = arith.constant 0 : index
    %c0_4 = arith.constant 0 : index
    %7 = vector.load %arg4[%c0_3, %c0_4] : memref<512x128xf32, #tpu.memory_space<vmem>>, vector<512x128xf32>
    tpu.vector_store %arg4[%c0_3, %c0_4], %6 {strides = array<i32>} : memref<512x128xf32, #tpu.memory_space<vmem>>, vector<512x128xf32>,
    %c0_5 = arith.constant 0 : index
    %c0_6 = arith.constant 0 : index
    %8 = vector.load %arg3[%c0_5, %c0_6] : memref<128x128xf32, #tpu.memory_space<vmem>>, vector<128x128xf32>
    %cst_7 = arith.constant dense<0.000000e+00> : vector<512x128xf32>
    %9 = tpu.matmul %6, %8, %cst_7 {dimension_numbers = #tpu.dot_dimension_numbers<[1], [0], [0], [1], [0, 0, 1, 1], [], []>} : vector<512x128xf32>, vector<128x128xf32>, vector<512x128xf32> -> vector<512x128xf32>
    %c0_8 = arith.constant 0 : index
    %c0_9 = arith.constant 0 : index
    %10 = vector.load %arg5[%c0_8, %c0_9] : memref<512x128xf32, #tpu.memory_space<vmem>>, vector<512x128xf32>
    tpu.vector_store %arg5[%c0_8, %c0_9], %9 {strides = array<i32>} : memref<512x128xf32, #tpu.memory_space<vmem>>, vector<512x128xf32>,
    return
  }
  func.func @transform_0(%arg0: i32) -> (i32, i32) {
    %c0_i32 = arith.constant 0 : i32
    %c0_i32_0 = arith.constant 0 : i32
    return %arg0, %c0_i32 : i32, i32
  }
  func.func @transform_1(%arg0: i32) -> (i32, i32) {
    %c0_i32 = arith.constant 0 : i32
    %c0_i32_0 = arith.constant 0 : i32
    %c0_i32_1 = arith.constant 0 : i32
    return %c0_i32, %c0_i32_0 : i32, i32
  }
  func.func @transform_2(%arg0: i32) -> (i32, i32) {
    %c0_i32 = arith.constant 0 : i32
    %c0_i32_0 = arith.constant 0 : i32
    %c0_i32_1 = arith.constant 0 : i32
    return %c0_i32, %c0_i32_0 : i32, i32
  }
  func.func @transform_3(%arg0: i32) -> (i32, i32) {
    %c0_i32 = arith.constant 0 : i32
    %c0_i32_0 = arith.constant 0 : i32
    return %arg0, %c0_i32 : i32, i32
  }
  func.func @transform_4(%arg0: i32) -> (i32, i32) {
    %c0_i32 = arith.constant 0 : i32
    %c0_i32_0 = arith.constant 0 : i32
    return %arg0, %c0_i32 : i32, i32
  }
}

</mosaic_0001>

<bundles_post_ra>
// kernel: memory_module_3d.3
= control target key start
LH: loop header
LB: loop body
LE: loop exit
PB: predicated region body
PF: predicated region fallthrough
CT: control target
= control target key end

     0   :  { %v85_v13 = vlaneseq  ;;  %s1785_s0 = inlined_call_operand.vmem [shape: f32[512,128], index: 0, kind: input, shape index: {}, may-alias: {0,3}]   ;;  %s1786_s1 = inlined_call_operand.vmem [shape: f32[1,128], index: 1, kind: input, shape index: {}]   ;;  %s1787_s2 = inlined_call_operand.vmem [shape: f32[128,128], index: 2, kind: input, shape index: {}]   ;;  %s1788_s3 = inlined_call_operand.vmem [shape: f32[512,128], index: 3, kind: output, shape index: {0}, may-alias: {0,3}]   ;;  %s1789_s4 = inlined_call_operand.hbm [shape: f32[512,128], index: 4, kind: output, shape index: {1}]  }
   0x1   :  { %v218_v0 = vld [vmem:[%s1787_s2] sm:$0xff]  ;;  %v219_v1 = vld [vmem:[%s1787_s2 + $0x8] sm:$0xff]  ;;  %v220_v2 = vld [vmem:[%s1787_s2 + $0x10] sm:$0xff] }
   0x2   :  { %v911_v3 = vpack.c.bf16 %v219_v1, %v218_v0  ;;  %v221_v4 = vld [vmem:[%s1787_s2 + $0x18] sm:$0xff]  ;;  %v222_v6 = vld [vmem:[%s1787_s2 + $0x20] sm:$0xff]  ;;  %v223_v7 = vld [vmem:[%s1787_s2 + $0x28] sm:$0xff]  ;;  %v86_v17 = vshrl.u32 %v85_v13, 7 }
   0x3   :  { %v915_v5 = vpack.c.bf16 %v221_v4, %v220_v2  ;;  %v919_v8 = vpack.c.bf16 %v223_v7, %v222_v6  ;;  %v81_v9 = vld [vmem:[%s1786_s1] sm:$0x1]  ;;  %v224_v10 = vld [vmem:[%s1787_s2 + $0x30] sm:$0xff]  ;;  %v225_v11 = vld [vmem:[%s1787_s2 + $0x38] sm:$0xff] }
   0x4   :  { %912 = vmatprep.subr.bf16.mxu0 %v911_v3  ;;  %943 = vmatprep.subr.bf16.mxu1 %v911_v3  ;;  %v82_v12 = vmax.f32 %v81_v9, 1e-12  ;;  %v923_v14 = vpack.c.bf16 %v225_v11, %v224_v10  ;;  %v226_v15 = vld [vmem:[%s1787_s2 + $0x40] sm:$0xff]  ;;  %v227_v16 = vld [vmem:[%s1787_s2 + $0x48] sm:$0xff]  ;;  %v228_v19 = vld [vmem:[%s1787_s2 + $0x50] sm:$0xff]  ;;  %v87_v25 = vsub.s32 0, %v86_v17 }
   0x5   :  { %914 = vmatpush3.bf16.msra.mxu0 %v911_v3  ;;  %951 = vmatpush3.bf16.msra.mxu1 %v911_v3  ;;  %v927_v18 = vpack.c.bf16 %v227_v16, %v226_v15  ;;  %v229_v20 = vld [vmem:[%s1787_s2 + $0x58] sm:$0xff]  ;;  %v230_v21 = vld [vmem:[%s1787_s2 + $0x60] sm:$0xff]  ;;  %v231_v22 = vld [vmem:[%s1787_s2 + $0x68] sm:$0xff] }
   0x6   :  { %916 = vmatprep.subr.bf16.mxu0 %v915_v5  ;;  %944 = vmatprep.subr.bf16.mxu1 %v915_v5  ;;  %962 = vrcp.f32 %v82_v12  ;;  %v232_v23 = vld [vmem:[%s1787_s2 + $0x70] sm:$0xff]  ;;  %v233_v24 = vld [vmem:[%s1787_s2 + $0x78] sm:$0xff]  ;;  %v17_v26 = vld [vmem:[%s1785_s0] sm:$0xff]  ;;  %v931_v29 = vpack.c.bf16 %v229_v20, %v228_v19  ;;  %v1108_v42 = vpack.c.bf16 %v231_v22, %v230_v21 }
   0x7   :  { %v49_v27 = vld [vmem:[%s1785_s0 + $0x100] sm:$0xff]  ;;  %v18_v28 = vld [vmem:[%s1785_s0 + $0x8] sm:$0xff]  ;;  %v19_v31 = vld [vmem:[%s1785_s0 + $0x10] sm:$0xff]  ;;  %v1110_v43 = vpack.c.bf16 %v233_v24, %v232_v23 }
   0x8   :  { %v50_v30 = vld [vmem:[%s1785_s0 + $0x108] sm:$0xff]  ;;  %v51_v32 = vld [vmem:[%s1785_s0 + $0x110] sm:$0xff]  ;;  %v20_v33 = vld [vmem:[%s1785_s0 + $0x18] sm:$0xff] }
   0x9   :  { %918 = vmatpush3.bf16.msra.mxu0 %v915_v5  ;;  %952 = vmatpush3.bf16.msra.mxu1 %v915_v5  ;;  %v52_v35 = vld [vmem:[%s1785_s0 + $0x118] sm:$0xff]  ;;  %v21_v36 = vld [vmem:[%s1785_s0 + $0x20] sm:$0xff]  ;;  %v22_v39 = vld [vmem:[%s1785_s0 + $0x28] sm:$0xff] }
   0xa   :  { %920 = vmatprep.subr.bf16.mxu0 %v919_v8  ;;  %945 = vmatprep.subr.bf16.mxu1 %v919_v8  ;;  %v53_v37 = vld [vmem:[%s1785_s0 + $0x120] sm:$0xff]  ;;  %v54_v40 = vld [vmem:[%s1785_s0 + $0x128] sm:$0xff]  ;;  %v23_v41 = vld [vmem:[%s1785_s0 + $0x30] sm:$0xff] }
   0xb   :  { %v55_v44 = vld [vmem:[%s1785_s0 + $0x130] sm:$0xff]  ;;  %v24_v45 = vld [vmem:[%s1785_s0 + $0x38] sm:$0xff]  ;;  %v25_v50 = vld [vmem:[%s1785_s0 + $0x40] sm:$0xff] }
   0xc   :  { %v56_v46 = vld [vmem:[%s1785_s0 + $0x138] sm:$0xff]  ;;  %v57_v51 = vld [vmem:[%s1785_s0 + $0x140] sm:$0xff]  ;;  %v26_v52 = vld [vmem:[%s1785_s0 + $0x48] sm:$0xff] }
   0xd   :  { %922 = vmatpush3.bf16.msra.mxu0 %v919_v8  ;;  %953 = vmatpush3.bf16.msra.mxu1 %v919_v8  ;;  %v58_v53 = vld [vmem:[%s1785_s0 + $0x148] sm:$0xff]  ;;  %v27_v58 = vld [vmem:[%s1785_s0 + $0x50] sm:$0xff]  ;;  %v28_v60 = vld [vmem:[%s1785_s0 + $0x58] sm:$0xff] }
   0xe   :  { %924 = vmatprep.subr.bf16.mxu0 %v923_v14  ;;  %946 = vmatprep.subr.bf16.mxu1 %v923_v14  ;;  %v59_v59 = vld [vmem:[%s1785_s0 + $0x150] sm:$0xff]  ;;  %v60_v61 = vld [vmem:[%s1785_s0 + $0x158] sm:$0xff] }
  0x10   :  { %v963_v34 = vpop.eup %962 }
  0x11   :  { %926 = vmatpush3.bf16.msra.mxu0 %v923_v14  ;;  %954 = vmatpush3.bf16.msra.mxu1 %v923_v14  ;;  %v1097_v38 = vrot.slane %v963_v34, %v87_v25 }
  0x12   :  { %928 = vmatprep.subr.bf16.mxu0 %v927_v18  ;;  %947 = vmatprep.subr.bf16.mxu1 %v927_v18 }
  0x13   :  { %v90_v47 = vmul.f32 %v1097_v38, %v17_v26  ;;  %v122_v48 = vmul.f32 %v1097_v38, %v49_v27  ;;  %v1124_v49 = vmul.f32 %v1097_v38, %v18_v28  ;;  %v1139_v54 = vmul.f32 %v1097_v38, %v50_v30 }
  0x14   :  { %v1142_v55 = vmul.f32 %v1097_v38, %v19_v31  ;;  %v1145_v56 = vmul.f32 %v1097_v38, %v51_v32  ;;  %v1148_v57 = vmul.f32 %v1097_v38, %v20_v33  ;;  %v1173_v62 = vmul.f32 %v1097_v38, %v52_v35 }
  0x15   :  { %930 = vmatpush3.bf16.msra.mxu0 %v927_v18  ;;  %955 = vmatpush3.bf16.msra.mxu1 %v927_v18  ;;  %154 = vst [vmem:[%s1788_s3] sm:$0xff] %v90_v47  ;;  %186 = vst [vmem:[%s1788_s3 + $0x100] sm:$0xff] %v122_v48  ;;  %v1176_v63 = vmul.f32 %v1097_v38, %v21_v36  ;;  %v1179_v0 = vmul.f32 %v1097_v38, %v53_v37 }
  0x16   :  { %932 = vmatprep.subr.bf16.mxu0 %v931_v29  ;;  %948 = vmatprep.subr.bf16.mxu1 %v931_v29  ;;  %155 = vst [vmem:[%s1788_s3 + $0x8] sm:$0xff] %v1124_v49  ;;  %v1207_v4 = vmul.f32 %v1097_v38, %v22_v39  ;;  %v1210_v5 = vmul.f32 %v1097_v38, %v54_v40 }
  0x17   :  { %815 = vmatprep.mubr.f32.mxu0 %v90_v47  ;;  %863 = vmatprep.mubr.f32.mxu1 %v122_v48  ;;  %v1213_v6 = vmul.f32 %v1097_v38, %v23_v41  ;;  %v1239_v10 = vmul.f32 %v1097_v38, %v55_v44  ;;  %v1242_v11 = vmul.f32 %v1097_v38, %v24_v45 }
  0x18   :  { %v1245_v12 = vmul.f32 %v1097_v38, %v56_v46  ;;  %v1272_v17 = vmul.f32 %v1097_v38, %v25_v50  ;;  %v1275_v18 = vmul.f32 %v1097_v38, %v57_v51  ;;  %v1278_v19 = vmul.f32 %v1097_v38, %v26_v52 }
  0x19   :  { %934 = vmatpush3.bf16.msra.mxu0 %v931_v29  ;;  %956 = vmatpush3.bf16.msra.mxu1 %v931_v29  ;;  %v1281_v20 = vmul.f32 %v1097_v38, %v58_v53  ;;  %v1305_v24 = vmul.f32 %v1097_v38, %v27_v58  ;;  %v1308_v25 = vmul.f32 %v1097_v38, %v59_v59 }
  0x1a   :  { %936 = vmatprep.subr.bf16.mxu0 %v1108_v42  ;;  %949 = vmatprep.subr.bf16.mxu1 %v1108_v42  ;;  %v1311_v26 = vmul.f32 %v1097_v38, %v28_v60  ;;  %v1314_v27 = vmul.f32 %v1097_v38, %v60_v61 }
  0x1d   :  { %v29_v1 = vld [vmem:[%s1785_s0 + $0x60] sm:$0xff]  ;;  %v30_v3 = vld [vmem:[%s1785_s0 + $0x68] sm:$0xff] }
  0x1e   :  { %v61_v2 = vld [vmem:[%s1785_s0 + $0x160] sm:$0xff] }
  0x1f   :  { %187 = vst [vmem:[%s1788_s3 + $0x108] sm:$0xff] %v1139_v54  ;;  %156 = vst [vmem:[%s1788_s3 + $0x10] sm:$0xff] %v1142_v55 }
  0x20   :  { %188 = vst [vmem:[%s1788_s3 + $0x110] sm:$0xff] %v1145_v56  ;;  %157 = vst [vmem:[%s1788_s3 + $0x18] sm:$0xff] %v1148_v57 }
  0x27   :  { %v62_v7 = vld [vmem:[%s1785_s0 + $0x168] sm:$0xff]  ;;  %v31_v8 = vld [vmem:[%s1785_s0 + $0x70] sm:$0xff] }
  0x28   :  { %v63_v9 = vld [vmem:[%s1785_s0 + $0x170] sm:$0xff] }
  0x29   :  { %189 = vst [vmem:[%s1788_s3 + $0x118] sm:$0xff] %v1173_v62  ;;  %158 = vst [vmem:[%s1788_s3 + $0x20] sm:$0xff] %v1176_v63 }
  0x2a   :  { %190 = vst [vmem:[%s1788_s3 + $0x120] sm:$0xff] %v1179_v0 }
  0x31   :  { %v32_v13 = vld [vmem:[%s1785_s0 + $0x78] sm:$0xff]  ;;  %v33_v15 = vld [vmem:[%s1785_s0 + $0x80] sm:$0xff] }
  0x32   :  { %v64_v14 = vld [vmem:[%s1785_s0 + $0x178] sm:$0xff]  ;;  %v65_v16 = vld [vmem:[%s1785_s0 + $0x180] sm:$0xff] }
  0x33   :  { %159 = vst [vmem:[%s1788_s3 + $0x28] sm:$0xff] %v1207_v4  ;;  %191 = vst [vmem:[%s1788_s3 + $0x128] sm:$0xff] %v1210_v5 }
  0x34   :  { %160 = vst [vmem:[%s1788_s3 + $0x30] sm:$0xff] %v1213_v6 }
  0x3b   :  { %v34_v21 = vld [vmem:[%s1785_s0 + $0x88] sm:$0xff]  ;;  %v35_v23 = vld [vmem:[%s1785_s0 + $0x90] sm:$0xff] }
  0x3c   :  { %v66_v22 = vld [vmem:[%s1785_s0 + $0x188] sm:$0xff] }
  0x3d   :  { %192 = vst [vmem:[%s1788_s3 + $0x130] sm:$0xff] %v1239_v10  ;;  %161 = vst [vmem:[%s1788_s3 + $0x38] sm:$0xff] %v1242_v11 }
  0x3e   :  { %193 = vst [vmem:[%s1788_s3 + $0x138] sm:$0xff] %v1245_v12 }
  0x45   :  { %v67_v28 = vld [vmem:[%s1785_s0 + $0x190] sm:$0xff]  ;;  %v36_v29 = vld [vmem:[%s1785_s0 + $0x98] sm:$0xff] }
  0x46   :  { %10 = vsyncpa [#allocation3], 0  ;;  %938 = vmatpush3.bf16.msra.mxu0 %v1108_v42  ;;  %957 = vmatpush3.bf16.msra.mxu1 %v1108_v42  ;;  %162 = vst [vmem:[%s1788_s3 + $0x40] sm:$0xff] %v1272_v17  ;;  %v1341_v30 = vmul.f32 %v1097_v38, %v29_v1  ;;  %v1344_v31 = vmul.f32 %v1097_v38, %v61_v2 }
  0x47   :  { %194 = vst [vmem:[%s1788_s3 + $0x140] sm:$0xff] %v1275_v18  ;;  %163 = vst [vmem:[%s1788_s3 + $0x48] sm:$0xff] %v1278_v19  ;;  %v1347_v32 = vmul.f32 %v1097_v38, %v30_v3  ;;  %940 = vmatprep.subr.bf16.mxu0 %v1110_v43  ;;  %950 = vmatprep.subr.bf16.mxu1 %v1110_v43  ;;  %v1377_v36 = vmul.f32 %v1097_v38, %v62_v7 }
  0x48   :  { %195 = vst [vmem:[%s1788_s3 + $0x148] sm:$0xff] %v1281_v20  ;;  %v1380_v37 = vmul.f32 %v1097_v38, %v31_v8  ;;  %v1383_v39 = vmul.f32 %v1097_v38, %v63_v9  ;;  %v1407_v44 = vmul.f32 %v1097_v38, %v32_v13  ;;  %v1410_v45 = vmul.f32 %v1097_v38, %v64_v14 }
  0x49   :  { %v1413_v46 = vmul.f32 %v1097_v38, %v33_v15  ;;  %v1416_v47 = vmul.f32 %v1097_v38, %v65_v16  ;;  %v1440_v52 = vmul.f32 %v1097_v38, %v34_v21  ;;  %v1443_v53 = vmul.f32 %v1097_v38, %v66_v22 }
  0x4a   :  { %v1446_v58 = vmul.f32 %v1097_v38, %v35_v23  ;;  %v1449_v59 = vmul.f32 %v1097_v38, %v67_v28  ;;  %942 = vmatpush3.bf16.msra.mxu0 %v1110_v43  ;;  %958 = vmatpush3.bf16.msra.mxu1 %v1110_v43  ;;  %v1479_v43 = vmul.f32 %v1097_v38, %v36_v29 }
  0x4d   :  { %816 = vmatmul.mubr.f32.vlgmr.msra.gmra.mrb[0].mxu0 %v1124_v49  ;;  %864 = vmatmul.mubr.f32.vlgmr.msra.gmra.mrb[0].mxu1 %v1139_v54 }
  0x4e   :  { %818 = vmatprep.mubr.f32.mxu0 %v1142_v55  ;;  %866 = vmatprep.mubr.f32.mxu1 %v1145_v56 }
  0x4f   :  { %v68_v33 = vld [vmem:[%s1785_s0 + $0x198] sm:$0xff]  ;;  %v37_v34 = vld [vmem:[%s1785_s0 + $0xa0] sm:$0xff] }
  0x50   :  { %v69_v35 = vld [vmem:[%s1785_s0 + $0x1a0] sm:$0xff]  ;;  %v1482_v2 = vmul.f32 %v1097_v38, %v68_v33  ;;  %v1485_v3 = vmul.f32 %v1097_v38, %v37_v34 }
  0x51   :  { %164 = vst [vmem:[%s1788_s3 + $0x50] sm:$0xff] %v1305_v24  ;;  %196 = vst [vmem:[%s1788_s3 + $0x150] sm:$0xff] %v1308_v25  ;;  %v1513_v13 = vmul.f32 %v1097_v38, %v69_v35  ;;  %819 = vmatmul.mubr.f32.gmra.mrb[2].mxu0 %v1148_v57  ;;  %867 = vmatmul.mubr.f32.gmra.mrb[2].mxu1 %v1173_v62 }
  0x52   :  { %165 = vst [vmem:[%s1788_s3 + $0x58] sm:$0xff] %v1311_v26  ;;  %197 = vst [vmem:[%s1788_s3 + $0x158] sm:$0xff] %v1314_v27  ;;  %821 = vmatprep.mubr.f32.mxu0 %v1176_v63  ;;  %869 = vmatprep.mubr.f32.mxu1 %v1179_v0 }
  0x55   :  { %822 = vmatmul.mubr.f32.gmra.mrb[4].mxu0 %v1207_v4  ;;  %870 = vmatmul.mubr.f32.gmra.mrb[4].mxu1 %v1210_v5 }
  0x56   :  { %824 = vmatprep.mubr.f32.mxu0 %v1213_v6  ;;  %872 = vmatprep.mubr.f32.mxu1 %v1239_v10 }
  0x59   :  { %v38_v40 = vld [vmem:[%s1785_s0 + $0xa8] sm:$0xff]  ;;  %v39_v42 = vld [vmem:[%s1785_s0 + $0xb0] sm:$0xff]  ;;  %825 = vmatmul.mubr.f32.gmra.mrb[6].mxu0 %v1242_v11  ;;  %873 = vmatmul.mubr.f32.gmra.mrb[6].mxu1 %v1245_v12 }
  0x5a   :  { %v70_v41 = vld [vmem:[%s1785_s0 + $0x1a8] sm:$0xff]  ;;  %v1516_v14 = vmul.f32 %v1097_v38, %v38_v40  ;;  %v1522_v16 = vmul.f32 %v1097_v38, %v39_v42  ;;  %827 = vmatprep.mubr.f32.mxu0 %v1272_v17  ;;  %875 = vmatprep.mubr.f32.mxu1 %v1275_v18 }
  0x5b   :  { %166 = vst [vmem:[%s1788_s3 + $0x60] sm:$0xff] %v1341_v30  ;;  %198 = vst [vmem:[%s1788_s3 + $0x160] sm:$0xff] %v1344_v31  ;;  %v1519_v15 = vmul.f32 %v1097_v38, %v70_v41 }
  0x5c   :  { %167 = vst [vmem:[%s1788_s3 + $0x68] sm:$0xff] %v1347_v32 }
  0x5d   :  { %828 = vmatmul.mubr.f32.gmra.mrb[8].mxu0 %v1278_v19  ;;  %876 = vmatmul.mubr.f32.gmra.mrb[8].mxu1 %v1281_v20 }
  0x5e   :  { %830 = vmatprep.mubr.f32.mxu0 %v1305_v24  ;;  %878 = vmatprep.mubr.f32.mxu1 %v1308_v25 }
  0x61   :  { %831 = vmatmul.mubr.f32.gmra.mrb[10].mxu0 %v1311_v26  ;;  %879 = vmatmul.mubr.f32.gmra.mrb[10].mxu1 %v1314_v27 }
  0x62   :  { %833 = vmatprep.mubr.f32.mxu0 %v1341_v30  ;;  %881 = vmatprep.mubr.f32.mxu1 %v1344_v31 }
  0x63   :  { %v71_v48 = vld [vmem:[%s1785_s0 + $0x1b0] sm:$0xff]  ;;  %v40_v50 = vld [vmem:[%s1785_s0 + $0xb8] sm:$0xff] }
  0x64   :  { %v72_v51 = vld [vmem:[%s1785_s0 + $0x1b8] sm:$0xff]  ;;  %v1546_v28 = vmul.f32 %v1097_v38, %v71_v48  ;;  %v1549_v29 = vmul.f32 %v1097_v38, %v40_v50 }
  0x65   :  { %199 = vst [vmem:[%s1788_s3 + $0x168] sm:$0xff] %v1377_v36  ;;  %168 = vst [vmem:[%s1788_s3 + $0x70] sm:$0xff] %v1380_v37  ;;  %v1552_v33 = vmul.f32 %v1097_v38, %v72_v51  ;;  %834 = vmatmul.mubr.f32.gmra.mrb[12].mxu0 %v1347_v32  ;;  %882 = vmatmul.mubr.f32.gmra.mrb[12].mxu1 %v1377_v36 }
  0x66   :  { %200 = vst [vmem:[%s1788_s3 + $0x170] sm:$0xff] %v1383_v39  ;;  %836 = vmatprep.mubr.f32.mxu0 %v1380_v37  ;;  %884 = vmatprep.mubr.f32.mxu1 %v1383_v39 }
  0x69   :  { %837 = vmatmul.mubr.f32.gmra.mrb[14].mxu0 %v1407_v44  ;;  %885 = vmatmul.mubr.f32.gmra.mrb[14].mxu1 %v1410_v45 }
  0x6a   :  { %839 = vmatprep.mubr.f32.mxu0 %v1413_v46  ;;  %887 = vmatprep.mubr.f32.mxu1 %v1416_v47 }
  0x6d   :  { %v41_v60 = vld [vmem:[%s1785_s0 + $0xc0] sm:$0xff]  ;;  %v42_v1 = vld [vmem:[%s1785_s0 + $0xc8] sm:$0xff]  ;;  %840 = vmatmul.mubr.f32.gmra.mrb[16].mxu0 %v1440_v52  ;;  %888 = vmatmul.mubr.f32.gmra.mrb[16].mxu1 %v1443_v53 }
  0x6e   :  { %v73_v61 = vld [vmem:[%s1785_s0 + $0x1c0] sm:$0xff]  ;;  %v1555_v34 = vmul.f32 %v1097_v38, %v41_v60  ;;  %v1588_v54 = vmul.f32 %v1097_v38, %v42_v1  ;;  %842 = vmatprep.mubr.f32.mxu0 %v1446_v58  ;;  %890 = vmatprep.mubr.f32.mxu1 %v1449_v59 }
  0x6f   :  { %169 = vst [vmem:[%s1788_s3 + $0x78] sm:$0xff] %v1407_v44  ;;  %201 = vst [vmem:[%s1788_s3 + $0x178] sm:$0xff] %v1410_v45  ;;  %v1585_v49 = vmul.f32 %v1097_v38, %v73_v61 }
  0x70   :  { %170 = vst [vmem:[%s1788_s3 + $0x80] sm:$0xff] %v1413_v46  ;;  %202 = vst [vmem:[%s1788_s3 + $0x180] sm:$0xff] %v1416_v47 }
  0x71   :  { %843 = vmatmul.mubr.f32.gmra.mrb[18].mxu0 %v1479_v43  ;;  %891 = vmatmul.mubr.f32.gmra.mrb[18].mxu1 %v1482_v2 }
  0x72   :  { %845 = vmatprep.mubr.f32.mxu0 %v1485_v3  ;;  %893 = vmatprep.mubr.f32.mxu1 %v1513_v13 }
  0x75   :  { %846 = vmatmul.mubr.f32.gmra.mrb[20].mxu0 %v1516_v14  ;;  %894 = vmatmul.mubr.f32.gmra.mrb[20].mxu1 %v1519_v15 }
  0x76   :  { %848 = vmatprep.mubr.f32.mxu0 %v1522_v16  ;;  %896 = vmatprep.mubr.f32.mxu1 %v1546_v28 }
  0x77   :  { %v74_v7 = vld [vmem:[%s1785_s0 + $0x1c8] sm:$0xff]  ;;  %v43_v8 = vld [vmem:[%s1785_s0 + $0xd0] sm:$0xff] }
  0x78   :  { %v75_v9 = vld [vmem:[%s1785_s0 + $0x1d0] sm:$0xff]  ;;  %v1591_v42 = vmul.f32 %v1097_v38, %v74_v7  ;;  %v1621_v55 = vmul.f32 %v1097_v38, %v43_v8 }
  0x79   :  { %171 = vst [vmem:[%s1788_s3 + $0x88] sm:$0xff] %v1440_v52  ;;  %203 = vst [vmem:[%s1788_s3 + $0x188] sm:$0xff] %v1443_v53  ;;  %v1624_v56 = vmul.f32 %v1097_v38, %v75_v9  ;;  %849 = vmatmul.mubr.f32.gmra.mrb[22].mxu0 %v1549_v29  ;;  %897 = vmatmul.mubr.f32.gmra.mrb[22].mxu1 %v1552_v33 }
  0x7a   :  { %172 = vst [vmem:[%s1788_s3 + $0x90] sm:$0xff] %v1446_v58  ;;  %204 = vst [vmem:[%s1788_s3 + $0x190] sm:$0xff] %v1449_v59  ;;  %851 = vmatprep.mubr.f32.mxu0 %v1555_v34  ;;  %899 = vmatprep.mubr.f32.mxu1 %v1585_v49 }
  0x7d   :  { %852 = vmatmul.mubr.f32.gmra.mrb[24].mxu0 %v1588_v54  ;;  %900 = vmatmul.mubr.f32.gmra.mrb[24].mxu1 %v1591_v42 }
  0x7e   :  { %854 = vmatprep.mubr.f32.mxu0 %v1621_v55  ;;  %902 = vmatprep.mubr.f32.mxu1 %v1624_v56 }
  0x81   :  { %v44_v21 = vld [vmem:[%s1785_s0 + $0xd8] sm:$0xff]  ;;  %v45_v23 = vld [vmem:[%s1785_s0 + $0xe0] sm:$0xff] }
  0x82   :  { %v76_v22 = vld [vmem:[%s1785_s0 + $0x1d8] sm:$0xff]  ;;  %v1627_v60 = vmul.f32 %v1097_v38, %v44_v21  ;;  %v1648_v7 = vmul.f32 %v1097_v38, %v45_v23 }
  0x83   :  { %173 = vst [vmem:[%s1788_s3 + $0x98] sm:$0xff] %v1479_v43  ;;  %205 = vst [vmem:[%s1788_s3 + $0x198] sm:$0xff] %v1482_v2  ;;  %v1645_v1 = vmul.f32 %v1097_v38, %v76_v22 }
  0x84   :  { %174 = vst [vmem:[%s1788_s3 + $0xa0] sm:$0xff] %v1485_v3  ;;  %855 = vmatmul.mubr.f32.gmra.mrb[26].mxu0 %v1627_v60 }
  0x85   :  { %903 = vmatmul.mubr.f32.gmra.mrb[26].mxu1 %v1645_v1  ;;  %857 = vmatprep.mubr.f32.mxu0 %v1648_v7 }
  0x8b   :  { %v77_v35 = vld [vmem:[%s1785_s0 + $0x1e0] sm:$0xff]  ;;  %v46_v40 = vld [vmem:[%s1785_s0 + $0xe8] sm:$0xff] }
  0x8c   :  { %v78_v41 = vld [vmem:[%s1785_s0 + $0x1e8] sm:$0xff]  ;;  %v1651_v8 = vmul.f32 %v1097_v38, %v77_v35  ;;  %v1654_v9 = vmul.f32 %v1097_v38, %v46_v40 }
  0x8d   :  { %206 = vst [vmem:[%s1788_s3 + $0x1a0] sm:$0xff] %v1513_v13  ;;  %175 = vst [vmem:[%s1788_s3 + $0xa8] sm:$0xff] %v1516_v14  ;;  %v1669_v21 = vmul.f32 %v1097_v38, %v78_v41 }
  0x8e   :  { %207 = vst [vmem:[%s1788_s3 + $0x1a8] sm:$0xff] %v1519_v15  ;;  %176 = vst [vmem:[%s1788_s3 + $0xb0] sm:$0xff] %v1522_v16  ;;  %905 = vmatprep.mubr.f32.mxu1 %v1651_v8  ;;  %858 = vmatmul.mubr.f32.gmra.mrb[28].mxu0 %v1654_v9 }
  0x8f   :  { %906 = vmatmul.mubr.f32.gmra.mrb[28].mxu1 %v1669_v21 }
  0x95   :  { %v47_v48 = vld [vmem:[%s1785_s0 + $0xf0] sm:$0xff]  ;;  %v48_v51 = vld [vmem:[%s1785_s0 + $0xf8] sm:$0xff] }
  0x96   :  { %v79_v50 = vld [vmem:[%s1785_s0 + $0x1f0] sm:$0xff]  ;;  %v1672_v22 = vmul.f32 %v1097_v38, %v47_v48  ;;  %v1678_v35 = vmul.f32 %v1097_v38, %v48_v51 }
  0x97   :  { %208 = vst [vmem:[%s1788_s3 + $0x1b0] sm:$0xff] %v1546_v28  ;;  %177 = vst [vmem:[%s1788_s3 + $0xb8] sm:$0xff] %v1549_v29  ;;  %v1675_v23 = vmul.f32 %v1097_v38, %v79_v50 }
  0x98   :  { %209 = vst [vmem:[%s1788_s3 + $0x1b8] sm:$0xff] %v1552_v33  ;;  %178 = vst [vmem:[%s1788_s3 + $0xc0] sm:$0xff] %v1555_v34  ;;  %860 = vmatprep.mubr.f32.mxu0 %v1672_v22 }
  0x99   :  { %908 = vmatprep.mubr.f32.mxu1 %v1675_v23  ;;  %861 = vmatmul.mubr.f32.gmra.mrb[30].mxu0 %v1678_v35 }
  0x9f   :  { %v80_v61 = vld [vmem:[%s1785_s0 + $0x1f8] sm:$0xff] }
  0xa0   :  { %210 = vst [vmem:[%s1788_s3 + $0x1c0] sm:$0xff] %v1585_v49  ;;  %179 = vst [vmem:[%s1788_s3 + $0xc8] sm:$0xff] %v1588_v54  ;;  %v153_v57 = vmul.f32 %v1097_v38, %v80_v61 }
  0xa1   :  { %211 = vst [vmem:[%s1788_s3 + $0x1c8] sm:$0xff] %v1591_v42  ;;  %180 = vst [vmem:[%s1788_s3 + $0xd0] sm:$0xff] %v1621_v55 }
  0xa2   :  { %212 = vst [vmem:[%s1788_s3 + $0x1d0] sm:$0xff] %v1624_v56  ;;  %181 = vst [vmem:[%s1788_s3 + $0xd8] sm:$0xff] %v1627_v60  ;;  %909 = vmatmul.mubr.f32.gmra.mrb[30].mxu1 %v153_v57 }
  0xa3   :  { %213 = vst [vmem:[%s1788_s3 + $0x1d8] sm:$0xff] %v1645_v1  ;;  %182 = vst [vmem:[%s1788_s3 + $0xe0] sm:$0xff] %v1648_v7 }
  0xa4   :  { %214 = vst [vmem:[%s1788_s3 + $0x1e0] sm:$0xff] %v1651_v8  ;;  %183 = vst [vmem:[%s1788_s3 + $0xe8] sm:$0xff] %v1654_v9 }
  0xa5   :  { %215 = vst [vmem:[%s1788_s3 + $0x1e8] sm:$0xff] %v1669_v21  ;;  %184 = vst [vmem:[%s1788_s3 + $0xf0] sm:$0xff] %v1672_v22 }
  0xa6   :  { %216 = vst [vmem:[%s1788_s3 + $0x1f0] sm:$0xff] %v1675_v23  ;;  %185 = vst [vmem:[%s1788_s3 + $0xf8] sm:$0xff] %v1678_v35 }
  0xa7   :  { %217 = vst [vmem:[%s1788_s3 + $0x1f8] sm:$0xff] %v153_v57  ;;  %s988_s3 = smov [#allocation2]  }
  0xa8   :  { %s690_s25 = sshll.u32 %s988_s3, 4  ;;  %s691_s25 = int_to_ptr.vmem [resolvable:$true] %s690_s25 }
  0xa9   :  { %s964_s26 = scalar_lea.vmem %s691_s25, 8192  ;;  %p969_p1 = scmp.lt.s32.totalorder %s691_s25, %s691_s25 }
  0xaa   :  { %p965_p0 = scmp.ne.s32.totalorder %s691_s25, %s964_s26  ;;  %p970_p2 = scmp.lt.s32.totalorder %s964_s26, %s964_s26 }
  0xac   :  { %p971_p3 = por %p970_p2, %p969_p1 }
  0xae   :  { %p972_p4 = pnand %p971_p3, %p965_p0 }
 0x120   :  { %v817_v38 = vpop.f32.mrb[0].mxu0  ;;  %v865_v62 = vpop.f32.mrb[0].mxu1 }
 0x121   :  { %620 = vst [vmem:[#allocation2 + $0x8] sm:$0xff] %v817_v38  ;;  %652 = vst [vmem:[#allocation2 + $0x108] sm:$0xff] %v865_v62  ;;  %v300_v63 = vpop.f32.mrb[1].mxu0  ;;  %v460_v0 = vpop.f32.mrb[1].mxu1 }
 0x122   :  { %619 = vst [vmem:[#allocation2] sm:$0xff] %v300_v63  ;;  %651 = vst [vmem:[#allocation2 + $0x100] sm:$0xff] %v460_v0 }
 0x124   :  { %v820_v4 = vpop.f32.mrb[2].mxu0  ;;  %v868_v5 = vpop.f32.mrb[2].mxu1 }
 0x125   :  { %622 = vst [vmem:[#allocation2 + $0x18] sm:$0xff] %v820_v4  ;;  %654 = vst [vmem:[#allocation2 + $0x118] sm:$0xff] %v868_v5  ;;  %v310_v6 = vpop.f32.mrb[3].mxu0  ;;  %v470_v10 = vpop.f32.mrb[3].mxu1 }
 0x126   :  { %621 = vst [vmem:[#allocation2 + $0x10] sm:$0xff] %v310_v6  ;;  %653 = vst [vmem:[#allocation2 + $0x110] sm:$0xff] %v470_v10 }
 0x128   :  { %v823_v11 = vpop.f32.mrb[4].mxu0  ;;  %v871_v12 = vpop.f32.mrb[4].mxu1 }
 0x129   :  { %624 = vst [vmem:[#allocation2 + $0x28] sm:$0xff] %v823_v11  ;;  %656 = vst [vmem:[#allocation2 + $0x128] sm:$0xff] %v871_v12  ;;  %v320_v17 = vpop.f32.mrb[5].mxu0  ;;  %v480_v18 = vpop.f32.mrb[5].mxu1 }
 0x12a   :  { %623 = vst [vmem:[#allocation2 + $0x20] sm:$0xff] %v320_v17  ;;  %655 = vst [vmem:[#allocation2 + $0x120] sm:$0xff] %v480_v18 }
 0x12c   :  { %v826_v19 = vpop.f32.mrb[6].mxu0  ;;  %v874_v20 = vpop.f32.mrb[6].mxu1 }
 0x12d   :  { %626 = vst [vmem:[#allocation2 + $0x38] sm:$0xff] %v826_v19  ;;  %658 = vst [vmem:[#allocation2 + $0x138] sm:$0xff] %v874_v20  ;;  %v330_v24 = vpop.f32.mrb[7].mxu0  ;;  %v490_v25 = vpop.f32.mrb[7].mxu1 }
 0x12e   :  { %625 = vst [vmem:[#allocation2 + $0x30] sm:$0xff] %v330_v24  ;;  %657 = vst [vmem:[#allocation2 + $0x130] sm:$0xff] %v490_v25 }
 0x130   :  { %v829_v26 = vpop.f32.mrb[8].mxu0  ;;  %v877_v27 = vpop.f32.mrb[8].mxu1 }
 0x131   :  { %628 = vst [vmem:[#allocation2 + $0x48] sm:$0xff] %v829_v26  ;;  %660 = vst [vmem:[#allocation2 + $0x148] sm:$0xff] %v877_v27  ;;  %v340_v30 = vpop.f32.mrb[9].mxu0  ;;  %v500_v31 = vpop.f32.mrb[9].mxu1 }
 0x132   :  { %627 = vst [vmem:[#allocation2 + $0x40] sm:$0xff] %v340_v30  ;;  %659 = vst [vmem:[#allocation2 + $0x140] sm:$0xff] %v500_v31 }
 0x134   :  { %v832_v32 = vpop.f32.mrb[10].mxu0  ;;  %v880_v36 = vpop.f32.mrb[10].mxu1 }
 0x135   :  { %630 = vst [vmem:[#allocation2 + $0x58] sm:$0xff] %v832_v32  ;;  %662 = vst [vmem:[#allocation2 + $0x158] sm:$0xff] %v880_v36  ;;  %v350_v37 = vpop.f32.mrb[11].mxu0  ;;  %v510_v39 = vpop.f32.mrb[11].mxu1 }
 0x136   :  { %629 = vst [vmem:[#allocation2 + $0x50] sm:$0xff] %v350_v37  ;;  %661 = vst [vmem:[#allocation2 + $0x150] sm:$0xff] %v510_v39 }
 0x138   :  { %v835_v44 = vpop.f32.mrb[12].mxu0  ;;  %v883_v45 = vpop.f32.mrb[12].mxu1 }
 0x139   :  { %632 = vst [vmem:[#allocation2 + $0x68] sm:$0xff] %v835_v44  ;;  %664 = vst [vmem:[#allocation2 + $0x168] sm:$0xff] %v883_v45  ;;  %v360_v46 = vpop.f32.mrb[13].mxu0  ;;  %v520_v47 = vpop.f32.mrb[13].mxu1 }
 0x13a   :  { %631 = vst [vmem:[#allocation2 + $0x60] sm:$0xff] %v360_v46  ;;  %663 = vst [vmem:[#allocation2 + $0x160] sm:$0xff] %v520_v47 }
 0x13c   :  { %v838_v52 = vpop.f32.mrb[14].mxu0  ;;  %v886_v53 = vpop.f32.mrb[14].mxu1 }
 0x13d   :  { %634 = vst [vmem:[#allocation2 + $0x78] sm:$0xff] %v838_v52  ;;  %666 = vst [vmem:[#allocation2 + $0x178] sm:$0xff] %v886_v53  ;;  %v370_v58 = vpop.f32.mrb[15].mxu0  ;;  %v530_v59 = vpop.f32.mrb[15].mxu1 }
 0x13e   :  { %633 = vst [vmem:[#allocation2 + $0x70] sm:$0xff] %v370_v58  ;;  %665 = vst [vmem:[#allocation2 + $0x170] sm:$0xff] %v530_v59 }
 0x140   :  { %v841_v43 = vpop.f32.mrb[16].mxu0  ;;  %v889_v2 = vpop.f32.mrb[16].mxu1 }
 0x141   :  { %636 = vst [vmem:[#allocation2 + $0x88] sm:$0xff] %v841_v43  ;;  %668 = vst [vmem:[#allocation2 + $0x188] sm:$0xff] %v889_v2  ;;  %v380_v3 = vpop.f32.mrb[17].mxu0  ;;  %v540_v13 = vpop.f32.mrb[17].mxu1 }
 0x142   :  { %635 = vst [vmem:[#allocation2 + $0x80] sm:$0xff] %v380_v3  ;;  %667 = vst [vmem:[#allocation2 + $0x180] sm:$0xff] %v540_v13 }
 0x144   :  { %v844_v14 = vpop.f32.mrb[18].mxu0  ;;  %v892_v15 = vpop.f32.mrb[18].mxu1 }
 0x145   :  { %638 = vst [vmem:[#allocation2 + $0x98] sm:$0xff] %v844_v14  ;;  %670 = vst [vmem:[#allocation2 + $0x198] sm:$0xff] %v892_v15  ;;  %v390_v16 = vpop.f32.mrb[19].mxu0  ;;  %v550_v28 = vpop.f32.mrb[19].mxu1 }
 0x146   :  { %637 = vst [vmem:[#allocation2 + $0x90] sm:$0xff] %v390_v16  ;;  %669 = vst [vmem:[#allocation2 + $0x190] sm:$0xff] %v550_v28 }
 0x148   :  { %v847_v29 = vpop.f32.mrb[20].mxu0  ;;  %v895_v33 = vpop.f32.mrb[20].mxu1 }
 0x149   :  { %640 = vst [vmem:[#allocation2 + $0xa8] sm:$0xff] %v847_v29  ;;  %672 = vst [vmem:[#allocation2 + $0x1a8] sm:$0xff] %v895_v33  ;;  %v400_v34 = vpop.f32.mrb[21].mxu0  ;;  %v560_v40 = vpop.f32.mrb[21].mxu1 }
 0x14a   :  { %639 = vst [vmem:[#allocation2 + $0xa0] sm:$0xff] %v400_v34  ;;  %671 = vst [vmem:[#allocation2 + $0x1a0] sm:$0xff] %v560_v40 }
 0x14c   :  { %v850_v41 = vpop.f32.mrb[22].mxu0  ;;  %v898_v49 = vpop.f32.mrb[22].mxu1 }
 0x14d   :  { %642 = vst [vmem:[#allocation2 + $0xb8] sm:$0xff] %v850_v41  ;;  %674 = vst [vmem:[#allocation2 + $0x1b8] sm:$0xff] %v898_v49  ;;  %v410_v54 = vpop.f32.mrb[23].mxu0  ;;  %v570_v42 = vpop.f32.mrb[23].mxu1 }
 0x14e   :  { %641 = vst [vmem:[#allocation2 + $0xb0] sm:$0xff] %v410_v54  ;;  %673 = vst [vmem:[#allocation2 + $0x1b0] sm:$0xff] %v570_v42 }
 0x150   :  { %v853_v48 = vpop.f32.mrb[24].mxu0  ;;  %v901_v50 = vpop.f32.mrb[24].mxu1 }
 0x151   :  { %644 = vst [vmem:[#allocation2 + $0xc8] sm:$0xff] %v853_v48  ;;  %676 = vst [vmem:[#allocation2 + $0x1c8] sm:$0xff] %v901_v50  ;;  %v420_v51 = vpop.f32.mrb[25].mxu0  ;;  %v580_v55 = vpop.f32.mrb[25].mxu1 }
 0x152   :  { %643 = vst [vmem:[#allocation2 + $0xc0] sm:$0xff] %v420_v51  ;;  %675 = vst [vmem:[#allocation2 + $0x1c0] sm:$0xff] %v580_v55 }
 0x157   :  { %v856_v56 = vpop.f32.mrb[26].mxu0 }
 0x158   :  { %v904_v60 = vpop.f32.mrb[26].mxu1  ;;  %646 = vst [vmem:[#allocation2 + $0xd8] sm:$0xff] %v856_v56  ;;  %v430_v61 = vpop.f32.mrb[27].mxu0 }
 0x159   :  { %678 = vst [vmem:[#allocation2 + $0x1d8] sm:$0xff] %v904_v60  ;;  %v590_v1 = vpop.f32.mrb[27].mxu1  ;;  %645 = vst [vmem:[#allocation2 + $0xd0] sm:$0xff] %v430_v61 }
 0x15a   :  { %677 = vst [vmem:[#allocation2 + $0x1d0] sm:$0xff] %v590_v1 }
 0x161   :  { %v859_v7 = vpop.f32.mrb[28].mxu0 }
 0x162   :  { %v907_v8 = vpop.f32.mrb[28].mxu1  ;;  %648 = vst [vmem:[#allocation2 + $0xe8] sm:$0xff] %v859_v7  ;;  %v440_v9 = vpop.f32.mrb[29].mxu0 }
 0x163   :  { %680 = vst [vmem:[#allocation2 + $0x1e8] sm:$0xff] %v907_v8  ;;  %v600_v21 = vpop.f32.mrb[29].mxu1  ;;  %647 = vst [vmem:[#allocation2 + $0xe0] sm:$0xff] %v440_v9 }
 0x164   :  { %679 = vst [vmem:[#allocation2 + $0x1e0] sm:$0xff] %v600_v21 }
 0x16c   :  { %v862_v22 = vpop.f32.mrb[30].mxu0 }
 0x16d   :  { %650 = vst [vmem:[#allocation2 + $0xf8] sm:$0xff] %v862_v22  ;;  %v450_v35 = vpop.f32.mrb[31].mxu0 }
 0x16e   :  { %649 = vst [vmem:[#allocation2 + $0xf0] sm:$0xff] %v450_v35 }
 0x175   :  { %v910_v23 = vpop.f32.mrb[30].mxu1 }
 0x176   :  { %682 = vst [vmem:[#allocation2 + $0x1f8] sm:$0xff] %v910_v23  ;;  %v610_v57 = vpop.f32.mrb[31].mxu1 }
 0x177   :  { %681 = vst [vmem:[#allocation2 + $0x1f0] sm:$0xff] %v610_v57 }
 0x178   :  { %975 = shalt.err (!%p972_p4)
}
 0x179   :  { %s976_s2 = scalar_lea.hbm %s1789_s4, 8192 }
 0x17a   :  { %p977_p5 = scmp.ne.s32.totalorder %s1789_s4, %s976_s2  ;;  %p980_p6 = scmp.lt.u32.totalorder %s976_s2, %s1789_s4 }
 0x17c   :  { %p982_p7 = pnand %p980_p6, %p977_p5 }
 0x17e   :  { %985 = shalt.err (!%p982_p7)
}
 0x17f   :  { %s989_s6 = smov 128   ;;  %s990_s7 = smov 8  }
 0x180   :  { %696 = dma.vmem_to_hbm [thread:$0]  %s691_s25, 8192, %s1789_s4, [#allocation3], %s989_s6, %s989_s6, %s990_s7  }
 0x181   :  { %986 = dma.done.wait [#allocation3], 8192  }
 0x182   :  { %987 = vsyncadd [#allocation3], 4294959104 }
 0x183   :  { %702 = vsyncpa [#allocation3], 1 }

// kernel: memory_module_3d.2
= control target key start
LH: loop header
LB: loop body
LE: loop exit
PB: predicated region body
PF: predicated region fallthrough
CT: control target
= control target key end

     0   :  { %s5330_s0 = inlined_call_operand.vmem [shape: f32[512,128], index: 0, kind: input, shape index: {}]   ;;  %s5331_s1 = inlined_call_operand.vmem [shape: f32[128,128], index: 1, kind: input, shape index: {}]   ;;  %s5332_s2 = inlined_call_operand.vmem [shape: f32[512,128], index: 2, kind: output, shape index: {0}]   ;;  %s5333_s3 = inlined_call_operand.vmem [shape: f32[1,1,128], index: 3, kind: output, shape index: {1}]  }
   0x1   :  { %v3065_v0 = vld [vmem:[%s5330_s0 + $0x10] sm:$0xff]  ;;  %v3070_v1 = vld [vmem:[%s5330_s0] sm:$0xff]  ;;  %v3075_v2 = vld [vmem:[%s5330_s0 + $0x18] sm:$0xff] }
   0x2   :  { %v95_v3 = vmul.f32 %v3065_v0, %v3065_v0  ;;  %v93_v4 = vmul.f32 %v3070_v1, %v3070_v1  ;;  %v3084_v5 = vld [vmem:[%s5330_s0 + $0x8] sm:$0xff]  ;;  %v96_v6 = vmul.f32 %v3075_v2, %v3075_v2  ;;  %v3098_v9 = vld [vmem:[%s5330_s0 + $0x20] sm:$0xff]  ;;  %v3107_v12 = vld [vmem:[%s5330_s0 + $0x38] sm:$0xff] }
   0x3   :  { %v94_v7 = vmul.f32 %v3084_v5, %v3084_v5  ;;  %v3093_v8 = vld [vmem:[%s5330_s0 + $0x28] sm:$0xff]  ;;  %v97_v11 = vmul.f32 %v3098_v9, %v3098_v9  ;;  %v3112_v13 = vld [vmem:[%s5330_s0 + $0x30] sm:$0xff]  ;;  %v100_v14 = vmul.f32 %v3107_v12, %v3107_v12  ;;  %v3126_v17 = vld [vmem:[%s5330_s0 + $0x40] sm:$0xff] }
   0x4   :  { %161 = vadd.xlane.f32.xlu1 %v95_v3  ;;  %157 = vadd.xlane.f32.xlu0 %v93_v4  ;;  %v98_v10 = vmul.f32 %v3093_v8, %v3093_v8  ;;  %v99_v15 = vmul.f32 %v3112_v13, %v3112_v13  ;;  %v3121_v16 = vld [vmem:[%s5330_s0 + $0x48] sm:$0xff]  ;;  %v101_v19 = vmul.f32 %v3126_v17, %v3126_v17  ;;  %v3135_v20 = vld [vmem:[%s5330_s0 + $0x58] sm:$0xff]  ;;  %v3140_v21 = vld [vmem:[%s5330_s0 + $0x50] sm:$0xff] }
   0x5   :  { %v102_v18 = vmul.f32 %v3121_v16, %v3121_v16  ;;  %v77_v22 = vld [vmem:[%s5331_s1] sm:$0xff]  ;;  %v78_v23 = vld [vmem:[%s5331_s1 + $0x8] sm:$0xff]  ;;  %v104_v25 = vmul.f32 %v3135_v20, %v3135_v20  ;;  %v103_v26 = vmul.f32 %v3140_v21, %v3140_v21  ;;  %v79_v29 = vld [vmem:[%s5331_s1 + $0x10] sm:$0xff] }
   0x6   :  { %v2431_v24 = vpack.c.bf16 %v78_v23, %v77_v22  ;;  %v26_v27 = vld [vmem:[%s5330_s0 + $0x68] sm:$0xff]  ;;  %v3158_v28 = vld [vmem:[%s5330_s0 + $0x60] sm:$0xff]  ;;  %v80_v30 = vld [vmem:[%s5331_s1 + $0x18] sm:$0xff] }
   0x7   :  { %v2435_v31 = vpack.c.bf16 %v80_v30, %v79_v29  ;;  %v106_v32 = vmul.f32 %v26_v27, %v26_v27  ;;  %v105_v33 = vmul.f32 %v3158_v28, %v3158_v28  ;;  %v28_v34 = vld [vmem:[%s5330_s0 + $0x78] sm:$0xff]  ;;  %v27_v35 = vld [vmem:[%s5330_s0 + $0x70] sm:$0xff]  ;;  %v81_v36 = vld [vmem:[%s5331_s1 + $0x20] sm:$0xff] }
   0x8   :  { %163 = vadd.xlane.f32.xlu1 %v96_v6  ;;  %159 = vadd.xlane.f32.xlu0 %v94_v7  ;;  %v82_v37 = vld [vmem:[%s5331_s1 + $0x28] sm:$0xff]  ;;  %v108_v39 = vmul.f32 %v28_v34, %v28_v34  ;;  %v107_v40 = vmul.f32 %v27_v35, %v27_v35  ;;  %v29_v42 = vld [vmem:[%s5330_s0 + $0x80] sm:$0xff]  ;;  %v83_v43 = vld [vmem:[%s5331_s1 + $0x30] sm:$0xff] }
   0x9   :  { %2432 = vmatprep.subr.bf16.mxu0 %v2431_v24  ;;  %2463 = vmatprep.subr.bf16.mxu1 %v2431_v24  ;;  %v2439_v38 = vpack.c.bf16 %v82_v37, %v81_v36  ;;  %v30_v41 = vld [vmem:[%s5330_s0 + $0x88] sm:$0xff]  ;;  %v84_v44 = vld [vmem:[%s5331_s1 + $0x38] sm:$0xff]  ;;  %v109_v46 = vmul.f32 %v29_v42, %v29_v42  ;;  %v31_v49 = vld [vmem:[%s5330_s0 + $0x90] sm:$0xff] }
   0xa   :  { %2434 = vmatpush3.bf16.msra.mxu0 %v2431_v24  ;;  %2471 = vmatpush3.bf16.msra.mxu1 %v2431_v24  ;;  %v110_v45 = vmul.f32 %v30_v41, %v30_v41  ;;  %v2443_v47 = vpack.c.bf16 %v84_v44, %v83_v43  ;;  %v32_v48 = vld [vmem:[%s5330_s0 + $0x98] sm:$0xff]  ;;  %v85_v50 = vld [vmem:[%s5331_s1 + $0x40] sm:$0xff]  ;;  %v86_v51 = vld [vmem:[%s5331_s1 + $0x48] sm:$0xff]  ;;  %v111_v53 = vmul.f32 %v31_v49, %v31_v49 }
   0xb   :  { %2436 = vmatprep.subr.bf16.mxu0 %v2435_v31  ;;  %2464 = vmatprep.subr.bf16.mxu1 %v2435_v31  ;;  %v112_v52 = vmul.f32 %v32_v48, %v32_v48  ;;  %v2447_v54 = vpack.c.bf16 %v86_v51, %v85_v50  ;;  %v34_v55 = vld [vmem:[%s5330_s0 + $0xa8] sm:$0xff]  ;;  %v33_v56 = vld [vmem:[%s5330_s0 + $0xa0] sm:$0xff]  ;;  %v87_v57 = vld [vmem:[%s5331_s1 + $0x50] sm:$0xff] }
   0xc   :  { %167 = vadd.xlane.f32.xlu1 %v98_v10  ;;  %165 = vadd.xlane.f32.xlu0 %v97_v11  ;;  %v88_v58 = vld [vmem:[%s5331_s1 + $0x58] sm:$0xff]  ;;  %v114_v59 = vmul.f32 %v34_v55, %v34_v55  ;;  %v113_v60 = vmul.f32 %v33_v56, %v33_v56  ;;  %v35_v63 = vld [vmem:[%s5330_s0 + $0xb0] sm:$0xff]  ;;  %v89_v3 = vld [vmem:[%s5331_s1 + $0x60] sm:$0xff] }
   0xd   :  { %v2451_v61 = vpack.c.bf16 %v88_v58, %v87_v57  ;;  %v36_v62 = vld [vmem:[%s5330_s0 + $0xb8] sm:$0xff]  ;;  %v90_v4 = vld [vmem:[%s5331_s1 + $0x68] sm:$0xff]  ;;  %v115_v7 = vmul.f32 %v35_v63, %v35_v63  ;;  %v41_v30 = vld [vmem:[%s5330_s0 + $0xe0] sm:$0xff] }
   0xe   :  { %2438 = vmatpush3.bf16.msra.mxu0 %v2435_v31  ;;  %2472 = vmatpush3.bf16.msra.mxu1 %v2435_v31  ;;  %v116_v6 = vmul.f32 %v36_v62, %v36_v62  ;;  %v2455_v10 = vpack.c.bf16 %v90_v4, %v89_v3  ;;  %v38_v11 = vld [vmem:[%s5330_s0 + $0xc8] sm:$0xff]  ;;  %v40_v24 = vld [vmem:[%s5330_s0 + $0xd8] sm:$0xff]  ;;  %v43_v34 = vld [vmem:[%s5330_s0 + $0xf0] sm:$0xff] }
   0xf   :  { %2440 = vmatprep.subr.bf16.mxu0 %v2439_v38  ;;  %2465 = vmatprep.subr.bf16.mxu1 %v2439_v38  ;;  %v42_v29 = vld [vmem:[%s5330_s0 + $0xe8] sm:$0xff]  ;;  %v123_v36 = vmul.f32 %v43_v34, %v43_v34  ;;  %v48_v41 = vld [vmem:[%s5330_s0 + $0x118] sm:$0xff]  ;;  %v47_v42 = vld [vmem:[%s5330_s0 + $0x110] sm:$0xff] }
  0x10   :  { %171 = vadd.xlane.f32.xlu1 %v100_v14  ;;  %169 = vadd.xlane.f32.xlu0 %v99_v15  ;;  %v37_v14 = vld [vmem:[%s5330_s0 + $0xc0] sm:$0xff]  ;;  %v91_v15 = vld [vmem:[%s5331_s1 + $0x70] sm:$0xff]  ;;  %v122_v31 = vmul.f32 %v42_v29, %v42_v29  ;;  %v46_v37 = vld [vmem:[%s5330_s0 + $0x108] sm:$0xff]  ;;  %v128_v43 = vmul.f32 %v48_v41, %v48_v41  ;;  %v127_v44 = vmul.f32 %v47_v42, %v47_v42 }
  0x11   :  { %v117_v22 = vmul.f32 %v37_v14, %v37_v14  ;;  %v52_v49 = vld [vmem:[%s5330_s0 + $0x138] sm:$0xff]  ;;  %v51_v50 = vld [vmem:[%s5330_s0 + $0x130] sm:$0xff]  ;;  %v58_v62 = vld [vmem:[%s5330_s0 + $0x168] sm:$0xff] }
  0x12   :  { %2442 = vmatpush3.bf16.msra.mxu0 %v2439_v38  ;;  %2473 = vmatpush3.bf16.msra.mxu1 %v2439_v38  ;;  %v45_v38 = vld [vmem:[%s5330_s0 + $0x100] sm:$0xff]  ;;  %v132_v51 = vmul.f32 %v52_v49, %v52_v49  ;;  %v55_v57 = vld [vmem:[%s5330_s0 + $0x150] sm:$0xff]  ;;  %v56_v58 = vld [vmem:[%s5330_s0 + $0x158] sm:$0xff]  ;;  %v138_v3 = vmul.f32 %v58_v62, %v58_v62 }
  0x13   :  { %2444 = vmatprep.subr.bf16.mxu0 %v2443_v47  ;;  %2466 = vmatprep.subr.bf16.mxu1 %v2443_v47  ;;  %v59_v4 = vld [vmem:[%s5330_s0 + $0x170] sm:$0xff]  ;;  %v62_v14 = vld [vmem:[%s5330_s0 + $0x188] sm:$0xff]  ;;  %v69_v34 = vld [vmem:[%s5330_s0 + $0x1c0] sm:$0xff] }
  0x14   :  { %175 = vadd.xlane.f32.xlu1 %v102_v18  ;;  %173 = vadd.xlane.f32.xlu0 %v101_v19  ;;  %v92_v18 = vld [vmem:[%s5331_s1 + $0x78] sm:$0xff]  ;;  %v118_v19 = vmul.f32 %v38_v11, %v38_v11  ;;  %v61_v11 = vld [vmem:[%s5330_s0 + $0x180] sm:$0xff] }
  0x15   :  { %v2459_v23 = vpack.c.bf16 %v92_v18, %v91_v15  ;;  %v141_v15 = vmul.f32 %v61_v11, %v61_v11  ;;  %v142_v18 = vmul.f32 %v62_v14, %v62_v14  ;;  %v73_v42 = vld [vmem:[%s5330_s0 + $0x1e0] sm:$0xff] }
  0x16   :  { %2446 = vmatpush3.bf16.msra.mxu0 %v2443_v47  ;;  %2474 = vmatpush3.bf16.msra.mxu1 %v2443_v47 }
  0x17   :  { %2448 = vmatprep.subr.bf16.mxu0 %v2447_v54  ;;  %2467 = vmatprep.subr.bf16.mxu1 %v2447_v54 }
  0x18   :  { %179 = vadd.xlane.f32.xlu1 %v104_v25  ;;  %177 = vadd.xlane.f32.xlu0 %v103_v26  ;;  %v39_v25 = vld [vmem:[%s5330_s0 + $0xd0] sm:$0xff]  ;;  %v120_v26 = vmul.f32 %v40_v24, %v40_v24 }
  0x19   :  { %v119_v27 = vmul.f32 %v39_v25, %v39_v25  ;;  %v65_v25 = vld [vmem:[%s5330_s0 + $0x1a0] sm:$0xff] }
  0x1a   :  { %2450 = vmatpush3.bf16.msra.mxu0 %v2447_v54  ;;  %2475 = vmatpush3.bf16.msra.mxu1 %v2447_v54  ;;  %v54_v54 = vld [vmem:[%s5330_s0 + $0x148] sm:$0xff] }
  0x1b   :  { %2452 = vmatprep.subr.bf16.mxu0 %v2451_v61  ;;  %2468 = vmatprep.subr.bf16.mxu1 %v2451_v61  ;;  %v134_v56 = vmul.f32 %v54_v54, %v54_v54 }
  0x1c   :  { %183 = vadd.xlane.f32.xlu1 %v106_v32  ;;  %181 = vadd.xlane.f32.xlu0 %v105_v33  ;;  %v121_v32 = vmul.f32 %v41_v30, %v41_v30  ;;  %v44_v33 = vld [vmem:[%s5330_s0 + $0xf8] sm:$0xff]  ;;  %v67_v30 = vld [vmem:[%s5330_s0 + $0x1b0] sm:$0xff] }
  0x1d   :  { %v124_v35 = vmul.f32 %v44_v33, %v44_v33 }
  0x1e   :  { %2454 = vmatpush3.bf16.msra.mxu0 %v2451_v61  ;;  %2476 = vmatpush3.bf16.msra.mxu1 %v2451_v61  ;;  %v57_v61 = vld [vmem:[%s5330_s0 + $0x160] sm:$0xff] }
  0x1f   :  { %2456 = vmatprep.subr.bf16.mxu0 %v2455_v10  ;;  %2469 = vmatprep.subr.bf16.mxu1 %v2455_v10  ;;  %v137_v63 = vmul.f32 %v57_v61, %v57_v61 }
  0x20   :  { %187 = vadd.xlane.f32.xlu1 %v108_v39  ;;  %185 = vadd.xlane.f32.xlu0 %v107_v40  ;;  %v126_v39 = vmul.f32 %v46_v37, %v46_v37  ;;  %v125_v40 = vmul.f32 %v45_v38, %v45_v38  ;;  %v71_v38 = vld [vmem:[%s5330_s0 + $0x1d0] sm:$0xff] }
  0x22   :  { %2458 = vmatpush3.bf16.msra.mxu0 %v2455_v10  ;;  %2477 = vmatpush3.bf16.msra.mxu1 %v2455_v10 }
  0x23   :  { %2460 = vmatprep.subr.bf16.mxu0 %v2459_v23  ;;  %2470 = vmatprep.subr.bf16.mxu1 %v2459_v23 }
  0x24   :  { %191 = vadd.xlane.f32.xlu1 %v110_v45  ;;  %189 = vadd.xlane.f32.xlu0 %v109_v46  ;;  %v50_v45 = vld [vmem:[%s5330_s0 + $0x128] sm:$0xff]  ;;  %v49_v46 = vld [vmem:[%s5330_s0 + $0x120] sm:$0xff] }
  0x25   :  { %v130_v47 = vmul.f32 %v50_v45, %v50_v45  ;;  %v129_v48 = vmul.f32 %v49_v46, %v49_v46  ;;  %v75_v46 = vld [vmem:[%s5330_s0 + $0x1f0] sm:$0xff] }
  0x26   :  { %2462 = vmatpush3.bf16.msra.mxu0 %v2459_v23  ;;  %2478 = vmatpush3.bf16.msra.mxu1 %v2459_v23 }
  0x28   :  { %195 = vadd.xlane.f32.xlu1 %v112_v52  ;;  %193 = vadd.xlane.f32.xlu0 %v111_v53  ;;  %v131_v52 = vmul.f32 %v51_v50, %v51_v50  ;;  %v53_v53 = vld [vmem:[%s5330_s0 + $0x140] sm:$0xff] }
  0x29   :  { %v133_v55 = vmul.f32 %v53_v53, %v53_v53 }
  0x2c   :  { %199 = vadd.xlane.f32.xlu1 %v114_v59  ;;  %197 = vadd.xlane.f32.xlu0 %v113_v60  ;;  %v135_v59 = vmul.f32 %v55_v57, %v55_v57  ;;  %v136_v60 = vmul.f32 %v56_v58, %v56_v58 }
  0x30   :  { %203 = vadd.xlane.f32.xlu1 %v116_v6  ;;  %201 = vadd.xlane.f32.xlu0 %v115_v7  ;;  %v60_v6 = vld [vmem:[%s5330_s0 + $0x178] sm:$0xff]  ;;  %v139_v7 = vmul.f32 %v59_v4, %v59_v4 }
  0x31   :  { %v140_v10 = vmul.f32 %v60_v6, %v60_v6 }
  0x34   :  { %207 = vadd.xlane.f32.xlu1 %v118_v19  ;;  %205 = vadd.xlane.f32.xlu0 %v117_v22  ;;  %v63_v19 = vld [vmem:[%s5330_s0 + $0x190] sm:$0xff]  ;;  %v64_v22 = vld [vmem:[%s5330_s0 + $0x198] sm:$0xff] }
  0x35   :  { %v143_v23 = vmul.f32 %v63_v19, %v63_v19  ;;  %v144_v24 = vmul.f32 %v64_v22, %v64_v22 }
  0x38   :  { %211 = vadd.xlane.f32.xlu1 %v120_v26  ;;  %209 = vadd.xlane.f32.xlu0 %v119_v27  ;;  %v66_v26 = vld [vmem:[%s5330_s0 + $0x1a8] sm:$0xff]  ;;  %v145_v27 = vmul.f32 %v65_v25, %v65_v25 }
  0x39   :  { %v146_v29 = vmul.f32 %v66_v26, %v66_v26 }
  0x3c   :  { %215 = vadd.xlane.f32.xlu1 %v122_v31  ;;  %213 = vadd.xlane.f32.xlu0 %v121_v32  ;;  %v68_v31 = vld [vmem:[%s5330_s0 + $0x1b8] sm:$0xff]  ;;  %v147_v32 = vmul.f32 %v67_v30, %v67_v30 }
  0x3d   :  { %v148_v33 = vmul.f32 %v68_v31, %v68_v31 }
  0x40   :  { %219 = vadd.xlane.f32.xlu1 %v124_v35  ;;  %217 = vadd.xlane.f32.xlu0 %v123_v36  ;;  %v70_v35 = vld [vmem:[%s5330_s0 + $0x1c8] sm:$0xff]  ;;  %v149_v36 = vmul.f32 %v69_v34, %v69_v34 }
  0x41   :  { %v150_v37 = vmul.f32 %v70_v35, %v70_v35 }
  0x44   :  { %223 = vadd.xlane.f32.xlu1 %v126_v39  ;;  %221 = vadd.xlane.f32.xlu0 %v125_v40  ;;  %v72_v39 = vld [vmem:[%s5330_s0 + $0x1d8] sm:$0xff]  ;;  %v151_v40 = vmul.f32 %v71_v38, %v71_v38 }
  0x45   :  { %v152_v41 = vmul.f32 %v72_v39, %v72_v39 }
  0x48   :  { %227 = vadd.xlane.f32.xlu1 %v128_v43  ;;  %225 = vadd.xlane.f32.xlu0 %v127_v44  ;;  %v74_v43 = vld [vmem:[%s5330_s0 + $0x1e8] sm:$0xff]  ;;  %v153_v44 = vmul.f32 %v73_v42, %v73_v42 }
  0x49   :  { %v154_v45 = vmul.f32 %v74_v43, %v74_v43 }
  0x4c   :  { %231 = vadd.xlane.f32.xlu1 %v130_v47  ;;  %229 = vadd.xlane.f32.xlu0 %v129_v48  ;;  %v76_v47 = vld [vmem:[%s5330_s0 + $0x1f8] sm:$0xff]  ;;  %v155_v48 = vmul.f32 %v75_v46, %v75_v46 }
  0x4d   :  { %v156_v49 = vmul.f32 %v76_v47, %v76_v47 }
  0x50   :  { %235 = vadd.xlane.f32.xlu1 %v132_v51  ;;  %233 = vadd.xlane.f32.xlu0 %v131_v52 }
  0x54   :  { %237 = vadd.xlane.f32.xlu0 %v133_v55  ;;  %239 = vadd.xlane.f32.xlu1 %v134_v56 }
  0x58   :  { %241 = vadd.xlane.f32.xlu0 %v135_v59  ;;  %243 = vadd.xlane.f32.xlu1 %v136_v60 }
  0x5c   :  { %245 = vadd.xlane.f32.xlu0 %v137_v63  ;;  %247 = vadd.xlane.f32.xlu1 %v138_v3 }
  0x60   :  { %249 = vadd.xlane.f32.xlu0 %v139_v7  ;;  %251 = vadd.xlane.f32.xlu1 %v140_v10 }
  0x64   :  { %253 = vadd.xlane.f32.xlu0 %v141_v15  ;;  %255 = vadd.xlane.f32.xlu1 %v142_v18 }
  0x68   :  { %257 = vadd.xlane.f32.xlu0 %v143_v23  ;;  %259 = vadd.xlane.f32.xlu1 %v144_v24 }
  0x6c   :  { %261 = vadd.xlane.f32.xlu0 %v145_v27  ;;  %263 = vadd.xlane.f32.xlu1 %v146_v29 }
  0x70   :  { %265 = vadd.xlane.f32.xlu0 %v147_v32  ;;  %267 = vadd.xlane.f32.xlu1 %v148_v33 }
  0x74   :  { %269 = vadd.xlane.f32.xlu0 %v149_v36  ;;  %271 = vadd.xlane.f32.xlu1 %v150_v37 }
  0x78   :  { %273 = vadd.xlane.f32.xlu0 %v151_v40  ;;  %275 = vadd.xlane.f32.xlu1 %v152_v41 }
  0x7c   :  { %277 = vadd.xlane.f32.xlu0 %v153_v44  ;;  %279 = vadd.xlane.f32.xlu1 %v154_v45 }
  0x80   :  { %281 = vadd.xlane.f32.xlu0 %v155_v48  ;;  %283 = vadd.xlane.f32.xlu1 %v156_v49 }
  0x91   :  { %v162_v50 = vpop.xlane.xlu1 %161  ;;  %v158_v51 = vpop.xlane.xlu0 %157 }
  0x92   :  { %2479 = vrsqrt.f32 %v162_v50  ;;  %vm287_vm0 = vcmp.eq.f32.partialorder %v158_v51, inf  ;;  %v290_v62 = vand.u32 2147483648, %v158_v51  ;;  %vm301_vm1 = vcmp.eq.f32.partialorder %v162_v50, inf }
  0x93   :  { %2481 = vrsqrt.f32 %v158_v51  ;;  %vm289_vm2 = vcmp.eq.f32.partialorder %v158_v51, 0.0  ;;  %v304_v15 = vand.u32 2147483648, %v162_v50  ;;  %vm303_vm3 = vcmp.eq.f32.partialorder %v162_v50, 0.0 }
  0x95   :  { %v164_v52 = vpop.xlane.xlu1 %163  ;;  %v160_v53 = vpop.xlane.xlu0 %159 }
  0x96   :  { %2483 = vrsqrt.f32 %v164_v52  ;;  %vm308_vm4 = vcmp.eq.f32.partialorder %v164_v52, inf  ;;  %vm294_vm5 = vcmp.eq.f32.partialorder %v160_v53, inf  ;;  %v297_v19 = vand.u32 2147483648, %v160_v53 }
  0x97   :  { %2485 = vrsqrt.f32 %v160_v53  ;;  %v311_v29 = vand.u32 2147483648, %v164_v52  ;;  %vm296_vm6 = vcmp.eq.f32.partialorder %v160_v53, 0.0  ;;  %vm310_vm7 = vcmp.eq.f32.partialorder %v164_v52, 0.0 }
  0x99   :  { %v3354_v54 = vpop.xlane.xlu1 %167  ;;  %v166_v55 = vpop.xlane.xlu0 %165 }
  0x9a   :  { %2487 = vrsqrt.f32 %v3354_v54  ;;  %vm315_vm8 = vcmp.eq.f32.partialorder %v166_v55, inf  ;;  %v318_v38 = vand.u32 2147483648, %v166_v55  ;;  %vm317_vm9 = vcmp.eq.f32.partialorder %v166_v55, 0.0 }
  0x9b   :  { %2489 = vrsqrt.f32 %v166_v55  ;;  %vm322_vm10 = vcmp.eq.f32.partialorder %v3354_v54, inf  ;;  %v325_v48 = vand.u32 2147483648, %v3354_v54  ;;  %vm324_vm11 = vcmp.eq.f32.partialorder %v3354_v54, 0.0 }
  0x9c   :  { %v2480_v56 = vpop.eup %2479 }
  0x9d   :  { %v2482_v57 = vpop.eup %2481  ;;  %v300_v58 = vmul.f32 %v2480_v56, %v162_v50  ;;  %v3357_v59 = vpop.xlane.xlu1 %171 }
  0x9e   :  { %v3359_v60 = vpop.xlane.xlu0 %169  ;;  %v286_v61 = vmul.f32 %v2482_v57, %v158_v51  ;;  %vm336_vm14 = vcmp.eq.f32.partialorder %v3357_v59, inf  ;;  %vm338_vm15 = vcmp.eq.f32.partialorder %v3357_v59, 0.0 }
  0x9f   :  { %2491 = vrsqrt.f32 %v3359_v60  ;;  %v302_v6 = vsel %vm301_vm1, %v162_v50, %v300_v58  ;;  %vm329_vm12 = vcmp.eq.f32.partialorder %v3359_v60, inf  ;;  %v332_v56 = vand.u32 2147483648, %v3359_v60 }
  0xa0   :  { %v2484_v63 = vpop.eup %2483  ;;  %v288_v3 = vsel %vm287_vm0, %v158_v51, %v286_v61  ;;  %2493 = vrsqrt.f32 %v3357_v59  ;;  %v305_v26 = vsel %vm303_vm3, %v304_v15, %v302_v6  ;;  %vm331_vm13 = vcmp.eq.f32.partialorder %v3359_v60, 0.0 }
  0xa1   :  { %v2486_v4 = vpop.eup %2485  ;;  %v307_v7 = vmul.f32 %v2484_v63, %v164_v52  ;;  %v3362_v10 = vpop.xlane.xlu1 %175  ;;  %v291_v14 = vsel %vm289_vm2, %v290_v62, %v288_v3  ;;  %v735_v35 = vmax.f32 %v305_v26, 1e-08 }
  0xa2   :  { %v3364_v11 = vpop.xlane.xlu0 %173  ;;  %v293_v18 = vmul.f32 %v2486_v4, %v160_v53  ;;  %v733_v25 = vmax.f32 %v291_v14, 1e-08  ;;  %vm350_vm0 = vcmp.eq.f32.partialorder %v3362_v10, inf  ;;  %vm352_vm2 = vcmp.eq.f32.partialorder %v3362_v10, 0.0 }
  0xa3   :  { %v309_v23 = vsel %vm308_vm4, %v164_v52, %v307_v7  ;;  %vm343_vm1 = vcmp.eq.f32.partialorder %v3364_v11, inf  ;;  %vm345_vm3 = vcmp.eq.f32.partialorder %v3364_v11, 0.0 }
  0xa4   :  { %v2488_v22 = vpop.eup %2487  ;;  %v295_v24 = vsel %vm294_vm5, %v160_v53, %v293_v18  ;;  %v312_v36 = vsel %vm310_vm7, %v311_v29, %v309_v23  ;;  %2495 = vrcp.f32 %v733_v25 }
  0xa5   :  { %v2490_v27 = vpop.eup %2489  ;;  %v3367_v30 = vpop.xlane.xlu1 %179  ;;  %v298_v33 = vsel %vm296_vm6, %v297_v19, %v295_v24  ;;  %v321_v34 = vmul.f32 %v2488_v22, %v3354_v54  ;;  %2497 = vrsqrt.f32 %v3362_v10  ;;  %v736_v43 = vmax.f32 %v312_v36, 1e-08 }
  0xa6   :  { %v3369_v31 = vpop.xlane.xlu0 %177  ;;  %v314_v32 = vmul.f32 %v2490_v27, %v166_v55  ;;  %v734_v42 = vmax.f32 %v298_v33, 1e-08  ;;  %2499 = vrsqrt.f32 %v3364_v11  ;;  %v353_v36 = vand.u32 2147483648, %v3362_v10 }
  0xa7   :  { %v323_v45 = vsel %vm322_vm10, %v3354_v54, %v321_v34  ;;  %2501 = vrcp.f32 %v735_v35  ;;  %vm357_vm4 = vcmp.eq.f32.partialorder %v3369_v31, inf  ;;  %vm364_vm5 = vcmp.eq.f32.partialorder %v3367_v30, inf }
  0xa8   :  { %v316_v37 = vsel %vm315_vm8, %v166_v55, %v314_v32  ;;  %2503 = vrcp.f32 %v734_v42  ;;  %v326_v52 = vsel %vm324_vm11, %v325_v48, %v323_v45  ;;  %vm359_vm6 = vcmp.eq.f32.partialorder %v3369_v31, 0.0 }
  0xa9   :  { %v2492_v39 = vpop.eup %2491  ;;  %v3373_v40 = vpop.xlane.xlu1 %183  ;;  %v319_v44 = vsel %vm317_vm9, %v318_v38, %v316_v37  ;;  %2505 = vrsqrt.f32 %v3369_v31  ;;  %v738_v58 = vmax.f32 %v326_v52, 1e-08  ;;  %v346_v37 = vand.u32 2147483648, %v3364_v11 }
  0xaa   :  { %v3375_v41 = vpop.xlane.xlu0 %181  ;;  %v328_v46 = vmul.f32 %v2492_v39, %v3359_v60  ;;  %v2494_v47 = vpop.eup %2493  ;;  %v737_v51 = vmax.f32 %v319_v44, 1e-08  ;;  %2507 = vrcp.f32 %v736_v43  ;;  %vm366_vm7 = vcmp.eq.f32.partialorder %v3367_v30, 0.0 }
  0xab   :  { %v335_v53 = vmul.f32 %v2494_v47, %v3357_v59  ;;  %vm378_vm8 = vcmp.eq.f32.partialorder %v3373_v40, inf  ;;  %vm380_vm9 = vcmp.eq.f32.partialorder %v3373_v40, 0.0  ;;  %vm371_vm10 = vcmp.eq.f32.partialorder %v3375_v41, inf }
  0xac   :  { %v330_v55 = vsel %vm329_vm12, %v3359_v60, %v328_v46  ;;  %2509 = vrcp.f32 %v737_v51  ;;  %v339_v60 = vand.u32 2147483648, %v3357_v59  ;;  %vm373_vm11 = vcmp.eq.f32.partialorder %v3375_v41, 0.0 }
  0xad   :  { %v3384_v49 = vpop.xlane.xlu1 %187  ;;  %v333_v62 = vsel %vm331_vm13, %v332_v56, %v330_v55  ;;  %v337_v3 = vsel %vm336_vm14, %v3357_v59, %v335_v53  ;;  %2511 = vrsqrt.f32 %v3367_v30 }
  0xae   :  { %v3386_v50 = vpop.xlane.xlu0 %185  ;;  %v2496_v61 = vpop.eup %2495  ;;  %2513 = vrsqrt.f32 %v3375_v41  ;;  %v739_v18 = vmax.f32 %v333_v62, 1e-08  ;;  %v340_v22 = vsel %vm338_vm15, %v339_v60, %v337_v3  ;;  %vm392_vm12 = vcmp.eq.f32.partialorder %v3384_v49, inf }
  0xaf   :  { %v2498_v63 = vpop.eup %2497  ;;  %v861_v4 = vmul.f32 %v2496_v61, %v3070_v1  ;;  %2515 = vrcp.f32 %v738_v58  ;;  %v740_v32 = vmax.f32 %v340_v22, 1e-08  ;;  %v381_v61 = vand.u32 2147483648, %v3373_v40 }
  0xb0   :  { %v2500_v6 = vpop.eup %2499  ;;  %v349_v1 = vmul.f32 %v2498_v63, %v3362_v10  ;;  %2517 = vrsqrt.f32 %v3373_v40  ;;  %v395_v22 = vand.u32 2147483648, %v3384_v49  ;;  %vm385_vm13 = vcmp.eq.f32.partialorder %v3386_v50, inf }
  0xb1   :  { %v3393_v54 = vpop.xlane.xlu1 %191  ;;  %v2502_v7 = vpop.eup %2501  ;;  %2335 = vmatprep.mubr.f32.mxu0 %v861_v4  ;;  %v342_v24 = vmul.f32 %v2500_v6, %v3364_v11  ;;  %2519 = vrcp.f32 %v739_v18  ;;  %vm387_vm14 = vcmp.eq.f32.partialorder %v3386_v50, 0.0  ;;  %vm394_vm15 = vcmp.eq.f32.partialorder %v3384_v49, 0.0 }
  0xb2   :  { %v3395_v57 = vpop.xlane.xlu0 %189  ;;  %v2504_v19 = vpop.eup %2503  ;;  %v863_v59 = vmul.f32 %v2502_v7, %v3065_v0  ;;  %2521 = vrsqrt.f32 %v3386_v50 }
  0xb3   :  { %v2506_v23 = vpop.eup %2505  ;;  %v862_v25 = vmul.f32 %v2504_v19, %v3084_v5  ;;  %v351_v5 = vsel %vm350_vm0, %v3362_v10, %v349_v1  ;;  %v344_v34 = vsel %vm343_vm1, %v3364_v11, %v342_v24  ;;  %2523 = vrcp.f32 %v740_v32 }
  0xb4   :  { %v2508_v26 = vpop.eup %2507  ;;  %v356_v35 = vmul.f32 %v2506_v23, %v3369_v31  ;;  %2525 = vrsqrt.f32 %v3384_v49  ;;  %v347_v44 = vsel %vm345_vm3, %v346_v37, %v344_v34  ;;  %v354_v45 = vsel %vm352_vm2, %v353_v36, %v351_v5 }
  0xb5   :  { %v3404_v14 = vpop.xlane.xlu1 %195  ;;  %2336 = vmatmul.mubr.f32.vlgmr.msra.gmra.mrb[0].mxu0 %v862_v25  ;;  %v864_v0 = vmul.f32 %v2508_v26, %v3075_v2  ;;  %v360_v10 = vand.u32 2147483648, %v3369_v31  ;;  %2527 = vrsqrt.f32 %v3393_v54  ;;  %v741_v48 = vmax.f32 %v347_v44, 1e-08 }
  0xb6   :  { %v3406_v15 = vpop.xlane.xlu0 %193  ;;  %2338 = vmatprep.mubr.f32.mxu0 %v863_v59  ;;  %v2510_v33 = vpop.eup %2509  ;;  %v358_v46 = vsel %vm357_vm4, %v3369_v31, %v356_v35  ;;  %2529 = vrsqrt.f32 %v3395_v57  ;;  %v742_v52 = vmax.f32 %v354_v45, 1e-08  ;;  %v367_v31 = vand.u32 2147483648, %v3367_v30 }
  0xb7   :  { %v865_v38 = vmul.f32 %v2510_v33, %v3098_v9  ;;  %v2512_v39 = vpop.eup %2511  ;;  %2531 = vrsqrt.f32 %v3404_v14  ;;  %v361_v58 = vsel %vm359_vm6, %v360_v10, %v358_v46  ;;  %v388_v1 = vand.u32 2147483648, %v3386_v50 }
  0xb8   :  { %v2514_v2 = vpop.eup %2513  ;;  %v363_v55 = vmul.f32 %v2512_v39, %v3367_v30  ;;  %2533 = vrcp.f32 %v741_v48  ;;  %v743_v3 = vmax.f32 %v361_v58, 1e-08  ;;  %vm406_vm0 = vcmp.eq.f32.partialorder %v3393_v54, inf }
  0xb9   :  { %v3413_v27 = vpop.xlane.xlu1 %199  ;;  %2339 = vmatmul.mubr.f32.gmra.mrb[2].mxu0 %v864_v0  ;;  %v2516_v9 = vpop.eup %2515  ;;  %v370_v56 = vmul.f32 %v2514_v2, %v3375_v41  ;;  %2535 = vrsqrt.f32 %v3406_v15  ;;  %vm399_vm1 = vcmp.eq.f32.partialorder %v3395_v57, inf  ;;  %vm401_vm2 = vcmp.eq.f32.partialorder %v3395_v57, 0.0 }
  0xba   :  { %v3415_v29 = vpop.xlane.xlu0 %197  ;;  %2341 = vmatprep.mubr.f32.mxu0 %v865_v38  ;;  %v866_v11 = vmul.f32 %v2516_v9, %v3093_v8  ;;  %v2518_v53 = vpop.eup %2517  ;;  %2537 = vrcp.f32 %v742_v52  ;;  %v365_v60 = vsel %vm364_vm5, %v3367_v30, %v363_v55  ;;  %v402_v37 = vand.u32 2147483648, %v3395_v57 }
  0xbb   :  { %v2520_v8 = vpop.eup %2519  ;;  %v377_v7 = vmul.f32 %v2518_v53, %v3373_v40  ;;  %v372_v18 = vsel %vm371_vm10, %v3375_v41, %v370_v56  ;;  %2539 = vrcp.f32 %v743_v3  ;;  %v368_v26 = vsel %vm366_vm7, %v367_v31, %v365_v60 }
  0xbc   :  { %v867_v62 = vmul.f32 %v2520_v8, %v3112_v13  ;;  %v2522_v6 = vpop.eup %2521  ;;  %v374_v13 = vand.u32 2147483648, %v3375_v41  ;;  %2541 = vrsqrt.f32 %v3413_v27  ;;  %v744_v30 = vmax.f32 %v368_v26, 1e-08 }
  0xbd   :  { %v3429_v42 = vpop.xlane.xlu1 %203  ;;  %2342 = vmatmul.mubr.f32.gmra.mrb[4].mxu0 %v866_v11  ;;  %v2524_v19 = vpop.eup %2523  ;;  %v384_v25 = vmul.f32 %v2522_v6, %v3386_v50  ;;  %2543 = vrsqrt.f32 %v3415_v29  ;;  %v379_v34 = vsel %vm378_vm8, %v3373_v40, %v377_v7  ;;  %vm420_vm3 = vcmp.eq.f32.partialorder %v3404_v14, inf }
  0xbe   :  { %v3431_v43 = vpop.xlane.xlu0 %201  ;;  %2344 = vmatprep.mubr.f32.mxu0 %v867_v62  ;;  %v2526_v23 = vpop.eup %2525  ;;  %v868_v24 = vmul.f32 %v2524_v19, %v3107_v12  ;;  %v375_v32 = vsel %vm373_vm11, %v374_v13, %v372_v18  ;;  %v409_v12 = vand.u32 2147483648, %v3393_v54  ;;  %2545 = vrsqrt.f32 %v3429_v42 }
  0xbf   :  { %v2528_v5 = vpop.eup %2527  ;;  %v391_v41 = vmul.f32 %v2526_v23, %v3384_v49  ;;  %2547 = vrsqrt.f32 %v3431_v43  ;;  %v745_v0 = vmax.f32 %v375_v32, 1e-08  ;;  %v423_v38 = vand.u32 2147483648, %v3404_v14 }
  0xc0   :  { %v2530_v35 = vpop.eup %2529  ;;  %2549 = vrcp.f32 %v744_v30  ;;  %v386_v2 = vsel %vm385_vm13, %v3386_v50, %v384_v25  ;;  %vm413_vm4 = vcmp.eq.f32.partialorder %v3406_v15, inf  ;;  %v416_v44 = vand.u32 2147483648, %v3406_v15 }
  0xc1   :  { %v3442_v47 = vpop.xlane.xlu1 %207  ;;  %2345 = vmatmul.mubr.f32.gmra.mrb[6].mxu0 %v868_v24  ;;  %v2532_v36 = vpop.eup %2531  ;;  %2551 = vrcp.f32 %v745_v0  ;;  %v382_v45 = vsel %vm380_vm9, %v381_v61, %v379_v34  ;;  %vm408_vm5 = vcmp.eq.f32.partialorder %v3393_v54, 0.0  ;;  %v398_v11 = vmul.f32 %v2530_v35, %v3395_v57 }
  0xc2   :  { %v3444_v51 = vpop.xlane.xlu0 %205  ;;  %v2534_v39 = vpop.eup %2533  ;;  %2553 = vrsqrt.f32 %v3442_v47  ;;  %v746_v52 = vmax.f32 %v382_v45, 1e-08  ;;  %v393_v40 = vsel %vm392_vm12, %v3384_v49, %v391_v41  ;;  %v405_v55 = vmul.f32 %v2528_v5, %v3393_v54 }
  0xc3   :  { %v2536_v10 = vpop.eup %2535  ;;  %v869_v48 = vmul.f32 %v2534_v39, %v3126_v17  ;;  %v437_v56 = vand.u32 2147483648, %v3413_v27  ;;  %2555 = vrsqrt.f32 %v3444_v51  ;;  %v419_v58 = vmul.f32 %v2532_v36, %v3404_v14 }
  0xc4   :  { %v2538_v53 = vpop.eup %2537  ;;  %vm434_vm6 = vcmp.eq.f32.partialorder %v3413_v27, inf  ;;  %2557 = vrcp.f32 %v746_v52  ;;  %v389_v17 = vsel %vm387_vm14, %v388_v1, %v386_v2  ;;  %vm415_vm7 = vcmp.eq.f32.partialorder %v3406_v15, 0.0 }
  0xc5   :  { %v3458_v63 = vpop.xlane.xlu1 %211  ;;  %2347 = vmatprep.mubr.f32.mxu0 %v869_v48  ;;  %v870_v8 = vmul.f32 %v2538_v53, %v3121_v16  ;;  %v2540_v31 = vpop.eup %2539  ;;  %vm427_vm8 = vcmp.eq.f32.partialorder %v3415_v29, inf  ;;  %v430_v61 = vand.u32 2147483648, %v3415_v29  ;;  %v747_v62 = vmax.f32 %v389_v17, 1e-08 }
  0xc6   :  { %v3460_v4 = vpop.xlane.xlu0 %209  ;;  %2559 = vrsqrt.f32 %v3458_v63  ;;  %v2542_v60 = vpop.eup %2541  ;;  %v400_v16 = vsel %vm399_vm1, %v3395_v57, %v398_v11  ;;  %v412_v50 = vmul.f32 %v2536_v10, %v3406_v15  ;;  %v871_v7 = vmul.f32 %v2540_v31, %v3140_v21 }
  0xc7   :  { %2348 = vmatmul.mubr.f32.gmra.mrb[8].mxu0 %v870_v8  ;;  %2561 = vrsqrt.f32 %v3460_v4  ;;  %v2544_v18 = vpop.eup %2543  ;;  %v407_v13 = vsel %vm406_vm0, %v3393_v54, %v405_v55  ;;  %vm448_vm9 = vcmp.eq.f32.partialorder %v3429_v42, inf  ;;  %v451_v19 = vand.u32 2147483648, %v3429_v42 }
  0xc8   :  { %2563 = vrcp.f32 %v747_v62  ;;  %v396_v23 = vsel %vm394_vm15, %v395_v22, %v393_v40  ;;  %v2546_v1 = vpop.eup %2545  ;;  %v3551_v21 = vsel %vm420_vm3, %v3404_v14, %v419_v58  ;;  %vm422_vm10 = vcmp.eq.f32.partialorder %v3404_v14, 0.0  ;;  %2350 = vmatprep.mubr.f32.mxu0 %v871_v7  ;;  %v2991_v58 = vld [vmem:[%s5330_s0 + $0x68] sm:$0xff] }
  0xc9   :  { %v3479_v59 = vpop.xlane.xlu1 %215  ;;  %vm441_vm11 = vcmp.eq.f32.partialorder %v3431_v43, inf  ;;  %v444_v24 = vand.u32 2147483648, %v3431_v43  ;;  %v748_v25 = vmax.f32 %v396_v23, 1e-08  ;;  %v2548_v26 = vpop.eup %2547  ;;  %v433_v49 = vmul.f32 %v2542_v60, %v3413_v27 }
  0xca   :  { %v3483_v33 = vpop.xlane.xlu0 %213  ;;  %2565 = vrsqrt.f32 %v3479_v59  ;;  %v465_v22 = vand.u32 2147483648, %v3442_v47  ;;  %v403_v32 = vsel %vm401_vm2, %v402_v37, %v400_v16  ;;  %v2550_v5 = vpop.eup %2549  ;;  %v414_v34 = vsel %vm413_vm4, %v3406_v15, %v412_v50 }
  0xcb   :  { %2567 = vrsqrt.f32 %v3483_v33  ;;  %v426_v30 = vmul.f32 %v2544_v18, %v3415_v29  ;;  %vm429_vm12 = vcmp.eq.f32.partialorder %v3415_v29, 0.0  ;;  %vm462_vm13 = vcmp.eq.f32.partialorder %v3442_v47, inf  ;;  %v2552_v41 = vpop.eup %2551 }
  0xcc   :  { %2569 = vrcp.f32 %v748_v25  ;;  %v749_v35 = vmax.f32 %v403_v32, 1e-08  ;;  %vm455_vm14 = vcmp.eq.f32.partialorder %v3444_v51, inf  ;;  %v458_v0 = vand.u32 2147483648, %v3444_v51  ;;  %v2554_v2 = vpop.eup %2553  ;;  %v2992_v25 = vld [vmem:[%s5330_s0 + $0x70] sm:$0xff] }
  0xcd   :  { %v3506_v9 = vpop.xlane.xlu1 %219  ;;  %v872_v57 = vmul.f32 %v2550_v5, %v3135_v20  ;;  %v410_v36 = vsel %vm408_vm5, %v409_v12, %v407_v13  ;;  %vm436_vm15 = vcmp.eq.f32.partialorder %v3413_v27, 0.0  ;;  %v447_v45 = vmul.f32 %v2546_v1, %v3429_v42  ;;  %v2556_v11 = vpop.eup %2555 }
  0xce   :  { %v3508_v46 = vpop.xlane.xlu0 %217  ;;  %2571 = vrsqrt.f32 %v3506_v9  ;;  %v873_v10 = vmul.f32 %v2552_v41, %v3158_v28  ;;  %v750_v20 = vmax.f32 %v410_v36, 1e-08  ;;  %v435_v48 = vsel %vm434_vm6, %v3413_v27, %v433_v49  ;;  %v2558_v52 = vpop.eup %2557 }
  0xcf   :  { %2573 = vrcp.f32 %v749_v35  ;;  %v440_v54 = vmul.f32 %v2548_v26, %v3431_v43  ;;  %vm476_vm0 = vcmp.eq.f32.partialorder %v3458_v63, inf  ;;  %v479_v12 = vand.u32 2147483648, %v3458_v63  ;;  %2351 = vmatmul.mubr.f32.gmra.mrb[10].mxu0 %v872_v57 }
  0xd0   :  { %2575 = vrsqrt.f32 %v3508_v46  ;;  %v428_v28 = vsel %vm427_vm8, %v3415_v29, %v426_v30  ;;  %vm469_vm1 = vcmp.eq.f32.partialorder %v3460_v4, inf  ;;  %2353 = vmatprep.mubr.f32.mxu0 %v873_v10  ;;  %v417_v53 = vsel %vm415_vm7, %v416_v44, %v414_v34  ;;  %v2560_v40 = vpop.eup %2559 }
  0xd1   :  { %v3529_v3 = vpop.xlane.xlu1 %223  ;;  %2577 = vrcp.f32 %v750_v20  ;;  %vm443_vm2 = vcmp.eq.f32.partialorder %v3431_v43, 0.0  ;;  %v461_v55 = vmul.f32 %v2554_v2, %v3442_v47  ;;  %v874_v8 = vmul.f32 %v2991_v58, %v2558_v52  ;;  %v2562_v31 = vpop.eup %2561 }
  0xd2   :  { %v3531_v6 = vpop.xlane.xlu0 %221  ;;  %2579 = vrsqrt.f32 %v3529_v3  ;;  %v751_v17 = vmax.f32 %v417_v53, 1e-08  ;;  %v3607_v62 = vsel %vm448_vm9, %v3429_v42, %v447_v45  ;;  %v454_v15 = vmul.f32 %v2556_v11, %v3444_v51  ;;  %v2564_v60 = vpop.eup %2563 }
  0xd3   :  { %v472_v44 = vand.u32 2147483648, %v3460_v4  ;;  %vm450_vm3 = vcmp.eq.f32.partialorder %v3429_v42, 0.0  ;;  %v442_v16 = vsel %vm441_vm11, %v3431_v43, %v440_v54  ;;  %vm490_vm4 = vcmp.eq.f32.partialorder %v3479_v59, inf  ;;  %2354 = vmatmul.mubr.f32.gmra.mrb[12].mxu0 %v874_v8  ;;  %v2996_v42 = vld [vmem:[%s5330_s0 + $0x90] sm:$0xff] }
  0xd4   :  { %v493_v50 = vand.u32 2147483648, %v3479_v59  ;;  %v424_v7 = vsel %vm422_vm10, %v423_v38, %v3551_v21  ;;  %v2566_v23 = vpop.eup %2565  ;;  %vm457_vm5 = vcmp.eq.f32.partialorder %v3444_v51, 0.0  ;;  %v475_v1 = vmul.f32 %v2560_v40, %v3458_v63 }
  0xd5   :  { %v3576_v37 = vpop.xlane.xlu1 %227  ;;  %v875_v26 = vmul.f32 %v2992_v25, %v2564_v60  ;;  %v752_v49 = vmax.f32 %v424_v7, 1e-08  ;;  %v2568_v32 = vpop.eup %2567  ;;  %v3636_v14 = vsel %vm462_vm13, %v3442_v47, %v461_v55  ;;  %v468_v38 = vmul.f32 %v2562_v31, %v3460_v4 }
  0xd6   :  { %v3578_v39 = vpop.xlane.xlu0 %225  ;;  %2581 = vrsqrt.f32 %v3576_v37  ;;  %v486_v21 = vand.u32 2147483648, %v3483_v33  ;;  %v431_v5 = vsel %vm429_vm12, %v430_v61, %v428_v28  ;;  %v2570_v34 = vpop.eup %2569  ;;  %v456_v30 = vsel %vm455_vm14, %v3444_v51, %v454_v15  ;;  %v2993_v61 = vld [vmem:[%s5330_s0 + $0x78] sm:$0xff]  ;;  %v2995_v15 = vld [vmem:[%s5330_s0 + $0x88] sm:$0xff] }
  0xd7   :  { %2583 = vrcp.f32 %v751_v17  ;;  %vm483_vm6 = vcmp.eq.f32.partialorder %v3483_v33, inf  ;;  %vm504_vm7 = vcmp.eq.f32.partialorder %v3506_v9, inf  ;;  %v507_v35 = vand.u32 2147483648, %v3506_v9  ;;  %2356 = vmatprep.mubr.f32.mxu0 %v875_v26 }
  0xd8   :  { %2585 = vrsqrt.f32 %v3578_v39  ;;  %v753_v41 = vmax.f32 %v431_v5, 1e-08  ;;  %v2572_v57 = vpop.eup %2571  ;;  %vm497_vm8 = vcmp.eq.f32.partialorder %v3508_v46, inf  ;;  %v500_v29 = vand.u32 2147483648, %v3508_v46 }
  0xd9   :  { %v3623_v18 = vpop.xlane.xlu1 %231  ;;  %2587 = vrcp.f32 %v752_v49  ;;  %v876_v36 = vmul.f32 %v2993_v61, %v2570_v34  ;;  %v438_v2 = vsel %vm436_vm15, %v437_v56, %v435_v48  ;;  %v2574_v45 = vpop.eup %2573  ;;  %v3663_v10 = vsel %vm476_vm0, %v3458_v63, %v475_v1  ;;  %v2994_v48 = vld [vmem:[%s5330_s0 + $0x80] sm:$0xff] }
  0xda   :  { %v3625_v13 = vpop.xlane.xlu0 %229  ;;  %2589 = vrsqrt.f32 %v3531_v6  ;;  %v489_v20 = vmul.f32 %v2566_v23, %v3479_v59  ;;  %v754_v11 = vmax.f32 %v438_v2, 1e-08  ;;  %v2576_v54 = vpop.eup %2575  ;;  %vm464_vm9 = vcmp.eq.f32.partialorder %v3442_v47, 0.0  ;;  %v2998_v47 = vld [vmem:[%s5330_s0 + $0xa0] sm:$0xff] }
  0xdb   :  { %2591 = vrcp.f32 %v753_v41  ;;  %vm478_vm10 = vcmp.eq.f32.partialorder %v3458_v63, 0.0  ;;  %v3671_v27 = vsel %vm469_vm1, %v3460_v4, %v468_v38  ;;  %vm471_vm11 = vcmp.eq.f32.partialorder %v3460_v4, 0.0  ;;  %2357 = vmatmul.mubr.f32.gmra.mrb[14].mxu0 %v876_v36  ;;  %v2578_v40 = vpop.eup %2577 }
  0xdc   :  { %v521_v56 = vand.u32 2147483648, %v3529_v3  ;;  %v877_v52 = vmul.f32 %v2994_v48, %v2574_v45  ;;  %2593 = vrsqrt.f32 %v3623_v18  ;;  %v482_v55 = vmul.f32 %v2568_v32, %v3483_v33  ;;  %v2580_v17 = vpop.eup %2579 }
  0xdd   :  { %v3679_v28 = vpop.xlane.xlu1 %235  ;;  %v514_v58 = vand.u32 2147483648, %v3531_v6  ;;  %2595 = vrcp.f32 %v754_v11  ;;  %v445_v8 = vsel %vm443_vm2, %v444_v24, %v442_v16  ;;  %vm485_vm12 = vcmp.eq.f32.partialorder %v3483_v33, 0.0 }
  0xde   :  { %v3681_v53 = vpop.xlane.xlu0 %233  ;;  %v503_v31 = vmul.f32 %v2572_v57, %v3506_v9  ;;  %vm518_vm13 = vcmp.eq.f32.partialorder %v3529_v3, inf  ;;  %2359 = vmatprep.mubr.f32.mxu0 %v877_v52  ;;  %v878_v60 = vmul.f32 %v2995_v15, %v2578_v40  ;;  %2597 = vrsqrt.f32 %v3625_v13  ;;  %v2999_v15 = vld [vmem:[%s5330_s0 + $0xa8] sm:$0xff] }
  0xdf   :  { %v755_v7 = vmax.f32 %v445_v8, 1e-08  ;;  %v3699_v43 = vsel %vm490_vm4, %v3479_v59, %v489_v20  ;;  %v496_v24 = vmul.f32 %v2576_v54, %v3508_v46  ;;  %2599 = vrsqrt.f32 %v3679_v28  ;;  %v2997_v20 = vld [vmem:[%s5330_s0 + $0x98] sm:$0xff] }
  0xe0   :  { %v2582_v23 = vpop.eup %2581  ;;  %v452_v16 = vsel %vm450_vm3, %v451_v19, %v3607_v62  ;;  %2360 = vmatmul.mubr.f32.gmra.mrb[16].mxu0 %v878_v60  ;;  %vm532_vm14 = vcmp.eq.f32.partialorder %v3576_v37, inf  ;;  %v535_v25 = vand.u32 2147483648, %v3576_v37  ;;  %v459_v49 = vsel %vm457_vm5, %v458_v0, %v456_v30 }
  0xe1   :  { %v2584_v1 = vpop.eup %2583  ;;  %2601 = vrcp.f32 %v755_v7  ;;  %v756_v26 = vmax.f32 %v452_v16, 1e-08  ;;  %vm525_vm15 = vcmp.eq.f32.partialorder %v3578_v39, inf  ;;  %v757_v62 = vmax.f32 %v459_v49, 1e-08  ;;  %v3731_v34 = vpop.xlane.xlu1 %239 }
  0xe2   :  { %v3714_v32 = vpop.xlane.xlu0 %237  ;;  %v2586_v38 = vpop.eup %2585  ;;  %v879_v19 = vmul.f32 %v2996_v42, %v2584_v1  ;;  %2603 = vrsqrt.f32 %v3681_v53  ;;  %vm492_vm0 = vcmp.eq.f32.partialorder %v3479_v59, 0.0  ;;  %v484_v51 = vsel %vm483_vm6, %v3483_v33, %v482_v55  ;;  %v3000_v42 = vld [vmem:[%s5330_s0 + $0xb0] sm:$0xff] }
  0xe3   :  { %v3728_v0 = vsel %vm504_vm7, %v3506_v9, %v503_v31  ;;  %v528_v5 = vand.u32 2147483648, %v3578_v39  ;;  %2605 = vrcp.f32 %v756_v26  ;;  %v2588_v30 = vpop.eup %2587  ;;  %v3736_v41 = vsel %vm497_vm8, %v3508_v46, %v496_v24 }
  0xe4   :  { %vm499_vm1 = vcmp.eq.f32.partialorder %v3508_v46, 0.0  ;;  %v517_v57 = vmul.f32 %v2580_v17, %v3529_v3  ;;  %2362 = vmatprep.mubr.f32.mxu0 %v879_v19  ;;  %v549_v61 = vand.u32 2147483648, %v3623_v18  ;;  %2607 = vrcp.f32 %v757_v62  ;;  %v2590_v36 = vpop.eup %2589 }
  0xe5   :  { %vm506_vm2 = vcmp.eq.f32.partialorder %v3506_v9, 0.0  ;;  %vm511_vm3 = vcmp.eq.f32.partialorder %v3531_v6, inf  ;;  %v531_v2 = vmul.f32 %v2582_v23, %v3576_v37  ;;  %v524_v45 = vmul.f32 %v2586_v38, %v3578_v39  ;;  %v2592_v48 = vpop.eup %2591 }
  0xe6   :  { %v880_v11 = vmul.f32 %v2997_v20, %v2588_v30  ;;  %2609 = vrsqrt.f32 %v3714_v32  ;;  %v3749_v54 = vpop.xlane.xlu0 %241  ;;  %v466_v52 = vsel %vm464_vm9, %v465_v22, %v3636_v14  ;;  %v473_v40 = vsel %vm471_vm11, %v472_v44, %v3671_v27  ;;  %v2594_v8 = vpop.eup %2593 }
  0xe7   :  { %2611 = vrsqrt.f32 %v3731_v34  ;;  %v480_v55 = vsel %vm478_vm10, %v479_v12, %v3663_v10  ;;  %vm520_vm4 = vcmp.eq.f32.partialorder %v3529_v3, 0.0  ;;  %v881_v22 = vmul.f32 %v2998_v47, %v2592_v48  ;;  %v2596_v4 = vpop.eup %2595 }
  0xe8   :  { %2363 = vmatmul.mubr.f32.gmra.mrb[18].mxu0 %v880_v11  ;;  %v758_v14 = vmax.f32 %v466_v52, 1e-08  ;;  %v759_v17 = vmax.f32 %v473_v40, 1e-08  ;;  %v760_v31 = vmax.f32 %v480_v55, 1e-08  ;;  %v3774_v44 = vsel %vm518_vm13, %v3529_v3, %v517_v57  ;;  %v2598_v10 = vpop.eup %2597 }
  0xe9   :  { %vm546_vm5 = vcmp.eq.f32.partialorder %v3623_v18, inf  ;;  %v542_v63 = vand.u32 2147483648, %v3625_v13  ;;  %v487_v12 = vsel %vm485_vm12, %v486_v21, %v484_v51  ;;  %2613 = vrsqrt.f32 %v3749_v54  ;;  %2365 = vmatprep.mubr.f32.mxu0 %v881_v22  ;;  %v2600_v23 = vpop.eup %2599  ;;  %v3795_v21 = vpop.xlane.xlu1 %243  ;;  %v3002_v11 = vld [vmem:[%s5330_s0 + $0xc0] sm:$0xff] }
  0xea   :  { %v510_v27 = vmul.f32 %v2590_v36, %v3531_v6  ;;  %v882_v60 = vmul.f32 %v2999_v15, %v2596_v4  ;;  %2615 = vrcp.f32 %v758_v14  ;;  %v761_v7 = vmax.f32 %v487_v12, 1e-08  ;;  %v3841_v40 = vpop.xlane.xlu0 %245  ;;  %v3003_v12 = vld [vmem:[%s5330_s0 + $0xc8] sm:$0xff] }
  0xeb   :  { %v3790_v24 = vsel %vm532_vm14, %v3576_v37, %v531_v2  ;;  %vm539_vm6 = vcmp.eq.f32.partialorder %v3625_v13, inf  ;;  %vm560_vm7 = vcmp.eq.f32.partialorder %v3679_v28, inf  ;;  %v563_v33 = vand.u32 2147483648, %v3679_v28  ;;  %v2602_v16 = vpop.eup %2601 }
  0xec   :  { %2617 = vrcp.f32 %v759_v17  ;;  %v3800_v1 = vsel %vm525_vm15, %v3578_v39, %v524_v45  ;;  %v545_v26 = vmul.f32 %v2594_v8, %v3623_v18  ;;  %2366 = vmatmul.mubr.f32.gmra.mrb[20].mxu0 %v882_v60  ;;  %vm553_vm8 = vcmp.eq.f32.partialorder %v3681_v53, inf  ;;  %v2604_v38 = vpop.eup %2603 }
  0xed   :  { %v556_v49 = vand.u32 2147483648, %v3681_v53  ;;  %2619 = vrcp.f32 %v760_v31  ;;  %vm527_vm9 = vcmp.eq.f32.partialorder %v3578_v39, 0.0  ;;  %v883_v19 = vmul.f32 %v3000_v42, %v2602_v16  ;;  %v2606_v30 = vpop.eup %2605  ;;  %v3861_v14 = vpop.xlane.xlu1 %247 }
  0xee   :  { %v570_v62 = vand.u32 2147483648, %v3714_v32  ;;  %2621 = vrcp.f32 %v761_v7  ;;  %v494_v51 = vsel %vm492_vm0, %v493_v50, %v3699_v43  ;;  %vm534_vm10 = vcmp.eq.f32.partialorder %v3576_v37, 0.0  ;;  %v2608_v59 = vpop.eup %2607  ;;  %v3001_v50 = vld [vmem:[%s5330_s0 + $0xb8] sm:$0xff]  ;;  %v3004_v7 = vld [vmem:[%s5330_s0 + $0xd0] sm:$0xff] }
  0xef   :  { %v538_v57 = vmul.f32 %v2598_v10, %v3625_v13  ;;  %vm541_vm11 = vcmp.eq.f32.partialorder %v3625_v13, 0.0  ;;  %vm567_vm12 = vcmp.eq.f32.partialorder %v3714_v32, inf  ;;  %2623 = vrsqrt.f32 %v3795_v21  ;;  %2368 = vmatprep.mubr.f32.mxu0 %v883_v19 }
  0xf0   :  { %v762_v36 = vmax.f32 %v494_v51, 1e-08  ;;  %v501_v2 = vsel %vm499_vm1, %v500_v29, %v3736_v41  ;;  %vm548_vm13 = vcmp.eq.f32.partialorder %v3623_v18, 0.0  ;;  %v884_v43 = vmul.f32 %v3001_v50, %v2606_v30  ;;  %v2610_v29 = vpop.eup %2609 }
  0xf1   :  { %v763_v45 = vmax.f32 %v501_v2, 1e-08  ;;  %v508_v20 = vsel %vm506_vm2, %v507_v35, %v3728_v0  ;;  %v512_v46 = vsel %vm511_vm3, %v3531_v6, %v510_v27  ;;  %v559_v41 = vmul.f32 %v2600_v23, %v3679_v28  ;;  %v2612_v55 = vpop.eup %2611 }
  0xf2   :  { %v885_v48 = vmul.f32 %v3002_v11, %v2608_v59  ;;  %2625 = vrcp.f32 %v762_v36  ;;  %v764_v52 = vmax.f32 %v508_v20, 1e-08  ;;  %vm555_vm14 = vcmp.eq.f32.partialorder %v3681_v53, 0.0  ;;  %2369 = vmatmul.mubr.f32.gmra.mrb[22].mxu0 %v884_v43 }
  0xf3   :  { %vm574_vm15 = vcmp.eq.f32.partialorder %v3731_v34, inf  ;;  %2627 = vrcp.f32 %v763_v45  ;;  %vm513_vm0 = vcmp.eq.f32.partialorder %v3531_v6, 0.0  ;;  %v522_v9 = vsel %vm520_vm4, %v521_v56, %v3774_v44  ;;  %v2614_v47 = vpop.eup %2613  ;;  %v3927_v45 = vpop.xlane.xlu1 %251 }
  0xf4   :  { %v547_v35 = vsel %vm546_vm5, %v3623_v18, %v545_v26  ;;  %vm562_vm1 = vcmp.eq.f32.partialorder %v3679_v28, 0.0  ;;  %2371 = vmatprep.mubr.f32.mxu0 %v885_v48  ;;  %2629 = vrcp.f32 %v764_v52  ;;  %v515_v0 = vsel %vm513_vm0, %v514_v58, %v512_v46  ;;  %v2616_v17 = vpop.eup %2615  ;;  %v3008_v52 = vld [vmem:[%s5330_s0 + $0xe8] sm:$0xff] }
  0xf5   :  { %v766_v8 = vmax.f32 %v522_v9, 1e-08  ;;  %v552_v22 = vmul.f32 %v2604_v38, %v3681_v53  ;;  %vm569_vm2 = vcmp.eq.f32.partialorder %v3714_v32, 0.0  ;;  %v577_v3 = vand.u32 2147483648, %v3731_v34 }
  0xf6   :  { %v765_v56 = vmax.f32 %v515_v0, 1e-08  ;;  %2631 = vrsqrt.f32 %v3841_v40  ;;  %v540_v31 = vsel %vm539_vm6, %v3625_v13, %v538_v57  ;;  %v3869_v6 = vsel %vm560_vm7, %v3679_v28, %v559_v41  ;;  %v2618_v4 = vpop.eup %2617 }
  0xf7   :  { %vm576_vm3 = vcmp.eq.f32.partialorder %v3731_v34, 0.0  ;;  %v584_v58 = vand.u32 2147483648, %v3749_v54  ;;  %2633 = vrcp.f32 %v766_v8  ;;  %v566_v44 = vmul.f32 %v2610_v29, %v3714_v32  ;;  %v2620_v15 = vpop.eup %2619  ;;  %v3007_v29 = vld [vmem:[%s5330_s0 + $0xf0] sm:$0xff] }
  0xf8   :  { %v886_v10 = vmul.f32 %v3003_v12, %v2616_v17  ;;  %vm581_vm4 = vcmp.eq.f32.partialorder %v3749_v54, inf  ;;  %v591_v27 = vand.u32 2147483648, %v3795_v21  ;;  %2635 = vrcp.f32 %v765_v56  ;;  %v2622_v26 = vpop.eup %2621 }
  0xf9   :  { %v573_v60 = vmul.f32 %v2612_v55, %v3731_v34  ;;  %v887_v23 = vmul.f32 %v3004_v7, %v2618_v4  ;;  %vm588_vm5 = vcmp.eq.f32.partialorder %v3795_v21, inf  ;;  %2637 = vrsqrt.f32 %v3861_v14  ;;  %v2624_v39 = vpop.eup %2623 }
  0xfa   :  { %v529_v16 = vsel %vm527_vm9, %v528_v5, %v3800_v1  ;;  %v554_v38 = vsel %vm553_vm8, %v3681_v53, %v552_v22  ;;  %2372 = vmatmul.mubr.f32.gmra.mrb[24].mxu0 %v886_v10  ;;  %v536_v19 = vsel %vm534_vm10, %v535_v25, %v3790_v24  ;;  %v543_v51 = vsel %vm541_vm11, %v542_v63, %v540_v31  ;;  %v3005_v5 = vld [vmem:[%s5330_s0 + $0xe0] sm:$0xff]  ;;  %v3006_v25 = vld [vmem:[%s5330_s0 + $0xd8] sm:$0xff]  ;;  %v3009_v22 = vld [vmem:[%s5330_s0 + $0x108] sm:$0xff]  ;;  %v3974_v10 = vpop.xlane.xlu1 %255 }
  0xfb   :  { %v767_v42 = vmax.f32 %v529_v16, 1e-08  ;;  %2374 = vmatprep.mubr.f32.mxu0 %v887_v23  ;;  %v889_v1 = vmul.f32 %v3005_v5, %v2622_v26  ;;  %vm583_vm6 = vcmp.eq.f32.partialorder %v3749_v54, 0.0  ;;  %v768_v30 = vmax.f32 %v536_v19, 1e-08  ;;  %v3012_v26 = vld [vmem:[%s5330_s0 + $0x110] sm:$0xff] }
  0xfc   :  { %v769_v57 = vmax.f32 %v543_v51, 1e-08  ;;  %v550_v37 = vsel %vm548_vm13, %v549_v61, %v547_v35  ;;  %v568_v13 = vsel %vm567_vm12, %v3714_v32, %v566_v44  ;;  %v888_v63 = vmul.f32 %v3006_v25, %v2620_v15  ;;  %v2626_v36 = vpop.eup %2625  ;;  %v3922_v61 = vpop.xlane.xlu0 %249 }
  0xfd   :  { %vm590_vm7 = vcmp.eq.f32.partialorder %v3795_v21, 0.0  ;;  %2639 = vrcp.f32 %v767_v42  ;;  %v770_v24 = vmax.f32 %v550_v37, 1e-08  ;;  %v575_v2 = vsel %vm574_vm15, %v3731_v34, %v573_v60  ;;  %v2628_v59 = vpop.eup %2627 }
  0xfe   :  { %v580_v18 = vmul.f32 %v2614_v47, %v3749_v54  ;;  %vm595_vm8 = vcmp.eq.f32.partialorder %v3841_v40, inf  ;;  %2641 = vrcp.f32 %v768_v30  ;;  %2375 = vmatmul.mubr.f32.gmra.mrb[26].mxu0 %v888_v63  ;;  %v598_v50 = vand.u32 2147483648, %v3841_v40  ;;  %v2630_v20 = vpop.eup %2629 }
  0xff   :  { %vm602_vm9 = vcmp.eq.f32.partialorder %v3861_v14, inf  ;;  %v605_v43 = vand.u32 2147483648, %v3861_v14  ;;  %2643 = vrcp.f32 %v769_v57  ;;  %2377 = vmatprep.mubr.f32.mxu0 %v889_v1  ;;  %v587_v46 = vmul.f32 %v2624_v39, %v3795_v21 }
 0x100   :  { %v891_v41 = vmul.f32 %v3007_v29, %v2628_v59  ;;  %2645 = vrcp.f32 %v770_v24  ;;  %v557_v11 = vsel %vm555_vm14, %v556_v49, %v554_v38  ;;  %v2632_v48 = vpop.eup %2631  ;;  %v890_v55 = vmul.f32 %v3008_v52, %v2626_v36  ;;  %v3965_v4 = vpop.xlane.xlu0 %253  ;;  %v3016_v29 = vld [vmem:[%s5330_s0 + $0x130] sm:$0xff]  ;;  %v3017_v52 = vld [vmem:[%s5330_s0 + $0x138] sm:$0xff] }
 0x101   :  { %2647 = vrsqrt.f32 %v3922_v61  ;;  %v771_v9 = vmax.f32 %v557_v11, 1e-08  ;;  %v564_v35 = vsel %vm562_vm1, %v563_v33, %v3869_v6  ;;  %v2634_v0 = vpop.eup %2633  ;;  %v594_v8 = vmul.f32 %v2632_v48, %v3841_v40  ;;  %v4019_v24 = vpop.xlane.xlu1 %259 }
 0x102   :  { %2649 = vrsqrt.f32 %v3927_v45  ;;  %v772_v53 = vmax.f32 %v564_v35, 1e-08  ;;  %v571_v49 = vsel %vm569_vm2, %v570_v62, %v568_v13  ;;  %v2636_v47 = vpop.eup %2635  ;;  %2378 = vmatmul.mubr.f32.gmra.mrb[28].mxu0 %v890_v55  ;;  %v894_v56 = vmul.f32 %v3009_v22, %v2634_v0  ;;  %v3010_v62 = vld [vmem:[%s5330_s0 + $0x100] sm:$0xff] }
 0x103   :  { %2651 = vrcp.f32 %v771_v9  ;;  %v773_v28 = vmax.f32 %v571_v49, 1e-08  ;;  %v578_v33 = vsel %vm576_vm3, %v577_v3, %v575_v2  ;;  %v2638_v17 = vpop.eup %2637  ;;  %v582_v32 = vsel %vm581_vm4, %v3749_v54, %v580_v18  ;;  %2380 = vmatprep.mubr.f32.mxu0 %v891_v41  ;;  %v3011_v3 = vld [vmem:[%s5330_s0 + $0xf8] sm:$0xff] }
 0x104   :  { %v893_v31 = vmul.f32 %v3010_v62, %v2636_v47  ;;  %2653 = vrcp.f32 %v772_v53  ;;  %v774_v6 = vmax.f32 %v578_v33, 1e-08  ;;  %v589_v34 = vsel %vm588_vm5, %v3795_v21, %v587_v46  ;;  %v3013_v54 = vld [vmem:[%s5330_s0 + $0x118] sm:$0xff]  ;;  %v4009_v30 = vpop.xlane.xlu0 %257 }
 0x105   :  { %v892_v44 = vmul.f32 %v3011_v3, %v2630_v20  ;;  %v601_v12 = vmul.f32 %v2638_v17, %v3861_v14  ;;  %2655 = vrcp.f32 %v773_v28  ;;  %v596_v15 = vsel %vm595_vm8, %v3841_v40, %v594_v8  ;;  %v4046_v35 = vpop.xlane.xlu1 %263  ;;  %v3018_v8 = vld [vmem:[%s5330_s0 + $0x140] sm:$0xff] }
 0x106   :  { %2383 = vmatprep.mubr.f32.mxu1 %v893_v31  ;;  %vm597_vm10 = vcmp.eq.f32.partialorder %v3841_v40, 0.0  ;;  %vm604_vm11 = vcmp.eq.f32.partialorder %v3861_v14, 0.0  ;;  %2657 = vrcp.f32 %v774_v6  ;;  %vm609_vm12 = vcmp.eq.f32.partialorder %v3922_v61, inf  ;;  %v3015_v40 = vld [vmem:[%s5330_s0 + $0x128] sm:$0xff] }
 0x107   :  { %v2640_v60 = vpop.eup %2639  ;;  %2381 = vmatmul.mubr.f32.gmra.mrb[30].mxu0 %v892_v44  ;;  %2384 = vmatmul.mubr.f32.vlgmr.msra.gmra.mrb[0].mxu1 %v894_v56  ;;  %v603_v7 = vsel %vm602_vm9, %v3861_v14, %v601_v12  ;;  %2659 = vrsqrt.f32 %v3965_v4  ;;  %v585_v23 = vsel %vm583_vm6, %v584_v58, %v582_v32  ;;  %v592_v19 = vsel %vm590_vm7, %v591_v27, %v589_v34  ;;  %v3014_v27 = vld [vmem:[%s5330_s0 + $0x120] sm:$0xff] }
 0x108   :  { %v2642_v16 = vpop.eup %2641  ;;  %v895_v38 = vmul.f32 %v3012_v26, %v2640_v60  ;;  %2661 = vrsqrt.f32 %v3974_v10  ;;  %v775_v42 = vmax.f32 %v585_v23, 1e-08  ;;  %v776_v39 = vmax.f32 %v592_v19, 1e-08  ;;  %v3020_v60 = vld [vmem:[%s5330_s0 + $0x150] sm:$0xff] }
 0x109   :  { %v2644_v51 = vpop.eup %2643  ;;  %v896_v58 = vmul.f32 %v3013_v54, %v2642_v16  ;;  %v599_v5 = vsel %vm597_vm10, %v598_v50, %v596_v15  ;;  %v606_v1 = vsel %vm604_vm11, %v605_v43, %v603_v7  ;;  %vm611_vm13 = vcmp.eq.f32.partialorder %v3922_v61, 0.0  ;;  %v4027_v43 = vpop.xlane.xlu0 %261 }
 0x10a   :  { %v2646_v21 = vpop.eup %2645  ;;  %2386 = vmatprep.mubr.f32.mxu1 %v895_v38  ;;  %v897_v57 = vmul.f32 %v3014_v27, %v2644_v51  ;;  %2663 = vrcp.f32 %v775_v42  ;;  %v777_v37 = vmax.f32 %v599_v5, 1e-08  ;;  %v778_v13 = vmax.f32 %v606_v1, 1e-08  ;;  %v4067_v6 = vpop.xlane.xlu1 %267 }
 0x10b   :  { %v2648_v25 = vpop.eup %2647  ;;  %2387 = vmatmul.mubr.f32.gmra.mrb[2].mxu1 %v896_v58  ;;  %v898_v14 = vmul.f32 %v3015_v40, %v2646_v21  ;;  %v612_v63 = vand.u32 2147483648, %v3922_v61  ;;  %2665 = vrcp.f32 %v776_v39  ;;  %vm616_vm14 = vcmp.eq.f32.partialorder %v3927_v45, inf }
 0x10c   :  { %v2650_v36 = vpop.eup %2649  ;;  %2389 = vmatprep.mubr.f32.mxu1 %v897_v57  ;;  %v608_v2 = vmul.f32 %v2648_v25, %v3922_v61  ;;  %v619_v18 = vand.u32 2147483648, %v3927_v45  ;;  %2667 = vrcp.f32 %v777_v37  ;;  %vm618_vm15 = vcmp.eq.f32.partialorder %v3927_v45, 0.0 }
 0x10d   :  { %v2652_v59 = vpop.eup %2651  ;;  %v615_v50 = vmul.f32 %v2650_v36, %v3927_v45  ;;  %vm623_vm0 = vcmp.eq.f32.partialorder %v3965_v4, inf  ;;  %2669 = vrcp.f32 %v778_v13  ;;  %vm625_vm1 = vcmp.eq.f32.partialorder %v3965_v4, 0.0  ;;  %v4057_v28 = vpop.xlane.xlu0 %265 }
 0x10e   :  { %v2654_v20 = vpop.eup %2653  ;;  %v610_v46 = vsel %vm609_vm12, %v3922_v61, %v608_v2  ;;  %v899_v41 = vmul.f32 %v3016_v29, %v2652_v59  ;;  %2671 = vrsqrt.f32 %v4009_v30  ;;  %v626_v61 = vand.u32 2147483648, %v3965_v4  ;;  %v4100_v21 = vpop.xlane.xlu1 %271  ;;  %v3024_v29 = vld [vmem:[%s5330_s0 + $0x170] sm:$0xff] }
 0x10f   :  { %v2656_v11 = vpop.eup %2655  ;;  %2390 = vmatmul.mubr.f32.gmra.mrb[4].mxu1 %v898_v14  ;;  %v617_v48 = vsel %vm616_vm14, %v3927_v45, %v615_v50  ;;  %v900_v55 = vmul.f32 %v3017_v52, %v2654_v20  ;;  %v613_v9 = vsel %vm611_vm13, %v612_v63, %v610_v46  ;;  %2673 = vrsqrt.f32 %v4019_v24  ;;  %v3019_v45 = vld [vmem:[%s5330_s0 + $0x148] sm:$0xff] }
 0x110   :  { %v2658_v0 = vpop.eup %2657  ;;  %2392 = vmatprep.mubr.f32.mxu1 %v899_v41  ;;  %v901_v53 = vmul.f32 %v3018_v8, %v2656_v11  ;;  %v779_v49 = vmax.f32 %v613_v9, 1e-08  ;;  %v620_v47 = vsel %vm618_vm15, %v619_v18, %v617_v48  ;;  %2675 = vrsqrt.f32 %v4027_v43  ;;  %v3023_v14 = vld [vmem:[%s5330_s0 + $0x168] sm:$0xff] }
 0x111   :  { %v2660_v22 = vpop.eup %2659  ;;  %vm630_vm2 = vcmp.eq.f32.partialorder %v3974_v10, inf  ;;  %vm632_vm3 = vcmp.eq.f32.partialorder %v3974_v10, 0.0  ;;  %v780_v56 = vmax.f32 %v620_v47, 1e-08  ;;  %v633_v32 = vand.u32 2147483648, %v3974_v10  ;;  %v4084_v16 = vpop.xlane.xlu0 %269 }
 0x112   :  { %v2662_v33 = vpop.eup %2661  ;;  %v622_v17 = vmul.f32 %v2660_v22, %v3965_v4  ;;  %2677 = vrcp.f32 %v779_v49  ;;  %vm637_vm4 = vcmp.eq.f32.partialorder %v4009_v30, inf  ;;  %v902_v62 = vmul.f32 %v3019_v45, %v2658_v0 }
 0x113   :  { %2393 = vmatmul.mubr.f32.gmra.mrb[6].mxu1 %v900_v55  ;;  %v629_v31 = vmul.f32 %v2662_v33, %v3974_v10  ;;  %2679 = vrcp.f32 %v780_v56  ;;  %vm639_vm5 = vcmp.eq.f32.partialorder %v4009_v30, 0.0  ;;  %v640_v44 = vand.u32 2147483648, %v4009_v30  ;;  %v4135_v55 = vpop.xlane.xlu1 %275 }
 0x114   :  { %v2664_v34 = vpop.eup %2663  ;;  %2395 = vmatprep.mubr.f32.mxu1 %v901_v53  ;;  %v624_v3 = vsel %vm623_vm0, %v3965_v4, %v622_v17  ;;  %vm644_vm6 = vcmp.eq.f32.partialorder %v4019_v24, inf  ;;  %2681 = vrsqrt.f32 %v4046_v35  ;;  %vm646_vm7 = vcmp.eq.f32.partialorder %v4019_v24, 0.0  ;;  %v3021_v4 = vld [vmem:[%s5330_s0 + $0x158] sm:$0xff] }
 0x115   :  { %v2666_v12 = vpop.eup %2665  ;;  %v631_v15 = vsel %vm630_vm2, %v3974_v10, %v629_v31  ;;  %v903_v7 = vmul.f32 %v3020_v60, %v2664_v34  ;;  %v627_v23 = vsel %vm625_vm1, %v626_v61, %v624_v3  ;;  %2683 = vrsqrt.f32 %v4057_v28  ;;  %v3022_v10 = vld [vmem:[%s5330_s0 + $0x160] sm:$0xff]  ;;  %v4105_v37 = vpop.xlane.xlu0 %273  ;;  %v3025_v53 = vld [vmem:[%s5330_s0 + $0x178] sm:$0xff] }
 0x116   :  { %v2668_v26 = vpop.eup %2667  ;;  %v781_v38 = vmax.f32 %v627_v23, 1e-08  ;;  %v634_v42 = vsel %vm632_vm3, %v633_v32, %v631_v15  ;;  %2685 = vrsqrt.f32 %v4067_v6  ;;  %v904_v51 = vmul.f32 %v3021_v4, %v2666_v12 }
 0x117   :  { %v2670_v19 = vpop.eup %2669  ;;  %2396 = vmatmul.mubr.f32.gmra.mrb[8].mxu1 %v902_v62  ;;  %v782_v54 = vmax.f32 %v634_v42, 1e-08  ;;  %v647_v58 = vand.u32 2147483648, %v4019_v24  ;;  %vm651_vm8 = vcmp.eq.f32.partialorder %v4027_v43, inf  ;;  %v905_v5 = vmul.f32 %v3022_v10, %v2668_v26  ;;  %v4157_v62 = vpop.xlane.xlu1 %279 }
 0x118   :  { %v2672_v39 = vpop.eup %2671  ;;  %2398 = vmatprep.mubr.f32.mxu1 %v903_v7  ;;  %2687 = vrcp.f32 %v781_v38  ;;  %vm653_vm9 = vcmp.eq.f32.partialorder %v4027_v43, 0.0  ;;  %v654_v1 = vand.u32 2147483648, %v4027_v43  ;;  %vm658_vm10 = vcmp.eq.f32.partialorder %v4046_v35, inf }
 0x119   :  { %v2674_v27 = vpop.eup %2673  ;;  %2689 = vrcp.f32 %v782_v54  ;;  %v636_v57 = vmul.f32 %v2672_v39, %v4009_v30  ;;  %vm660_vm11 = vcmp.eq.f32.partialorder %v4046_v35, 0.0  ;;  %v661_v40 = vand.u32 2147483648, %v4046_v35  ;;  %v4145_v47 = vpop.xlane.xlu0 %277 }
 0x11a   :  { %v2676_v13 = vpop.eup %2675  ;;  %v643_v25 = vmul.f32 %v2674_v27, %v4019_v24  ;;  %vm665_vm12 = vcmp.eq.f32.partialorder %v4057_v28, inf  ;;  %2691 = vrsqrt.f32 %v4084_v16  ;;  %v906_v63 = vmul.f32 %v3023_v14, %v2670_v19  ;;  %v3028_v14 = vld [vmem:[%s5330_s0 + $0x190] sm:$0xff] }
 0x11b   :  { %2399 = vmatmul.mubr.f32.gmra.mrb[10].mxu1 %v904_v51  ;;  %v638_v36 = vsel %vm637_vm4, %v4009_v30, %v636_v57  ;;  %v650_v2 = vmul.f32 %v2676_v13, %v4027_v43  ;;  %vm667_vm13 = vcmp.eq.f32.partialorder %v4057_v28, 0.0  ;;  %2693 = vrsqrt.f32 %v4100_v21 }
 0x11c   :  { %v2678_v18 = vpop.eup %2677  ;;  %2401 = vmatprep.mubr.f32.mxu1 %v905_v5  ;;  %v645_v59 = vsel %vm644_vm6, %v4019_v24, %v643_v25  ;;  %v668_v50 = vand.u32 2147483648, %v4057_v28  ;;  %v641_v20 = vsel %vm639_vm5, %v640_v44, %v638_v36  ;;  %2695 = vrsqrt.f32 %v4105_v37  ;;  %v3026_v44 = vld [vmem:[%s5330_s0 + $0x180] sm:$0xff] }
 0x11d   :  { %v2680_v46 = vpop.eup %2679  ;;  %v907_v41 = vmul.f32 %v3024_v29, %v2678_v18  ;;  %v652_v11 = vsel %vm651_vm8, %v4027_v43, %v650_v2  ;;  %v783_v48 = vmax.f32 %v641_v20, 1e-08  ;;  %v648_v52 = vsel %vm646_vm7, %v647_v58, %v645_v59  ;;  %v4181_v19 = vpop.xlane.xlu0 %281  ;;  %v3029_v18 = vld [vmem:[%s5330_s0 + $0x198] sm:$0xff] }
 0x11e   :  { %v2682_v30 = vpop.eup %2681  ;;  %vm672_vm14 = vcmp.eq.f32.partialorder %v4067_v6, inf  ;;  %vm674_vm15 = vcmp.eq.f32.partialorder %v4067_v6, 0.0  ;;  %v675_v9 = vand.u32 2147483648, %v4067_v6  ;;  %v784_v0 = vmax.f32 %v648_v52, 1e-08 }
 0x11f   :  { %v2684_v8 = vpop.eup %2683  ;;  %2402 = vmatmul.mubr.f32.gmra.mrb[12].mxu1 %v906_v63  ;;  %v908_v49 = vmul.f32 %v3025_v53, %v2680_v46  ;;  %v657_v24 = vmul.f32 %v2682_v30, %v4046_v35  ;;  %vm679_vm0 = vcmp.eq.f32.partialorder %v4084_v16, inf  ;;  %2697 = vrcp.f32 %v783_v48 }
 0x120   :  { %v2686_v22 = vpop.eup %2685  ;;  %2404 = vmatprep.mubr.f32.mxu1 %v907_v41  ;;  %v664_v61 = vmul.f32 %v2684_v8, %v4057_v28  ;;  %vm681_vm1 = vcmp.eq.f32.partialorder %v4084_v16, 0.0  ;;  %v682_v56 = vand.u32 2147483648, %v4084_v16  ;;  %2699 = vrcp.f32 %v784_v0  ;;  %v3030_v0 = vld [vmem:[%s5330_s0 + $0x1a0] sm:$0xff] }
 0x121   :  { %v655_v33 = vsel %vm653_vm9, %v654_v1, %v652_v11  ;;  %v659_v17 = vsel %vm658_vm10, %v4046_v35, %v657_v24  ;;  %v671_v32 = vmul.f32 %v2686_v22, %v4067_v6  ;;  %2701 = vrsqrt.f32 %v4135_v55  ;;  %v3027_v35 = vld [vmem:[%s5330_s0 + $0x188] sm:$0xff] }
 0x122   :  { %v785_v45 = vmax.f32 %v655_v33, 1e-08  ;;  %v2688_v31 = vpop.eup %2687  ;;  %v666_v34 = vsel %vm665_vm12, %v4057_v28, %v664_v61  ;;  %vm686_vm2 = vcmp.eq.f32.partialorder %v4100_v21, inf  ;;  %v662_v43 = vsel %vm660_vm11, %v661_v40, %v659_v17  ;;  %v4201_v28 = vpop.xlane.xlu1 %283  ;;  %v3031_v61 = vld [vmem:[%s5330_s0 + $0x1a8] sm:$0xff] }
 0x123   :  { %2703 = vrsqrt.f32 %v4145_v47  ;;  %v2690_v3 = vpop.eup %2689  ;;  %2405 = vmatmul.mubr.f32.gmra.mrb[14].mxu1 %v908_v49  ;;  %v909_v12 = vmul.f32 %v3026_v44, %v2688_v31  ;;  %v673_v15 = vsel %vm672_vm14, %v4067_v6, %v671_v32  ;;  %v786_v60 = vmax.f32 %v662_v43, 1e-08 }
 0x124   :  { %2705 = vrcp.f32 %v785_v45  ;;  %v2692_v7 = vpop.eup %2691  ;;  %v910_v23 = vmul.f32 %v3027_v35, %v2690_v3  ;;  %vm688_vm3 = vcmp.eq.f32.partialorder %v4100_v21, 0.0  ;;  %v689_v26 = vand.u32 2147483648, %v4100_v21 }
 0x125   :  { %2707 = vrsqrt.f32 %v4157_v62  ;;  %v2694_v38 = vpop.eup %2693  ;;  %2407 = vmatprep.mubr.f32.mxu1 %v909_v12  ;;  %v678_v42 = vmul.f32 %v2692_v7, %v4084_v16  ;;  %vm693_vm4 = vcmp.eq.f32.partialorder %v4105_v37, inf  ;;  %vm695_vm5 = vcmp.eq.f32.partialorder %v4105_v37, 0.0  ;;  %v3032_v12 = vld [vmem:[%s5330_s0 + $0x1b0] sm:$0xff] }
 0x126   :  { %2709 = vrcp.f32 %v786_v60  ;;  %v2696_v4 = vpop.eup %2695  ;;  %v685_v51 = vmul.f32 %v2694_v38, %v4100_v21  ;;  %v696_v54 = vand.u32 2147483648, %v4105_v37  ;;  %v669_v58 = vsel %vm667_vm13, %v668_v50, %v666_v34 }
 0x127   :  { %v676_v39 = vsel %vm674_vm15, %v675_v9, %v673_v15  ;;  %2408 = vmatmul.mubr.f32.gmra.mrb[16].mxu1 %v910_v23  ;;  %v692_v10 = vmul.f32 %v2696_v4, %v4105_v37  ;;  %vm700_vm6 = vcmp.eq.f32.partialorder %v4135_v55, inf  ;;  %v787_v5 = vmax.f32 %v669_v58, 1e-08  ;;  %v3034_v58 = vld [vmem:[%s5330_s0 + $0x1c0] sm:$0xff] }
 0x128   :  { %v788_v1 = vmax.f32 %v676_v39, 1e-08  ;;  %v680_v27 = vsel %vm679_vm0, %v4084_v16, %v678_v42  ;;  %v687_v57 = vsel %vm686_vm2, %v4100_v21, %v685_v51  ;;  %vm702_vm7 = vcmp.eq.f32.partialorder %v4135_v55, 0.0 }
 0x129   :  { %2711 = vrsqrt.f32 %v4181_v19  ;;  %v2698_v6 = vpop.eup %2697  ;;  %v694_v13 = vsel %vm693_vm4, %v4105_v37, %v692_v10  ;;  %v703_v25 = vand.u32 2147483648, %v4135_v55  ;;  %vm707_vm8 = vcmp.eq.f32.partialorder %v4145_v47, inf }
 0x12a   :  { %2713 = vrcp.f32 %v787_v5  ;;  %v2700_v40 = vpop.eup %2699  ;;  %v911_v63 = vmul.f32 %v3028_v14, %v2698_v6  ;;  %vm709_vm9 = vcmp.eq.f32.partialorder %v4145_v47, 0.0  ;;  %v710_v36 = vand.u32 2147483648, %v4145_v47  ;;  %v3038_v14 = vld [vmem:[%s5330_s0 + $0x1e0] sm:$0xff] }
 0x12b   :  { %2715 = vrcp.f32 %v788_v1  ;;  %v2702_v2 = vpop.eup %2701  ;;  %v912_v59 = vmul.f32 %v3029_v18, %v2700_v40  ;;  %v683_v50 = vsel %vm681_vm1, %v682_v56, %v680_v27  ;;  %v690_v20 = vsel %vm688_vm3, %v689_v26, %v687_v57  ;;  %v3035_v1 = vld [vmem:[%s5330_s0 + $0x1c8] sm:$0xff]  ;;  %v3036_v57 = vld [vmem:[%s5330_s0 + $0x1d0] sm:$0xff] }
 0x12c   :  { %2717 = vrsqrt.f32 %v4201_v28  ;;  %2410 = vmatprep.mubr.f32.mxu1 %v911_v63  ;;  %v699_v29 = vmul.f32 %v2702_v2, %v4135_v55  ;;  %v789_v41 = vmax.f32 %v683_v50, 1e-08  ;;  %v790_v11 = vmax.f32 %v690_v20, 1e-08  ;;  %v3039_v2 = vld [vmem:[%s5330_s0 + $0x1e8] sm:$0xff]  ;;  %v3040_v50 = vld [vmem:[%s5330_s0 + $0x1f0] sm:$0xff] }
 0x12d   :  { %v2704_v46 = vpop.eup %2703  ;;  %v697_v48 = vsel %vm695_vm5, %v696_v54, %v694_v13  ;;  %2411 = vmatmul.mubr.f32.gmra.mrb[18].mxu1 %v912_v59  ;;  %vm714_vm10 = vcmp.eq.f32.partialorder %v4157_v62, inf  ;;  %vm716_vm11 = vcmp.eq.f32.partialorder %v4157_v62, 0.0  ;;  %v717_v8 = vand.u32 2147483648, %v4157_v62 }
 0x12e   :  { %v2706_v52 = vpop.eup %2705  ;;  %v706_v30 = vmul.f32 %v2704_v46, %v4145_v47  ;;  %v791_v16 = vmax.f32 %v697_v48, 1e-08  ;;  %v701_v9 = vsel %vm700_vm6, %v4135_v55, %v699_v29  ;;  %2719 = vrcp.f32 %v789_v41  ;;  %v3041_v29 = vld [vmem:[%s5330_s0 + $0x1f8] sm:$0xff] }
 0x12f   :  { %v2708_v21 = vpop.eup %2707  ;;  %v913_v37 = vmul.f32 %v3030_v0, %v2706_v52  ;;  %2721 = vrcp.f32 %v790_v11  ;;  %v704_v22 = vsel %vm702_vm7, %v703_v25, %v701_v9  ;;  %vm721_vm12 = vcmp.eq.f32.partialorder %v4181_v19, inf  ;;  %v3037_v25 = vld [vmem:[%s5330_s0 + $0x1d8] sm:$0xff] }
 0x130   :  { %v2710_v53 = vpop.eup %2709  ;;  %v708_v49 = vsel %vm707_vm8, %v4145_v47, %v706_v30  ;;  %v713_v24 = vmul.f32 %v2708_v21, %v4157_v62  ;;  %2723 = vrcp.f32 %v791_v16  ;;  %v792_v33 = vmax.f32 %v704_v22, 1e-08 }
 0x131   :  { %2413 = vmatprep.mubr.f32.mxu1 %v913_v37  ;;  %v914_v56 = vmul.f32 %v3031_v61, %v2710_v53  ;;  %v711_v17 = vsel %vm709_vm9, %v710_v36, %v708_v49  ;;  %v724_v55 = vand.u32 2147483648, %v4181_v19  ;;  %vm723_vm13 = vcmp.eq.f32.partialorder %v4181_v19, 0.0 }
 0x132   :  { %v715_v32 = vsel %vm714_vm10, %v4157_v62, %v713_v24  ;;  %v793_v45 = vmax.f32 %v711_v17, 1e-08  ;;  %2725 = vrcp.f32 %v792_v33  ;;  %vm728_vm14 = vcmp.eq.f32.partialorder %v4201_v28, inf  ;;  %v3033_v62 = vld [vmem:[%s5330_s0 + $0x1b8] sm:$0xff] }
 0x133   :  { %v2712_v31 = vpop.eup %2711  ;;  %2414 = vmatmul.mubr.f32.gmra.mrb[20].mxu1 %v914_v56  ;;  %v718_v34 = vsel %vm716_vm11, %v717_v8, %v715_v32  ;;  %v731_v23 = vand.u32 2147483648, %v4201_v28  ;;  %vm730_vm15 = vcmp.eq.f32.partialorder %v4201_v28, 0.0  ;;  %v1310_v11 = vlaneseq }
 0x134   :  { %v2714_v43 = vpop.eup %2713  ;;  %v720_v3 = vmul.f32 %v2712_v31, %v4181_v19  ;;  %2727 = vrcp.f32 %v793_v45  ;;  %v794_v47 = vmax.f32 %v718_v34, 1e-08 }
 0x135   :  { %v2716_v44 = vpop.eup %2715  ;;  %v915_v15 = vmul.f32 %v3032_v12, %v2714_v43  ;;  %v4296_v48 = vand.u32 127, %v1310_v11 }
 0x136   :  { %v2718_v60 = vpop.eup %2717  ;;  %v916_v7 = vmul.f32 %v3033_v62, %v2716_v44  ;;  %v722_v35 = vsel %vm721_vm12, %v4181_v19, %v720_v3  ;;  %2729 = vrcp.f32 %v794_v47 }
 0x137   :  { %2416 = vmatprep.mubr.f32.mxu1 %v915_v15  ;;  %v727_v26 = vmul.f32 %v2718_v60, %v4201_v28  ;;  %v725_v38 = vsel %vm723_vm13, %v724_v55, %v722_v35  ;;  %vm1312_vm0 = vcmp.lt.s32.totalorder %v4296_v48, 64 }
 0x138   :  { %2417 = vmatmul.mubr.f32.gmra.mrb[22].mxu1 %v916_v7  ;;  %v795_v42 = vmax.f32 %v725_v38, 1e-08  ;;  %v2720_v4 = vpop.eup %2719 }
 0x139   :  { %v729_v51 = vsel %vm728_vm14, %v4201_v28, %v727_v26  ;;  %v2722_v54 = vpop.eup %2721  ;;  %v917_v39 = vmul.f32 %v3034_v58, %v2720_v4 }
 0x13a   :  { %2731 = vrcp.f32 %v795_v42  ;;  %v732_v10 = vsel %vm730_vm15, %v731_v23, %v729_v51  ;;  %v2724_v5 = vpop.eup %2723  ;;  %v918_v19 = vmul.f32 %v3035_v1, %v2722_v54 }
 0x13b   :  { %v796_v27 = vmax.f32 %v732_v10, 1e-08  ;;  %2419 = vmatprep.mubr.f32.mxu1 %v917_v39  ;;  %v919_v28 = vmul.f32 %v3036_v57, %v2724_v5 }
 0x13c   :  { %v2726_v6 = vpop.eup %2725  ;;  %2420 = vmatmul.mubr.f32.gmra.mrb[24].mxu1 %v918_v19 }
 0x13d   :  { %2733 = vrcp.f32 %v796_v27  ;;  %2422 = vmatprep.mubr.f32.mxu1 %v919_v28  ;;  %v920_v40 = vmul.f32 %v3037_v25, %v2726_v6 }
 0x13e   :  { %v2728_v13 = vpop.eup %2727 }
 0x13f   :  { %v921_v63 = vmul.f32 %v3038_v14, %v2728_v13 }
 0x140   :  { %v2730_v36 = vpop.eup %2729  ;;  %2423 = vmatmul.mubr.f32.gmra.mrb[26].mxu1 %v920_v40 }
 0x141   :  { %v922_v18 = vmul.f32 %v3039_v2, %v2730_v36  ;;  %2425 = vmatprep.mubr.f32.mxu1 %v921_v63 }
 0x144   :  { %v2732_v59 = vpop.eup %2731  ;;  %2426 = vmatmul.mubr.f32.gmra.mrb[28].mxu1 %v922_v18 }
 0x145   :  { %v923_v20 = vmul.f32 %v3040_v50, %v2732_v59 }
 0x147   :  { %v2734_v46 = vpop.eup %2733  ;;  %2428 = vmatprep.mubr.f32.mxu1 %v923_v20 }
 0x148   :  { %v924_v41 = vmul.f32 %v3041_v29, %v2734_v46 }
 0x14a   :  { %2429 = vmatmul.mubr.f32.gmra.mrb[30].mxu1 %v924_v41 }
 0x188   :  { %v2337_v52 = vpop.f32.mrb[0].mxu0 }
 0x189   :  { %v991_v30 = vpop.f32.mrb[1].mxu0  ;;  %v4301_v16 = vsel %vm1312_vm0, %v2337_v52, -1e+30 }
 0x18a   :  { %1379 = vmax.xlane.f32.xlu1 %v4301_v16  ;;  %v4306_v21 = vsel %vm1312_vm0, %v991_v30, -1e+30 }
 0x18b   :  { %1377 = vmax.xlane.f32.xlu0 %v4306_v21 }
 0x18c   :  { %v2340_v9 = vpop.f32.mrb[2].mxu0 }
 0x18d   :  { %v1001_v0 = vpop.f32.mrb[3].mxu0  ;;  %v4369_v10 = vsel %vm1312_vm0, %v2340_v9, -1e+30 }
 0x18e   :  { %v4374_v5 = vsel %vm1312_vm0, %v1001_v0, -1e+30 }
 0x190   :  { %v2343_v37 = vpop.f32.mrb[4].mxu0 }
 0x191   :  { %v1011_v8 = vpop.f32.mrb[5].mxu0  ;;  %v4389_v13 = vsel %vm1312_vm0, %v2343_v37, -1e+30 }
 0x192   :  { %v4394_v25 = vsel %vm1312_vm0, %v1011_v8, -1e+30 }
 0x194   :  { %v2346_v53 = vpop.f32.mrb[6].mxu0 }
 0x195   :  { %v1021_v49 = vpop.f32.mrb[7].mxu0  ;;  %v4409_v18 = vsel %vm1312_vm0, %v2346_v53, -1e+30 }
 0x196   :  { %v4414_v50 = vsel %vm1312_vm0, %v1021_v49, -1e+30 }
 0x19a   :  { %v4309_v24 = vpop.f32.mrb[8].mxu0 }
 0x19b   :  { %v4311_v22 = vpop.f32.mrb[9].mxu0  ;;  %v4430_v52 = vsel %vm1312_vm0, %v4309_v24, -1e+30 }
 0x19c   :  { %v4436_v9 = vsel %vm1312_vm0, %v4311_v22, -1e+30 }
 0x1a2   :  { %v4313_v61 = vpop.f32.mrb[10].mxu0 }
 0x1a3   :  { %v4315_v56 = vpop.f32.mrb[11].mxu0  ;;  %v4454_v49 = vsel %vm1312_vm0, %v4313_v61, -1e+30 }
 0x1a4   :  { %v4460_v24 = vsel %vm1312_vm0, %v4315_v56, -1e+30 }
 0x1a6   :  { %v4317_v33 = vpop.f32.mrb[12].mxu0 }
 0x1a7   :  { %v4319_v17 = vpop.f32.mrb[13].mxu0 }
 0x1ae   :  { %v4321_v32 = vpop.f32.mrb[14].mxu0 }
 0x1af   :  { %v4323_v45 = vpop.f32.mrb[15].mxu0 }
 0x1b3   :  { %v4325_v31 = vpop.f32.mrb[16].mxu0 }
 0x1b4   :  { %v4327_v55 = vpop.f32.mrb[17].mxu0 }
 0x1bb   :  { %v4329_v34 = vpop.f32.mrb[18].mxu0 }
 0x1bc   :  { %v4331_v43 = vpop.f32.mrb[19].mxu0 }
 0x1bf   :  { %v4333_v3 = vpop.f32.mrb[20].mxu0 }
 0x1c0   :  { %v4335_v47 = vpop.f32.mrb[21].mxu0 }
 0x1c5   :  { %v4337_v44 = vpop.f32.mrb[22].mxu0 }
 0x1c6   :  { %v4339_v12 = vpop.f32.mrb[23].mxu0 }
 0x1cd   :  { %v4341_v15 = vpop.f32.mrb[24].mxu0 }
 0x1ce   :  { %v4343_v60 = vpop.f32.mrb[25].mxu0 }
 0x1d1   :  { %v4345_v62 = vpop.f32.mrb[26].mxu0 }
 0x1d2   :  { %v4347_v7 = vpop.f32.mrb[27].mxu0 }
 0x1d5   :  { %v4349_v35 = vpop.f32.mrb[28].mxu0 }
 0x1d6   :  { %v4351_v23 = vpop.f32.mrb[29].mxu0 }
 0x1da   :  { %v4353_v26 = vpop.f32.mrb[30].mxu0  ;;  %v2385_v38 = vpop.f32.mrb[0].mxu1 }
 0x1db   :  { %v4355_v42 = vpop.f32.mrb[31].mxu0  ;;  %v1151_v4 = vpop.f32.mrb[1].mxu1  ;;  %v4359_v51 = vsel %vm1312_vm0, %v2385_v38, -1e+30 }
 0x1dc   :  { %1443 = vmax.xlane.f32.xlu1 %v4359_v51  ;;  %v4364_v54 = vsel %vm1312_vm0, %v1151_v4, -1e+30 }
 0x1dd   :  { %1441 = vmax.xlane.f32.xlu0 %v4364_v54 }
 0x1de   :  { %v2388_v58 = vpop.f32.mrb[2].mxu1 }
 0x1df   :  { %v1161_v39 = vpop.f32.mrb[3].mxu1  ;;  %v4379_v27 = vsel %vm1312_vm0, %v2388_v58, -1e+30 }
 0x1e0   :  { %1383 = vmax.xlane.f32.xlu1 %v4369_v10  ;;  %v4384_v57 = vsel %vm1312_vm0, %v1161_v39, -1e+30  ;;  %v4484_v39 = vsel %vm1312_vm0, %v4317_v33, -1e+30 }
 0x1e1   :  { %1381 = vmax.xlane.f32.xlu0 %v4374_v5 }
 0x1e2   :  { %v2391_v1 = vpop.f32.mrb[4].mxu1 }
 0x1e3   :  { %v1171_v19 = vpop.f32.mrb[5].mxu1  ;;  %v4399_v14 = vsel %vm1312_vm0, %v2391_v1, -1e+30  ;;  %v4490_v1 = vsel %vm1312_vm0, %v4319_v17, -1e+30 }
 0x1e4   :  { %1447 = vmax.xlane.f32.xlu1 %v4379_v27  ;;  %v4404_v36 = vsel %vm1312_vm0, %v1171_v19, -1e+30  ;;  %v4510_v17 = vsel %vm1312_vm0, %v4321_v32, -1e+30  ;;  %v4533_v32 = vsel %vm1312_vm0, %v4327_v55, -1e+30 }
 0x1e5   :  { %1445 = vmax.xlane.f32.xlu0 %v4384_v57  ;;  %v4556_v55 = vsel %vm1312_vm0, %v4325_v31, -1e+30  ;;  %v4576_v31 = vsel %vm1312_vm0, %v4339_v12, -1e+30 }
 0x1e6   :  { %v2394_v28 = vpop.f32.mrb[6].mxu1 }
 0x1e7   :  { %v1181_v6 = vpop.f32.mrb[7].mxu1  ;;  %v4419_v46 = vsel %vm1312_vm0, %v2394_v28, -1e+30 }
 0x1e8   :  { %1387 = vmax.xlane.f32.xlu1 %v4389_v13  ;;  %v4424_v41 = vsel %vm1312_vm0, %v1181_v6, -1e+30 }
 0x1e9   :  { %1385 = vmax.xlane.f32.xlu0 %v4394_v25 }
 0x1ea   :  { %v2397_v40 = vpop.f32.mrb[8].mxu1 }
 0x1eb   :  { %v1191_v63 = vpop.f32.mrb[9].mxu1  ;;  %v4443_v37 = vsel %vm1312_vm0, %v2397_v40, -1e+30 }
 0x1ec   :  { %1451 = vmax.xlane.f32.xlu1 %v4399_v14  ;;  %v4448_v53 = vsel %vm1312_vm0, %v1191_v63, -1e+30  ;;  %v4518_v63 = vsel %vm1312_vm0, %v4323_v45, -1e+30 }
 0x1ed   :  { %1449 = vmax.xlane.f32.xlu0 %v4404_v36 }
 0x1ee   :  { %v2400_v2 = vpop.f32.mrb[10].mxu1 }
 0x1ef   :  { %v1201_v59 = vpop.f32.mrb[11].mxu1  ;;  %v4469_v4 = vsel %vm1312_vm0, %v2400_v2, -1e+30 }
 0x1f0   :  { %1391 = vmax.xlane.f32.xlu1 %v4409_v18  ;;  %5374 = vst [vmem:[#allocation2_spill] sm:$0xff] %v4469_v4  ;;  %v4474_v61 = vsel %vm1312_vm0, %v1201_v59, -1e+30 }
 0x1f1   :  { %1389 = vmax.xlane.f32.xlu0 %v4414_v50  ;;  %5375 = vst [vmem:[#allocation3_spill] sm:$0xff] %v4474_v61 }
 0x1f2   :  { %v2403_v20 = vpop.f32.mrb[12].mxu1 }
 0x1f3   :  { %v1211_v29 = vpop.f32.mrb[13].mxu1  ;;  %v4497_v28 = vsel %vm1312_vm0, %v2403_v20, -1e+30 }
 0x1f4   :  { %1455 = vmax.xlane.f32.xlu1 %v4419_v46  ;;  %5376 = vst [vmem:[#allocation4_spill] sm:$0xff] %v4497_v28  ;;  %v4504_v33 = vsel %vm1312_vm0, %v1211_v29, -1e+30 }
 0x1f5   :  { %1453 = vmax.xlane.f32.xlu0 %v4424_v41  ;;  %5377 = vst [vmem:[#allocation5_spill] sm:$0xff] %v4504_v33 }
 0x1f6   :  { %v2406_v11 = vpop.f32.mrb[14].mxu1 }
 0x1f7   :  { %v1221_v30 = vpop.f32.mrb[15].mxu1  ;;  %v4525_v59 = vsel %vm1312_vm0, %v2406_v11, -1e+30  ;;  %v4548_v11 = vsel %vm1312_vm0, %v4331_v43, -1e+30 }
 0x1f8   :  { %1395 = vmax.xlane.f32.xlu1 %v4430_v52  ;;  %5378 = vst [vmem:[#allocation6_spill] sm:$0xff] %v4525_v59  ;;  %v4540_v45 = vsel %vm1312_vm0, %v1221_v30, -1e+30  ;;  %v4561_v30 = vsel %vm1312_vm0, %v4335_v47, -1e+30 }
 0x1f9   :  { %1393 = vmax.xlane.f32.xlu0 %v4436_v9  ;;  %5379 = vst [vmem:[#allocation7_spill] sm:$0xff] %v4540_v45 }
 0x1fa   :  { %v4439_v0 = vpop.f32.mrb[16].mxu1 }
 0x1fb   :  { %v1231_v8 = vpop.f32.mrb[17].mxu1 }
 0x1fc   :  { %1459 = vmax.xlane.f32.xlu1 %v4443_v37 }
 0x1fd   :  { %1457 = vmax.xlane.f32.xlu0 %v4448_v53 }
 0x200   :  { %1399 = vmax.xlane.f32.xlu1 %v4454_v49  ;;  %v4462_v22 = vpop.f32.mrb[18].mxu1 }
 0x201   :  { %1397 = vmax.xlane.f32.xlu0 %v4460_v24  ;;  %v4465_v38 = vpop.f32.mrb[19].mxu1 }
 0x204   :  { %1463 = vmax.xlane.f32.xlu1 %v4469_v4  ;;  %v4584_v4 = vsel %vm1312_vm0, %v4329_v34, -1e+30  ;;  %v4601_v34 = vsel %vm1312_vm0, %v4347_v7, -1e+30  ;;  %v4620_v7 = vsel %vm1312_vm0, %v4341_v15, -1e+30 }
 0x205   :  { %1461 = vmax.xlane.f32.xlu0 %v4474_v61  ;;  %v4571_v61 = vsel %vm1312_vm0, %v1231_v8, -1e+30  ;;  %v4589_v8 = vsel %vm1312_vm0, %v4343_v60, -1e+30  ;;  %v4608_v60 = vsel %vm1312_vm0, %v4337_v44, -1e+30 }
 0x206   :  { %v4477_v56 = vpop.f32.mrb[20].mxu1  ;;  %5380 = vst [vmem:[#allocation8_spill] sm:$0xff] %v4571_v61  ;;  %v4641_v15 = vsel %vm1312_vm0, %v4349_v35, -1e+30  ;;  %v4659_v35 = vsel %vm1312_vm0, %v4465_v38, -1e+30 }
 0x207   :  { %v4479_v58 = vpop.f32.mrb[21].mxu1 }
 0x208   :  { %1403 = vmax.xlane.f32.xlu1 %v4484_v39 }
 0x209   :  { %1401 = vmax.xlane.f32.xlu0 %v4490_v1 }
 0x20b   :  { %v4493_v19 = vpop.f32.mrb[22].mxu1 }
 0x20c   :  { %v4499_v6 = vpop.f32.mrb[23].mxu1  ;;  %1467 = vmax.xlane.f32.xlu1 %v4497_v28 }
 0x20d   :  { %1465 = vmax.xlane.f32.xlu0 %v4504_v33 }
 0x20f   :  { %v4512_v40 = vpop.f32.mrb[24].mxu1 }
 0x210   :  { %1407 = vmax.xlane.f32.xlu1 %v4510_v17  ;;  %v4520_v2 = vpop.f32.mrb[25].mxu1 }
 0x211   :  { %1405 = vmax.xlane.f32.xlu0 %v4518_v63 }
 0x213   :  { %v4527_v20 = vpop.f32.mrb[26].mxu1 }
 0x214   :  { %1471 = vmax.xlane.f32.xlu1 %v4525_v59  ;;  %v4535_v29 = vpop.f32.mrb[27].mxu1 }
 0x215   :  { %1409 = vmax.xlane.f32.xlu0 %v4533_v32 }
 0x217   :  { %v4542_v33 = vpop.f32.mrb[28].mxu1  ;;  %v1380_v43 = vpop.xlane.xlu1 %1379 }
 0x218   :  { %1469 = vmax.xlane.f32.xlu1 %v4540_v45  ;;  %v4550_v59 = vpop.f32.mrb[29].mxu1  ;;  %v1506_v47 = vsub.f32 %v4301_v16, %v1380_v43  ;;  %v4596_v16 = vsel %vm1312_vm0, %v4333_v3, -1e+30  ;;  %v4613_v3 = vsel %vm1312_vm0, %v4351_v23, -1e+30 }
 0x219   :  { %1413 = vmax.xlane.f32.xlu0 %v4548_v11  ;;  %v4625_v43 = vsel %vm1312_vm0, %v4355_v42, -1e+30  ;;  %v4634_v23 = vsel %vm1312_vm0, %v4345_v62, -1e+30  ;;  %v4647_v42 = vsel %vm1312_vm0, %v4353_v26, -1e+30 }
 0x21a   :  { %v1571_v12 = vmul.f32 1.442695, %v1506_v47  ;;  %v4653_v62 = vsel %vm1312_vm0, %v4439_v0, -1e+30  ;;  %v1378_v47 = vpop.xlane.xlu0 %1377 }
 0x21b   :  { %v1505_v26 = vsub.f32 %v4306_v21, %v1378_v47  ;;  %v4678_v21 = vsel %vm1312_vm0, %v4477_v56, -1e+30  ;;  %v4699_v56 = vsel %vm1312_vm0, %v4520_v2, -1e+30 }
 0x21c   :  { %1411 = vmax.xlane.f32.xlu1 %v4556_v55  ;;  %2735 = vpow2.f32 %v1571_v12  ;;  %v4666_v12 = vsel %vm1312_vm0, %v4462_v22, -1e+30  ;;  %v4684_v22 = vsel %vm1312_vm0, %v4499_v6, -1e+30  ;;  %5384 = vst [vmem:[#allocation12_spill] sm:$0xff] %v4699_v56 }
 0x21d   :  { %v4564_v45 = vpop.f32.mrb[30].mxu1  ;;  %1417 = vmax.xlane.f32.xlu0 %v4561_v30  ;;  %v1569_v0 = vmul.f32 1.442695, %v1505_v26  ;;  %5382 = vst [vmem:[#allocation10_spill] sm:$0xff] %v4684_v22  ;;  %v4705_v6 = vsel %vm1312_vm0, %v4512_v40, -1e+30 }
 0x21e   :  { %v4567_v28 = vpop.f32.mrb[31].mxu1  ;;  %5385 = vst [vmem:[#allocation13_spill] sm:$0xff] %v4705_v6  ;;  %v4721_v26 = vsel %vm1312_vm0, %v4527_v20, -1e+30 }
 0x21f   :  { %2737 = vpow2.f32 %v1569_v0  ;;  %5387 = vst [vmem:[#allocation15_spill] sm:$0xff] %v4721_v26 }
 0x220   :  { %1473 = vmax.xlane.f32.xlu1 %v4571_v61  ;;  %v4672_v61 = vsel %vm1312_vm0, %v4479_v58, -1e+30  ;;  %v4693_v58 = vsel %vm1312_vm0, %v4493_v19, -1e+30  ;;  %v4711_v19 = vsel %vm1312_vm0, %v4535_v29, -1e+30 }
 0x221   :  { %1421 = vmax.xlane.f32.xlu0 %v4576_v31  ;;  %5381 = vst [vmem:[#allocation9_spill] sm:$0xff] %v4672_v61  ;;  %5383 = vst [vmem:[#allocation11_spill] sm:$0xff] %v4693_v58  ;;  %v4728_v29 = vsel %vm1312_vm0, %v4550_v59, -1e+30 }
 0x222   :  { %5386 = vst [vmem:[#allocation14_spill] sm:$0xff] %v4711_v19  ;;  %5388 = vst [vmem:[#allocation16_spill] sm:$0xff] %v4728_v29 }
 0x224   :  { %1415 = vmax.xlane.f32.xlu1 %v4584_v4 }
 0x225   :  { %1425 = vmax.xlane.f32.xlu0 %v4589_v8 }
 0x226   :  { %v4629_v44 = vpop.eup %2735 }
 0x228   :  { %1419 = vmax.xlane.f32.xlu1 %v4596_v16 }
 0x229   :  { %1429 = vmax.xlane.f32.xlu0 %v4601_v34  ;;  %v4687_v38 = vpop.eup %2737 }
 0x22c   :  { %1423 = vmax.xlane.f32.xlu1 %v4608_v60 }
 0x22d   :  { %1433 = vmax.xlane.f32.xlu0 %v4613_v3 }
 0x230   :  { %1427 = vmax.xlane.f32.xlu1 %v4620_v7 }
 0x231   :  { %1437 = vmax.xlane.f32.xlu0 %v4625_v43 }
 0x234   :  { %1431 = vmax.xlane.f32.xlu1 %v4634_v23 }
 0x235   :  { %1699 = vadd.xlane.f32.xlu0 %v4629_v44 }
 0x238   :  { %1435 = vmax.xlane.f32.xlu1 %v4641_v15 }
 0x23c   :  { %1439 = vmax.xlane.f32.xlu1 %v4647_v42 }
 0x240   :  { %1475 = vmax.xlane.f32.xlu1 %v4653_v62 }
 0x244   :  { %1477 = vmax.xlane.f32.xlu1 %v4659_v35 }
 0x248   :  { %1479 = vmax.xlane.f32.xlu1 %v4666_v12 }
 0x24c   :  { %1481 = vmax.xlane.f32.xlu1 %v4672_v61 }
 0x250   :  { %1483 = vmax.xlane.f32.xlu1 %v4678_v21 }
 0x254   :  { %1485 = vmax.xlane.f32.xlu1 %v4684_v22 }
 0x258   :  { %1697 = vadd.xlane.f32.xlu1 %v4687_v38 }
 0x25c   :  { %1487 = vmax.xlane.f32.xlu1 %v4693_v58 }
 0x260   :  { %1489 = vmax.xlane.f32.xlu1 %v4699_v56 }
 0x264   :  { %1491 = vmax.xlane.f32.xlu1 %v4705_v6 }
 0x268   :  { %1493 = vmax.xlane.f32.xlu1 %v4711_v19 }
 0x269   :  { %v4714_v47 = vpop.xlane.xlu1 %1443 }
 0x26a   :  { %v4716_v2 = vpop.xlane.xlu0 %1441 }
 0x26c   :  { %1495 = vmax.xlane.f32.xlu1 %v4721_v26 }
 0x26d   :  { %v1384_v40 = vpop.xlane.xlu1 %1383 }
 0x26e   :  { %v1508_v0 = vsub.f32 %v4369_v10, %v1384_v40  ;;  %v1382_v56 = vpop.xlane.xlu0 %1381  ;;  %v4739_v10 = vsel %vm1312_vm0, %v4542_v33, -1e+30  ;;  %v4746_v40 = vsel %vm1312_vm0, %v4567_v28, -1e+30 }
 0x26f   :  { %v1507_v19 = vsub.f32 %v4374_v5, %v1382_v56  ;;  %5389 = vst [vmem:[#allocation17_spill] sm:$0xff] %v4739_v10  ;;  %5390 = vst [vmem:[#allocation18_spill] sm:$0xff] %v4746_v40 }
 0x270   :  { %v1575_v6 = vmul.f32 1.442695, %v1508_v0  ;;  %1497 = vmax.xlane.f32.xlu1 %v4728_v29 }
 0x271   :  { %v4732_v22 = vpop.xlane.xlu1 %1447  ;;  %v1573_v20 = vmul.f32 1.442695, %v1507_v19 }
 0x272   :  { %2739 = vpow2.f32 %v1575_v6  ;;  %v4734_v58 = vpop.xlane.xlu0 %1445 }
 0x273   :  { %2741 = vpow2.f32 %v1573_v20 }
 0x274   :  { %1499 = vmax.xlane.f32.xlu1 %v4739_v10 }
 0x275   :  { %v1388_v59 = vpop.xlane.xlu1 %1387 }
 0x276   :  { %v1510_v5 = vsub.f32 %v4389_v13, %v1388_v59  ;;  %v1386_v56 = vpop.xlane.xlu0 %1385  ;;  %v4757_v13 = vsel %vm1312_vm0, %v4564_v45, -1e+30 }
 0x277   :  { %v1509_v6 = vsub.f32 %v4394_v25, %v1386_v56  ;;  %5391 = vst [vmem:[#allocation19_spill] sm:$0xff] %v4757_v13 }
 0x278   :  { %v1579_v19 = vmul.f32 1.442695, %v1510_v5  ;;  %1501 = vmax.xlane.f32.xlu1 %v4746_v40 }
 0x279   :  { %v4750_v0 = vpop.xlane.xlu1 %1451  ;;  %v1577_v33 = vmul.f32 1.442695, %v1509_v6 }
 0x27a   :  { %2743 = vpow2.f32 %v1579_v19  ;;  %v4752_v29 = vpop.xlane.xlu0 %1449 }
 0x27b   :  { %2745 = vpow2.f32 %v1577_v33 }
 0x27c   :  { %v4759_v20 = vpop.eup %2739  ;;  %1503 = vmax.xlane.f32.xlu1 %v4757_v13 }
 0x27d   :  { %5392 = vst [vmem:[#allocation20_spill] sm:$0xff] %v4759_v20  ;;  %v1392_v28 = vpop.xlane.xlu1 %1391  ;;  %1703 = vadd.xlane.f32.xlu0 %v4759_v20  ;;  %v4765_v56 = vpop.eup %2741 }
 0x27e   :  { %v1512_v25 = vsub.f32 %v4409_v18, %v1392_v28  ;;  %v1390_v59 = vpop.xlane.xlu0 %1389  ;;  %5393 = vst [vmem:[#allocation21_spill] sm:$0xff] %v4765_v56 }
 0x27f   :  { %v1511_v5 = vsub.f32 %v4414_v50, %v1390_v59 }
 0x280   :  { %v1583_v6 = vmul.f32 1.442695, %v1512_v25 }
 0x281   :  { %v4767_v19 = vpop.xlane.xlu1 %1455  ;;  %1701 = vadd.xlane.f32.xlu0 %v4765_v56  ;;  %v1581_v48 = vmul.f32 1.442695, %v1511_v5 }
 0x282   :  { %2747 = vpow2.f32 %v1583_v6  ;;  %v4770_v45 = vpop.xlane.xlu0 %1453 }
 0x283   :  { %2749 = vpow2.f32 %v1581_v48 }
 0x284   :  { %v4772_v13 = vpop.eup %2743 }
 0x285   :  { %5394 = vst [vmem:[#allocation22_spill] sm:$0xff] %v4772_v13  ;;  %v1396_v20 = vpop.xlane.xlu1 %1395  ;;  %1707 = vadd.xlane.f32.xlu0 %v4772_v13  ;;  %v4777_v28 = vpop.eup %2745 }
 0x286   :  { %v1514_v18 = vsub.f32 %v4430_v52, %v1396_v20  ;;  %v1394_v50 = vpop.xlane.xlu0 %1393  ;;  %5395 = vst [vmem:[#allocation23_spill] sm:$0xff] %v4777_v28 }
 0x287   :  { %v1513_v33 = vsub.f32 %v4436_v9, %v1394_v50 }
 0x288   :  { %v1587_v25 = vmul.f32 1.442695, %v1514_v18 }
 0x289   :  { %v4779_v59 = vpop.xlane.xlu1 %1459  ;;  %1705 = vadd.xlane.f32.xlu0 %v4777_v28  ;;  %v1585_v5 = vmul.f32 1.442695, %v1513_v33 }
 0x28a   :  { %2751 = vpow2.f32 %v1587_v25  ;;  %v4782_v6 = vpop.xlane.xlu0 %1457 }
 0x28b   :  { %2753 = vpow2.f32 %v1585_v5 }
 0x28c   :  { %v4784_v56 = vpop.eup %2747 }
 0x28d   :  { %5396 = vst [vmem:[#allocation24_spill] sm:$0xff] %v4784_v56  ;;  %v1400_v13 = vpop.xlane.xlu1 %1399  ;;  %1711 = vadd.xlane.f32.xlu0 %v4784_v56  ;;  %v4789_v48 = vpop.eup %2749 }
 0x28e   :  { %v1516_v52 = vsub.f32 %v4454_v49, %v1400_v13  ;;  %v1398_v9 = vpop.xlane.xlu0 %1397  ;;  %5397 = vst [vmem:[#allocation25_spill] sm:$0xff] %v4789_v48 }
 0x28f   :  { %v1515_v20 = vsub.f32 %v4460_v24, %v1398_v9 }
 0x290   :  { %v1591_v18 = vmul.f32 1.442695, %v1516_v52 }
 0x291   :  { %v4791_v50 = vpop.xlane.xlu1 %1463  ;;  %1709 = vadd.xlane.f32.xlu0 %v4789_v48  ;;  %v1589_v33 = vmul.f32 1.442695, %v1515_v20 }
 0x292   :  { %2755 = vpow2.f32 %v1591_v18  ;;  %v4794_v25 = vpop.xlane.xlu0 %1461 }
 0x293   :  { %2757 = vpow2.f32 %v1589_v33 }
 0x294   :  { %v4796_v28 = vpop.eup %2751 }
 0x295   :  { %5398 = vst [vmem:[#allocation26_spill] sm:$0xff] %v4796_v28  ;;  %v1404_v56 = vpop.xlane.xlu1 %1403  ;;  %1715 = vadd.xlane.f32.xlu0 %v4796_v28  ;;  %v4801_v5 = vpop.eup %2753 }
 0x296   :  { %v1518_v49 = vsub.f32 %v4484_v39, %v1404_v56  ;;  %v1402_v24 = vpop.xlane.xlu0 %1401  ;;  %5399 = vst [vmem:[#allocation27_spill] sm:$0xff] %v4801_v5 }
 0x297   :  { %v1517_v13 = vsub.f32 %v4490_v1, %v1402_v24 }
 0x298   :  { %v1595_v52 = vmul.f32 1.442695, %v1518_v49 }
 0x299   :  { %v4803_v9 = vpop.xlane.xlu1 %1467  ;;  %1713 = vadd.xlane.f32.xlu0 %v4801_v5  ;;  %v1593_v20 = vmul.f32 1.442695, %v1517_v13 }
 0x29a   :  { %2759 = vpow2.f32 %v1595_v52  ;;  %v4806_v18 = vpop.xlane.xlu0 %1465 }
 0x29b   :  { %2761 = vpow2.f32 %v1593_v20 }
 0x29c   :  { %v4808_v48 = vpop.eup %2755 }
 0x29d   :  { %5400 = vst [vmem:[#allocation28_spill] sm:$0xff] %v4808_v48  ;;  %v1408_v28 = vpop.xlane.xlu1 %1407  ;;  %1719 = vadd.xlane.f32.xlu0 %v4808_v48  ;;  %v4813_v33 = vpop.eup %2757 }
 0x29e   :  { %v1520_v39 = vsub.f32 %v4510_v17, %v1408_v28  ;;  %v1406_v1 = vpop.xlane.xlu0 %1405  ;;  %5401 = vst [vmem:[#allocation29_spill] sm:$0xff] %v4813_v33 }
 0x29f   :  { %v1519_v56 = vsub.f32 %v4518_v63, %v1406_v1 }
 0x2a0   :  { %v1599_v49 = vmul.f32 1.442695, %v1520_v39 }
 0x2a1   :  { %v4815_v24 = vpop.xlane.xlu1 %1471  ;;  %1717 = vadd.xlane.f32.xlu0 %v4813_v33  ;;  %v1597_v13 = vmul.f32 1.442695, %v1519_v56 }
 0x2a2   :  { %2763 = vpow2.f32 %v1599_v49  ;;  %v1410_v52 = vpop.xlane.xlu0 %1409 }
 0x2a3   :  { %2765 = vpow2.f32 %v1597_v13  ;;  %v1521_v20 = vsub.f32 %v4533_v32, %v1410_v52 }
 0x2a4   :  { %v4818_v5 = vpop.eup %2759 }
 0x2a5   :  { %5402 = vst [vmem:[#allocation30_spill] sm:$0xff] %v4818_v5  ;;  %v4820_v40 = vpop.xlane.xlu1 %1469  ;;  %1723 = vadd.xlane.f32.xlu0 %v4818_v5  ;;  %v4823_v28 = vpop.eup %2761  ;;  %v1601_v5 = vmul.f32 1.442695, %v1521_v20 }
 0x2a6   :  { %v1414_v17 = vpop.xlane.xlu0 %1413  ;;  %5403 = vst [vmem:[#allocation31_spill] sm:$0xff] %v4823_v28 }
 0x2a7   :  { %v1523_v10 = vsub.f32 %v4548_v11, %v1414_v17 }
 0x2a9   :  { %v1412_v63 = vpop.xlane.xlu1 %1411  ;;  %1721 = vadd.xlane.f32.xlu0 %v4823_v28 }
 0x2aa   :  { %v1522_v39 = vsub.f32 %v4556_v55, %v1412_v63  ;;  %v1418_v1 = vpop.xlane.xlu0 %1417  ;;  %v1605_v63 = vmul.f32 1.442695, %v1523_v10 }
 0x2ac   :  { %v4828_v56 = vpop.eup %2763  ;;  %v1603_v49 = vmul.f32 1.442695, %v1522_v39  ;;  %v1525_v39 = vsub.f32 %v4561_v30, %v1418_v1 }
 0x2ad   :  { %5404 = vst [vmem:[#allocation32_spill] sm:$0xff] %v4828_v56  ;;  %v4830_v33 = vpop.xlane.xlu1 %1473  ;;  %1727 = vadd.xlane.f32.xlu0 %v4828_v56  ;;  %v4833_v48 = vpop.eup %2765 }
 0x2ae   :  { %2767 = vpow2.f32 %v1603_v49  ;;  %v1422_v13 = vpop.xlane.xlu0 %1421  ;;  %v1609_v11 = vmul.f32 1.442695, %v1525_v39 }
 0x2af   :  { %2769 = vpow2.f32 %v1601_v5  ;;  %v1527_v17 = vsub.f32 %v4576_v31, %v1422_v13 }
 0x2b1   :  { %v1416_v28 = vpop.xlane.xlu1 %1415  ;;  %1725 = vadd.xlane.f32.xlu0 %v4833_v48 }
 0x2b2   :  { %v1524_v32 = vsub.f32 %v4584_v4, %v1416_v28  ;;  %v1426_v55 = vpop.xlane.xlu0 %1425 }
 0x2b4   :  { %v1607_v52 = vmul.f32 1.442695, %v1524_v32 }
 0x2b5   :  { %v1420_v26 = vpop.xlane.xlu1 %1419 }
 0x2b6   :  { %2771 = vpow2.f32 %v1607_v52  ;;  %v1526_v20 = vsub.f32 %v4596_v16, %v1420_v26  ;;  %v1430_v49 = vpop.xlane.xlu0 %1429  ;;  %v1613_v16 = vmul.f32 1.442695, %v1527_v17  ;;  %v1529_v26 = vsub.f32 %v4589_v8, %v1426_v55 }
 0x2b7   :  { %2773 = vpow2.f32 %v1605_v63  ;;  %v1531_v52 = vsub.f32 %v4601_v34, %v1430_v49 }
 0x2b8   :  { %v4840_v56 = vpop.eup %2767  ;;  %v1611_v61 = vmul.f32 1.442695, %v1526_v20 }
 0x2b9   :  { %v1424_v5 = vpop.xlane.xlu1 %1423  ;;  %1731 = vadd.xlane.f32.xlu0 %v4840_v56  ;;  %v4845_v30 = vpop.eup %2769 }
 0x2ba   :  { %2775 = vpow2.f32 %v1611_v61  ;;  %v1528_v4 = vsub.f32 %v4608_v60, %v1424_v5  ;;  %v1434_v10 = vpop.xlane.xlu0 %1433  ;;  %v1617_v60 = vmul.f32 1.442695, %v1529_v26 }
 0x2bb   :  { %2777 = vpow2.f32 %v1609_v11  ;;  %v1621_v11 = vmul.f32 1.442695, %v1531_v52  ;;  %v1533_v17 = vsub.f32 %v4613_v3, %v1434_v10 }
 0x2bc   :  { %v1615_v28 = vmul.f32 1.442695, %v1528_v4 }
 0x2bd   :  { %v1428_v1 = vpop.xlane.xlu1 %1427  ;;  %1729 = vadd.xlane.f32.xlu0 %v4845_v30 }
 0x2be   :  { %2779 = vpow2.f32 %v1615_v28  ;;  %v1530_v31 = vsub.f32 %v4620_v7, %v1428_v1  ;;  %v1438_v13 = vpop.xlane.xlu0 %1437  ;;  %v1538_v28 = vsub.f32 %v4359_v51, %v4714_v47  ;;  %v1537_v51 = vsub.f32 %v4364_v54, %v4716_v2 }
 0x2bf   :  { %2781 = vpow2.f32 %v1613_v16  ;;  %v1625_v16 = vmul.f32 1.442695, %v1533_v17  ;;  %v1535_v3 = vsub.f32 %v4625_v43, %v1438_v13  ;;  %v1539_v2 = vsub.f32 %v4384_v57, %v4734_v58 }
 0x2c0   :  { %v4850_v32 = vpop.eup %2771  ;;  %v1619_v61 = vmul.f32 1.442695, %v1530_v31  ;;  %v1633_v54 = vmul.f32 1.442695, %v1537_v51 }
 0x2c1   :  { %v1432_v63 = vpop.xlane.xlu1 %1431  ;;  %1735 = vadd.xlane.f32.xlu0 %v4850_v32  ;;  %v4855_v39 = vpop.eup %2773  ;;  %v1629_v13 = vmul.f32 1.442695, %v1535_v3  ;;  %v1637_v58 = vmul.f32 1.442695, %v1539_v2  ;;  %v5405_v3 = vld [vmem:[#allocation2_spill] sm:$0xff]  ;;  %v5408_v2 = vld [vmem:[#allocation5_spill] sm:$0xff] }
 0x2c2   :  { %2783 = vpow2.f32 %v1619_v61  ;;  %v1532_v8 = vsub.f32 %v4634_v23, %v1432_v63  ;;  %v1700_v55 = vpop.xlane.xlu0 %1699  ;;  %v1635_v61 = vmul.f32 1.442695, %v1538_v28 }
 0x2c3   :  { %2785 = vrcp.f32 %v1700_v55 }
 0x2c4   :  { %v4857_v20 = vpop.eup %2775  ;;  %v1623_v7 = vmul.f32 1.442695, %v1532_v8  ;;  %2787 = vpow2.f32 %v1617_v60 }
 0x2c5   :  { %v1436_v5 = vpop.xlane.xlu1 %1435  ;;  %1739 = vadd.xlane.f32.xlu1 %v4857_v20  ;;  %1733 = vadd.xlane.f32.xlu0 %v4855_v39  ;;  %v4863_v23 = vpop.eup %2777 }
 0x2c6   :  { %2789 = vpow2.f32 %v1623_v7  ;;  %v1534_v34 = vsub.f32 %v4641_v15, %v1436_v5  ;;  %v1541_v7 = vsub.f32 %v4404_v36, %v4752_v29  ;;  %v1543_v36 = vsub.f32 %v4424_v41, %v4770_v45 }
 0x2c7   :  { %2791 = vpow2.f32 %v1621_v11  ;;  %v1545_v41 = vsub.f32 %v4448_v53, %v4782_v6 }
 0x2c8   :  { %v4865_v49 = vpop.eup %2779  ;;  %v1627_v4 = vmul.f32 1.442695, %v1534_v34  ;;  %v1641_v34 = vmul.f32 1.442695, %v1541_v7 }
 0x2c9   :  { %v1440_v26 = vpop.xlane.xlu1 %1439  ;;  %1743 = vadd.xlane.f32.xlu1 %v4865_v49  ;;  %1737 = vadd.xlane.f32.xlu0 %v4863_v23  ;;  %v4873_v10 = vpop.eup %2781 }
 0x2ca   :  { %2793 = vpow2.f32 %v1627_v4  ;;  %v1536_v15 = vsub.f32 %v4647_v42, %v1440_v26  ;;  %v1540_v42 = vsub.f32 %v4379_v27, %v4732_v22 }
 0x2cb   :  { %2795 = vpow2.f32 %v1625_v16  ;;  %v1645_v16 = vmul.f32 1.442695, %v1543_v36 }
 0x2cc   :  { %v4875_v1 = vpop.eup %2783  ;;  %v1631_v31 = vmul.f32 1.442695, %v1536_v15  ;;  %v1639_v27 = vmul.f32 1.442695, %v1540_v42 }
 0x2cd   :  { %v4879_v47 = vpop.xlane.xlu1 %1475  ;;  %1747 = vadd.xlane.f32.xlu1 %v4875_v1  ;;  %1741 = vadd.xlane.f32.xlu0 %v4873_v10  ;;  %v2786_v43 = vpop.eup %2785 }
 0x2ce   :  { %2797 = vpow2.f32 %v1631_v31  ;;  %v4885_v60 = vpop.eup %2787  ;;  %v4888_v52 = vmul.f32 %v2786_v43, %v4629_v44  ;;  %v1542_v44 = vsub.f32 %v4399_v14, %v4750_v0  ;;  %v1544_v0 = vsub.f32 %v4419_v46, %v4767_v19  ;;  %v5407_v43 = vld [vmem:[#allocation4_spill] sm:$0xff] }
 0x2cf   :  { %2799 = vpow2.f32 %v1635_v61  ;;  %v1546_v46 = vsub.f32 %v4443_v37, %v4779_v59  ;;  %v1548_v37 = vsub.f32 %v5405_v3, %v4791_v50  ;;  %v1649_v31 = vmul.f32 1.442695, %v1545_v41  ;;  %v5406_v61 = vld [vmem:[#allocation3_spill] sm:$0xff] }
 0x2d0   :  { %v4890_v63 = vpop.eup %2789  ;;  %v1954_v8 = vmax.f32 %v4888_v52, 0.0  ;;  %2801 = vpow2.f32 %v1629_v13  ;;  %v1643_v14 = vmul.f32 1.442695, %v1542_v44  ;;  %v1647_v4 = vmul.f32 1.442695, %v1544_v0 }
 0x2d1   :  { %v4895_v55 = vpop.xlane.xlu1 %1477  ;;  %1751 = vadd.xlane.f32.xlu1 %v4890_v63  ;;  %1745 = vadd.xlane.f32.xlu0 %v4885_v60  ;;  %v4901_v22 = vpop.eup %2791  ;;  %2803 = vpow2.f32 %v1633_v54  ;;  %v1651_v26 = vmul.f32 1.442695, %v1546_v46  ;;  %v1547_v53 = vsub.f32 %v5406_v61, %v4794_v25  ;;  %v1655_v51 = vmul.f32 1.442695, %v1548_v37 }
 0x2d2   :  { %2018 = vst [vmem:[%s5332_s2 + $0x8] sm:$0xff] %v1954_v8  ;;  %2805 = vpow2.f32 %v1639_v27  ;;  %v1550_v50 = vsub.f32 %v5407_v43, %v4803_v9  ;;  %v1549_v25 = vsub.f32 %v5408_v2, %v4806_v18 }
 0x2d3   :  { %2807 = vpow2.f32 %v1637_v58  ;;  %v1653_v54 = vmul.f32 1.442695, %v1547_v53  ;;  %v5409_v58 = vld [vmem:[#allocation6_spill] sm:$0xff] }
 0x2d4   :  { %v4908_v57 = vpop.eup %2793  ;;  %2809 = vpow2.f32 %v1643_v14  ;;  %v1659_v44 = vmul.f32 1.442695, %v1550_v50  ;;  %v1552_v7 = vsub.f32 %v5409_v58, %v4815_v24  ;;  %v1657_v0 = vmul.f32 1.442695, %v1549_v25  ;;  %v5412_v25 = vld [vmem:[#allocation9_spill] sm:$0xff] }
 0x2d5   :  { %v4912_v11 = vpop.xlane.xlu1 %1479  ;;  %1755 = vadd.xlane.f32.xlu1 %v4908_v57  ;;  %1749 = vadd.xlane.f32.xlu0 %v4901_v22  ;;  %v4918_v17 = vpop.eup %2795  ;;  %2811 = vpow2.f32 %v1641_v34  ;;  %v5410_v34 = vld [vmem:[#allocation7_spill] sm:$0xff]  ;;  %v1554_v24 = vsub.f32 %v4653_v62, %v4879_v47 }
 0x2d6   :  { %2813 = vpow2.f32 %v1647_v4  ;;  %v1551_v18 = vsub.f32 %v5410_v34, %v4820_v40  ;;  %v1663_v4 = vmul.f32 1.442695, %v1552_v7 }
 0x2d7   :  { %2815 = vpow2.f32 %v1645_v16  ;;  %v1667_v37 = vmul.f32 1.442695, %v1554_v24  ;;  %v5415_v24 = vld [vmem:[#allocation13_spill] sm:$0xff] }
 0x2d8   :  { %v4920_v5 = vpop.eup %2797  ;;  %2817 = vpow2.f32 %v1651_v26  ;;  %v1661_v41 = vmul.f32 1.442695, %v1551_v18  ;;  %v5411_v26 = vld [vmem:[#allocation8_spill] sm:$0xff] }
 0x2d9   :  { %v4924_v29 = vpop.xlane.xlu1 %1481  ;;  %1759 = vadd.xlane.f32.xlu1 %v4920_v5  ;;  %1753 = vadd.xlane.f32.xlu0 %v4918_v17  ;;  %v4930_v19 = vpop.eup %2799  ;;  %2819 = vpow2.f32 %v1649_v31  ;;  %v1553_v3 = vsub.f32 %v5411_v26, %v4830_v33  ;;  %v1556_v31 = vsub.f32 %v4666_v12, %v4912_v11  ;;  %v1555_v33 = vsub.f32 %v4659_v35, %v4895_v55 }
 0x2da   :  { %v4932_v28 = vpop.eup %2801  ;;  %2821 = vpow2.f32 %v1655_v51  ;;  %v2082_v35 = vand.u32 2147483647, %v1954_v8 }
 0x2db   :  { %v4942_v59 = vpop.eup %2803  ;;  %v1665_v53 = vmul.f32 1.442695, %v1553_v3  ;;  %v1671_v43 = vmul.f32 1.442695, %v1556_v31  ;;  %v1669_v55 = vmul.f32 1.442695, %v1555_v33 }
 0x2dc   :  { %v4944_v15 = vpop.eup %2805 }
 0x2dd   :  { %v4936_v45 = vpop.xlane.xlu1 %1483  ;;  %1763 = vadd.xlane.f32.xlu1 %v4930_v19  ;;  %1757 = vadd.xlane.f32.xlu0 %v4932_v28  ;;  %v4954_v42 = vpop.eup %2807 }
 0x2de   :  { %v4956_v13 = vpop.eup %2809  ;;  %v1558_v12 = vsub.f32 %v4678_v21, %v4936_v45  ;;  %v5413_v45 = vld [vmem:[#allocation11_spill] sm:$0xff] }
 0x2df   :  { %v4964_v9 = vpop.eup %2811 }
 0x2e0   :  { %v4966_v14 = vpop.eup %2813  ;;  %v1675_v21 = vmul.f32 1.442695, %v1558_v12 }
 0x2e1   :  { %v4948_v6 = vpop.xlane.xlu1 %1485  ;;  %1767 = vadd.xlane.f32.xlu1 %v4944_v15  ;;  %1761 = vadd.xlane.f32.xlu0 %v4942_v59  ;;  %v4974_v46 = vpop.eup %2815 }
 0x2e2   :  { %v4976_v16 = vpop.eup %2817 }
 0x2e3   :  { %v4984_v62 = vpop.eup %2819 }
 0x2e4   :  { %v4986_v47 = vpop.eup %2821 }
 0x2e5   :  { %1771 = vadd.xlane.f32.xlu1 %v4956_v13  ;;  %v1698_v27 = vpop.xlane.xlu1 %1697  ;;  %1765 = vadd.xlane.f32.xlu0 %v4954_v42 }
 0x2e6   :  { %2823 = vrcp.f32 %v1698_v27  ;;  %v1557_v27 = vsub.f32 %v5412_v25, %v4924_v29 }
 0x2e7   :  { %2825 = vpow2.f32 %v1653_v54 }
 0x2e8   :  { %2827 = vpow2.f32 %v1659_v44  ;;  %v1673_v29 = vmul.f32 1.442695, %v1557_v27 }
 0x2e9   :  { %1775 = vadd.xlane.f32.xlu1 %v4966_v14  ;;  %v1488_v36 = vpop.xlane.xlu1 %1487  ;;  %1769 = vadd.xlane.f32.xlu0 %v4964_v9  ;;  %2829 = vpow2.f32 %v1657_v0  ;;  %v5414_v0 = vld [vmem:[#allocation10_spill] sm:$0xff] }
 0x2ea   :  { %2831 = vpow2.f32 %v1663_v4  ;;  %v1560_v58 = vsub.f32 %v5413_v45, %v1488_v36  ;;  %v1559_v34 = vsub.f32 %v5414_v0, %v4948_v6  ;;  %v5420_v45 = vld [vmem:[#allocation16_spill] sm:$0xff] }
 0x2eb   :  { %2833 = vpow2.f32 %v1661_v41 }
 0x2ec   :  { %2835 = vpow2.f32 %v1667_v37  ;;  %v1679_v4 = vmul.f32 1.442695, %v1560_v58  ;;  %v1677_v3 = vmul.f32 1.442695, %v1559_v34  ;;  %v5416_v37 = vld [vmem:[#allocation12_spill] sm:$0xff] }
 0x2ed   :  { %1779 = vadd.xlane.f32.xlu1 %v4976_v16  ;;  %v1490_v40 = vpop.xlane.xlu1 %1489  ;;  %1773 = vadd.xlane.f32.xlu0 %v4974_v46  ;;  %2837 = vpow2.f32 %v1665_v53  ;;  %v5417_v53 = vld [vmem:[#allocation15_spill] sm:$0xff] }
 0x2ee   :  { %2839 = vpow2.f32 %v1671_v43  ;;  %v1561_v31 = vsub.f32 %v5416_v37, %v1490_v40 }
 0x2ef   :  { %2841 = vpow2.f32 %v1669_v55  ;;  %v5419_v55 = vld [vmem:[#allocation17_spill] sm:$0xff] }
 0x2f0   :  { %v2824_v61 = vpop.eup %2823  ;;  %2843 = vpow2.f32 %v1675_v21  ;;  %v1681_v12 = vmul.f32 1.442695, %v1561_v31 }
 0x2f1   :  { %1783 = vadd.xlane.f32.xlu1 %v4986_v47  ;;  %v1492_v51 = vpop.xlane.xlu1 %1491  ;;  %1777 = vadd.xlane.f32.xlu0 %v4984_v62  ;;  %v1889_v11 = vmul.f32 %v2824_v61, %v4687_v38  ;;  %v4995_v50 = vpop.eup %2825  ;;  %2845 = vpow2.f32 %v1673_v29 }
 0x2f2   :  { %v4997_v54 = vpop.eup %2827  ;;  %v1562_v36 = vsub.f32 %v5415_v24, %v1492_v51  ;;  %2847 = vpow2.f32 %v1679_v4  ;;  %v5421_v24 = vld [vmem:[#allocation18_spill] sm:$0xff] }
 0x2f3   :  { %v1953_v2 = vmax.f32 %v1889_v11, 0.0  ;;  %v5009_v52 = vpop.eup %2829  ;;  %2849 = vpow2.f32 %v1677_v3  ;;  %v5418_v11 = vld [vmem:[#allocation14_spill] sm:$0xff]  ;;  %v5422_v3 = vld [vmem:[#allocation19_spill] sm:$0xff] }
 0x2f4   :  { %v5011_v8 = vpop.eup %2831  ;;  %v1683_v61 = vmul.f32 1.442695, %v1562_v36 }
 0x2f5   :  { %1787 = vadd.xlane.f32.xlu1 %v4997_v54  ;;  %v1494_v44 = vpop.xlane.xlu1 %1493  ;;  %1781 = vadd.xlane.f32.xlu0 %v4995_v50  ;;  %2017 = vst [vmem:[%s5332_s2] sm:$0xff] %v1953_v2  ;;  %v2081_v38 = vand.u32 2147483647, %v1953_v2  ;;  %v5020_v41 = vpop.eup %2833 }
 0x2f6   :  { %v5022_v26 = vpop.eup %2835  ;;  %v1563_v2 = vsub.f32 %v5418_v11, %v1494_v44  ;;  %2851 = vpow2.f32 %v1683_v61 }
 0x2f7   :  { %v5013_v7 = vadd.f32 %v2082_v35, %v2081_v38  ;;  %v5028_v43 = vpop.eup %2837  ;;  %2853 = vpow2.f32 %v1681_v12 }
 0x2f8   :  { %v5030_v51 = vpop.eup %2839  ;;  %v1685_v38 = vmul.f32 1.442695, %v1563_v2 }
 0x2f9   :  { %1791 = vadd.xlane.f32.xlu1 %v5011_v8  ;;  %v1496_v18 = vpop.xlane.xlu1 %1495  ;;  %1785 = vadd.xlane.f32.xlu0 %v5009_v52  ;;  %v5036_v27 = vpop.eup %2841 }
 0x2fa   :  { %v1564_v33 = vsub.f32 %v5417_v53, %v1496_v18  ;;  %v5038_v21 = vpop.eup %2843 }
 0x2fb   :  { %v5043_v0 = vpop.eup %2845 }
 0x2fc   :  { %v1687_v35 = vmul.f32 1.442695, %v1564_v33  ;;  %v5045_v34 = vpop.eup %2847 }
 0x2fd   :  { %1795 = vadd.xlane.f32.xlu1 %v5022_v26  ;;  %v1498_v6 = vpop.xlane.xlu1 %1497  ;;  %1789 = vadd.xlane.f32.xlu0 %v5020_v41 }
 0x2fe   :  { %v1565_v58 = vsub.f32 %v5420_v45, %v1498_v6  ;;  %2855 = vpow2.f32 %v1687_v35  ;;  %v5051_v6 = vpop.eup %2849 }
 0x2ff   :  { %2857 = vpow2.f32 %v1685_v38  ;;  %5423 = vst [vmem:[#allocation2_spill] sm:$0xff] %v5051_v6  ;;  %v5429_v38 = vld [vmem:[#allocation20_spill] sm:$0xff] }
 0x300   :  { %v1689_v18 = vmul.f32 1.442695, %v1565_v58  ;;  %v5053_v61 = vpop.eup %2851 }
 0x301   :  { %1799 = vadd.xlane.f32.xlu1 %v5030_v51  ;;  %v1500_v40 = vpop.xlane.xlu1 %1499  ;;  %1793 = vadd.xlane.f32.xlu0 %v5028_v43  ;;  %5424 = vst [vmem:[#allocation3_spill] sm:$0xff] %v5053_v61  ;;  %v5057_v11 = vpop.eup %2853 }
 0x302   :  { %v1566_v25 = vsub.f32 %v5419_v55, %v1500_v40  ;;  %5425 = vst [vmem:[#allocation4_spill] sm:$0xff] %v5057_v11 }
 0x304   :  { %v1691_v29 = vmul.f32 1.442695, %v1566_v25 }
 0x305   :  { %1803 = vadd.xlane.f32.xlu1 %v5038_v21  ;;  %v1502_v44 = vpop.xlane.xlu1 %1501  ;;  %1797 = vadd.xlane.f32.xlu0 %v5036_v27 }
 0x306   :  { %2859 = vpow2.f32 %v1691_v29  ;;  %v1567_v36 = vsub.f32 %v5421_v24, %v1502_v44  ;;  %v5432_v24 = vld [vmem:[#allocation21_spill] sm:$0xff] }
 0x308   :  { %v1693_v33 = vmul.f32 1.442695, %v1567_v36  ;;  %v5059_v2 = vpop.eup %2855 }
 0x309   :  { %1807 = vadd.xlane.f32.xlu1 %v5045_v34  ;;  %v1504_v4 = vpop.xlane.xlu1 %1503  ;;  %1801 = vadd.xlane.f32.xlu0 %v5043_v0  ;;  %5426 = vst [vmem:[#allocation5_spill] sm:$0xff] %v5059_v2  ;;  %v5063_v35 = vpop.eup %2857 }
 0x30a   :  { %v1568_v37 = vsub.f32 %v5422_v3, %v1504_v4  ;;  %v1704_v31 = vpop.xlane.xlu0 %1703  ;;  %5427 = vst [vmem:[#allocation6_spill] sm:$0xff] %v5063_v35 }
 0x30b   :  { %2861 = vrcp.f32 %v1704_v31 }
 0x30c   :  { %v1695_v53 = vmul.f32 1.442695, %v1568_v37  ;;  %2863 = vpow2.f32 %v1689_v18 }
 0x30d   :  { %1811 = vadd.xlane.f32.xlu1 %v5053_v61  ;;  %1805 = vadd.xlane.f32.xlu0 %v5051_v6 }
 0x30e   :  { %2865 = vpow2.f32 %v1695_v53  ;;  %v1702_v12 = vpop.xlane.xlu0 %1701 }
 0x30f   :  { %2867 = vrcp.f32 %v1702_v12 }
 0x310   :  { %2869 = vpow2.f32 %v1693_v33  ;;  %v5065_v55 = vpop.eup %2859  ;;  %v5434_v33 = vld [vmem:[#allocation22_spill] sm:$0xff] }
 0x311   :  { %1815 = vadd.xlane.f32.xlu1 %v5059_v2  ;;  %1809 = vadd.xlane.f32.xlu0 %v5057_v11  ;;  %5428 = vst [vmem:[#allocation7_spill] sm:$0xff] %v5065_v55 }
 0x312   :  { %v1708_v40 = vpop.xlane.xlu0 %1707 }
 0x313   :  { %2871 = vrcp.f32 %v1708_v40 }
 0x315   :  { %v2862_v25 = vpop.eup %2861  ;;  %1819 = vadd.xlane.f32.xlu1 %v5065_v55  ;;  %1813 = vadd.xlane.f32.xlu0 %v5063_v35 }
 0x316   :  { %v1892_v45 = vmul.f32 %v2862_v25, %v5429_v38  ;;  %v1706_v58 = vpop.xlane.xlu0 %1705  ;;  %v5070_v44 = vpop.eup %2863 }
 0x317   :  { %5430 = vst [vmem:[#allocation8_spill] sm:$0xff] %v5070_v44  ;;  %2873 = vrcp.f32 %v1706_v58 }
 0x318   :  { %v5072_v29 = vpop.eup %2865  ;;  %v1956_v18 = vmax.f32 %v1892_v45, 0.0  ;;  %v5435_v45 = vld [vmem:[#allocation23_spill] sm:$0xff] }
 0x319   :  { %5431 = vst [vmem:[#allocation9_spill] sm:$0xff] %v5072_v29  ;;  %v2868_v4 = vpop.eup %2867  ;;  %1823 = vadd.xlane.f32.xlu1 %v5072_v29  ;;  %1817 = vadd.xlane.f32.xlu0 %v5070_v44  ;;  %v5438_v44 = vld [vmem:[#allocation26_spill] sm:$0xff] }
 0x31a   :  { %2020 = vst [vmem:[%s5332_s2 + $0x18] sm:$0xff] %v1956_v18  ;;  %v1891_v36 = vmul.f32 %v2868_v4, %v5432_v24  ;;  %v1712_v3 = vpop.xlane.xlu0 %1711  ;;  %v5080_v37 = vpop.eup %2869 }
 0x31b   :  { %2875 = vrcp.f32 %v1712_v3  ;;  %5433 = vst [vmem:[#allocation11_spill] sm:$0xff] %v5080_v37  ;;  %v5436_v3 = vld [vmem:[#allocation24_spill] sm:$0xff] }
 0x31c   :  { %v1955_v31 = vmax.f32 %v1891_v36, 0.0 }
 0x31d   :  { %v2872_v53 = vpop.eup %2871  ;;  %1821 = vadd.xlane.f32.xlu0 %v5080_v37  ;;  %v5437_v37 = vld [vmem:[#allocation25_spill] sm:$0xff] }
 0x31e   :  { %2019 = vst [vmem:[%s5332_s2 + $0x10] sm:$0xff] %v1955_v31  ;;  %v1894_v12 = vmul.f32 %v2872_v53, %v5434_v33  ;;  %v1710_v40 = vpop.xlane.xlu0 %1709  ;;  %v2083_v29 = vand.u32 2147483647, %v1955_v31  ;;  %v2084_v31 = vand.u32 2147483647, %v1956_v18  ;;  %v5442_v18 = vld [vmem:[#allocation30_spill] sm:$0xff] }
 0x31f   :  { %2877 = vrcp.f32 %v1710_v40 }
 0x320   :  { %v1958_v25 = vmax.f32 %v1894_v12, 0.0  ;;  %v2146_v55 = vadd.f32 %v5013_v7, %v2083_v29 }
 0x321   :  { %v2874_v38 = vpop.eup %2873 }
 0x322   :  { %2022 = vst [vmem:[%s5332_s2 + $0x28] sm:$0xff] %v1958_v25  ;;  %v1893_v58 = vmul.f32 %v2874_v38, %v5435_v45  ;;  %v1716_v4 = vpop.xlane.xlu0 %1715  ;;  %v2147_v6 = vadd.f32 %v2146_v55, %v2084_v31  ;;  %v2086_v61 = vand.u32 2147483647, %v1958_v25 }
 0x323   :  { %2879 = vrcp.f32 %v1716_v4 }
 0x324   :  { %v1957_v24 = vmax.f32 %v1893_v58, 0.0 }
 0x325   :  { %v2876_v36 = vpop.eup %2875 }
 0x326   :  { %2021 = vst [vmem:[%s5332_s2 + $0x20] sm:$0xff] %v1957_v24  ;;  %v1896_v53 = vmul.f32 %v2876_v36, %v5436_v3  ;;  %v1714_v33 = vpop.xlane.xlu0 %1713 }
 0x327   :  { %2881 = vrcp.f32 %v1714_v33 }
 0x328   :  { %v1960_v12 = vmax.f32 %v1896_v53, 0.0 }
 0x329   :  { %v2878_v40 = vpop.eup %2877 }
 0x32a   :  { %2024 = vst [vmem:[%s5332_s2 + $0x38] sm:$0xff] %v1960_v12  ;;  %v1895_v38 = vmul.f32 %v2878_v40, %v5437_v37  ;;  %v1720_v45 = vpop.xlane.xlu0 %1719  ;;  %v5439_v37 = vld [vmem:[#allocation27_spill] sm:$0xff]  ;;  %v2088_v25 = vand.u32 2147483647, %v1960_v12 }
 0x32b   :  { %2883 = vrcp.f32 %v1720_v45 }
 0x32c   :  { %v1959_v58 = vmax.f32 %v1895_v38, 0.0 }
 0x32d   :  { %v2880_v4 = vpop.eup %2879 }
 0x32e   :  { %2023 = vst [vmem:[%s5332_s2 + $0x30] sm:$0xff] %v1959_v58  ;;  %v1898_v36 = vmul.f32 %v2880_v4, %v5438_v44  ;;  %v1718_v3 = vpop.xlane.xlu0 %1717  ;;  %v5440_v44 = vld [vmem:[#allocation28_spill] sm:$0xff] }
 0x32f   :  { %2885 = vrcp.f32 %v1718_v3  ;;  %v2085_v3 = vand.u32 2147483647, %v1957_v24 }
 0x330   :  { %v1962_v53 = vmax.f32 %v1898_v36, 0.0 }
 0x331   :  { %v2882_v33 = vpop.eup %2881  ;;  %v2148_v29 = vadd.f32 %v2147_v6, %v2085_v3  ;;  %v5443_v6 = vld [vmem:[#allocation31_spill] sm:$0xff] }
 0x332   :  { %2026 = vst [vmem:[%s5332_s2 + $0x48] sm:$0xff] %v1962_v53  ;;  %v1897_v40 = vmul.f32 %v2882_v33, %v5439_v37  ;;  %v1724_v45 = vpop.xlane.xlu0 %1723  ;;  %v5441_v33 = vld [vmem:[#allocation29_spill] sm:$0xff] }
 0x333   :  { %2887 = vrcp.f32 %v1724_v45 }
 0x334   :  { %v1961_v38 = vmax.f32 %v1897_v40, 0.0 }
 0x335   :  { %v2884_v35 = vpop.eup %2883 }
 0x336   :  { %2025 = vst [vmem:[%s5332_s2 + $0x40] sm:$0xff] %v1961_v38  ;;  %v1900_v4 = vmul.f32 %v2884_v35, %v5440_v44  ;;  %v1722_v36 = vpop.xlane.xlu0 %1721  ;;  %v2087_v35 = vand.u32 2147483647, %v1959_v58  ;;  %v2149_v44 = vadd.f32 %v2148_v29, %v2086_v61  ;;  %v2089_v58 = vand.u32 2147483647, %v1961_v38  ;;  %v5444_v61 = vld [vmem:[#allocation32_spill] sm:$0xff] }
 0x337   :  { %2889 = vrcp.f32 %v1722_v36 }
 0x338   :  { %v1964_v11 = vmax.f32 %v1900_v4, 0.0  ;;  %v2150_v31 = vadd.f32 %v2149_v44, %v2087_v35 }
 0x339   :  { %v2886_v2 = vpop.eup %2885 }
 0x33a   :  { %2028 = vst [vmem:[%s5332_s2 + $0x58] sm:$0xff] %v1964_v11  ;;  %v1899_v37 = vmul.f32 %v2886_v2, %v5441_v33  ;;  %v1728_v7 = vpop.xlane.xlu0 %1727 }
 0x33b   :  { %2891 = vrcp.f32 %v1728_v7 }
 0x33c   :  { %v1963_v40 = vmax.f32 %v1899_v37, 0.0  ;;  %v2151_v37 = vadd.f32 %v2150_v31, %v2088_v25 }
 0x33d   :  { %v2888_v45 = vpop.eup %2887 }
 0x33e   :  { %2027 = vst [vmem:[%s5332_s2 + $0x50] sm:$0xff] %v1963_v40  ;;  %v1902_v24 = vmul.f32 %v2888_v45, %v5442_v18  ;;  %v1726_v55 = vpop.xlane.xlu0 %1725  ;;  %v2152_v45 = vadd.f32 %v2151_v37, %v2089_v58 }
 0x33f   :  { %2893 = vrcp.f32 %v1726_v55  ;;  %v2091_v55 = vand.u32 2147483647, %v1963_v40 }
 0x340   :  { %v1966_v4 = vmax.f32 %v1902_v24, 0.0  ;;  %v2090_v24 = vand.u32 2147483647, %v1962_v53 }
 0x341   :  { %v2890_v36 = vpop.eup %2889 }
 0x342   :  { %2030 = vst [vmem:[%s5332_s2 + $0x68] sm:$0xff] %v1966_v4  ;;  %v1901_v2 = vmul.f32 %v2890_v36, %v5443_v6  ;;  %v2153_v44 = vadd.f32 %v2152_v45, %v2090_v24 }
 0x344   :  { %v1965_v3 = vmax.f32 %v1901_v2, 0.0  ;;  %v2154_v31 = vadd.f32 %v2153_v44, %v2091_v55  ;;  %v2092_v2 = vand.u32 2147483647, %v1964_v11 }
 0x345   :  { %v2892_v33 = vpop.eup %2891 }
 0x346   :  { %2029 = vst [vmem:[%s5332_s2 + $0x60] sm:$0xff] %v1965_v3  ;;  %v1904_v7 = vmul.f32 %v2892_v33, %v5444_v61  ;;  %v1732_v29 = vpop.xlane.xlu0 %1731  ;;  %v2093_v25 = vand.u32 2147483647, %v1965_v3  ;;  %v2155_v40 = vadd.f32 %v2154_v31, %v2092_v2 }
 0x347   :  { %2895 = vrcp.f32 %v1732_v29  ;;  %v2094_v29 = vand.u32 2147483647, %v1966_v4 }
 0x348   :  { %v1968_v35 = vmax.f32 %v1904_v7, 0.0 }
 0x349   :  { %v2894_v18 = vpop.eup %2893 }
 0x34a   :  { %2032 = vst [vmem:[%s5332_s2 + $0x78] sm:$0xff] %v1968_v35  ;;  %v1903_v12 = vmul.f32 %v2894_v18, %v4833_v48  ;;  %v1730_v38 = vpop.xlane.xlu0 %1729  ;;  %v2156_v48 = vadd.f32 %v2155_v40, %v2093_v25 }
 0x34b   :  { %2897 = vrcp.f32 %v1730_v38 }
 0x34c   :  { %v1967_v36 = vmax.f32 %v1903_v12, 0.0  ;;  %v2157_v24 = vadd.f32 %v2156_v48, %v2094_v29 }
 0x34e   :  { %2031 = vst [vmem:[%s5332_s2 + $0x70] sm:$0xff] %v1967_v36  ;;  %v1736_v6 = vpop.xlane.xlu0 %1735  ;;  %v2095_v45 = vand.u32 2147483647, %v1967_v36  ;;  %v2096_v36 = vand.u32 2147483647, %v1968_v35 }
 0x34f   :  { %2899 = vrcp.f32 %v1736_v6 }
 0x350   :  { %v2158_v12 = vadd.f32 %v2157_v24, %v2095_v45 }
 0x351   :  { %v2896_v53 = vpop.eup %2895 }
 0x352   :  { %v1906_v58 = vmul.f32 %v2896_v53, %v4840_v56  ;;  %v1740_v33 = vpop.xlane.xlu1 %1739  ;;  %v1734_v37 = vpop.xlane.xlu0 %1733  ;;  %v2159_v2 = vadd.f32 %v2158_v12, %v2096_v36 }
 0x353   :  { %2901 = vrcp.f32 %v1740_v33 }
 0x354   :  { %v1970_v61 = vmax.f32 %v1906_v58, 0.0  ;;  %2903 = vrcp.f32 %v1734_v37 }
 0x355   :  { %v2898_v7 = vpop.eup %2897 }
 0x356   :  { %2034 = vst [vmem:[%s5332_s2 + $0x88] sm:$0xff] %v1970_v61  ;;  %v1905_v11 = vmul.f32 %v2898_v7, %v4845_v30  ;;  %v1744_v3 = vpop.xlane.xlu1 %1743  ;;  %v1738_v18 = vpop.xlane.xlu0 %1737  ;;  %v2098_v48 = vand.u32 2147483647, %v1970_v61 }
 0x357   :  { %2905 = vrcp.f32 %v1744_v3 }
 0x358   :  { %v1969_v56 = vmax.f32 %v1905_v11, 0.0  ;;  %2907 = vrcp.f32 %v1738_v18 }
 0x359   :  { %v2900_v55 = vpop.eup %2899 }
 0x35a   :  { %2033 = vst [vmem:[%s5332_s2 + $0x80] sm:$0xff] %v1969_v56  ;;  %v1908_v4 = vmul.f32 %v2900_v55, %v4850_v32  ;;  %v1748_v38 = vpop.xlane.xlu1 %1747  ;;  %v1742_v44 = vpop.xlane.xlu0 %1741  ;;  %v2097_v31 = vand.u32 2147483647, %v1969_v56 }
 0x35b   :  { %2909 = vrcp.f32 %v1748_v38 }
 0x35c   :  { %v1972_v30 = vmax.f32 %v1908_v4, 0.0  ;;  %2911 = vrcp.f32 %v1742_v44  ;;  %v2160_v33 = vadd.f32 %v2159_v2, %v2097_v31 }
 0x35d   :  { %v2902_v6 = vpop.eup %2901 }
 0x35e   :  { %v2904_v25 = vpop.eup %2903  ;;  %2036 = vst [vmem:[%s5332_s2 + $0x98] sm:$0xff] %v1972_v30  ;;  %v1910_v53 = vmul.f32 %v2902_v6, %v4857_v20  ;;  %v1752_v40 = vpop.xlane.xlu1 %1751  ;;  %v2161_v3 = vadd.f32 %v2160_v33, %v2098_v48  ;;  %v2100_v56 = vand.u32 2147483647, %v1972_v30 }
 0x35f   :  { %v1746_v58 = vpop.xlane.xlu0 %1745  ;;  %v1907_v32 = vmul.f32 %v2904_v25, %v4855_v39  ;;  %2913 = vrcp.f32 %v1752_v40 }
 0x360   :  { %v1974_v35 = vmax.f32 %v1910_v53, 0.0  ;;  %2915 = vrcp.f32 %v1746_v58 }
 0x361   :  { %v2906_v37 = vpop.eup %2905  ;;  %v1971_v7 = vmax.f32 %v1907_v32, 0.0 }
 0x362   :  { %v2908_v29 = vpop.eup %2907  ;;  %2038 = vst [vmem:[%s5332_s2 + $0xa8] sm:$0xff] %v1974_v35  ;;  %v1912_v45 = vmul.f32 %v2906_v37, %v4865_v49  ;;  %v1756_v11 = vpop.xlane.xlu1 %1755  ;;  %v2102_v2 = vand.u32 2147483647, %v1974_v35 }
 0x363   :  { %v1750_v20 = vpop.xlane.xlu0 %1749  ;;  %2035 = vst [vmem:[%s5332_s2 + $0x90] sm:$0xff] %v1971_v7  ;;  %v2099_v39 = vand.u32 2147483647, %v1971_v7  ;;  %v1909_v18 = vmul.f32 %v2908_v29, %v4863_v23  ;;  %2917 = vrcp.f32 %v1756_v11 }
 0x364   :  { %v1976_v61 = vmax.f32 %v1912_v45, 0.0  ;;  %2919 = vrcp.f32 %v1750_v20 }
 0x365   :  { %v2910_v24 = vpop.eup %2909  ;;  %v2162_v55 = vadd.f32 %v2161_v3, %v2099_v39  ;;  %v1973_v12 = vmax.f32 %v1909_v18, 0.0 }
 0x366   :  { %v2912_v4 = vpop.eup %2911  ;;  %2040 = vst [vmem:[%s5332_s2 + $0xb8] sm:$0xff] %v1976_v61  ;;  %v1914_v49 = vmul.f32 %v2910_v24, %v4875_v1  ;;  %v1760_v38 = vpop.xlane.xlu1 %1759  ;;  %v2104_v7 = vand.u32 2147483647, %v1976_v61 }
 0x367   :  { %v1754_v44 = vpop.xlane.xlu0 %1753  ;;  %v2163_v36 = vadd.f32 %v2162_v55, %v2100_v56  ;;  %2037 = vst [vmem:[%s5332_s2 + $0xa0] sm:$0xff] %v1973_v12  ;;  %v2101_v23 = vand.u32 2147483647, %v1973_v12  ;;  %v1911_v31 = vmul.f32 %v2912_v4, %v4873_v10  ;;  %2921 = vrcp.f32 %v1760_v38 }
 0x368   :  { %v1978_v30 = vmax.f32 %v1914_v49, 0.0  ;;  %2923 = vrcp.f32 %v1754_v44 }
 0x369   :  { %v2914_v6 = vpop.eup %2913  ;;  %v2164_v25 = vadd.f32 %v2163_v36, %v2101_v23  ;;  %v1975_v53 = vmax.f32 %v1911_v31, 0.0 }
 0x36a   :  { %v2916_v40 = vpop.eup %2915  ;;  %2042 = vst [vmem:[%s5332_s2 + $0xc8] sm:$0xff] %v1978_v30  ;;  %v1916_v1 = vmul.f32 %v2914_v6, %v4890_v63  ;;  %v1764_v58 = vpop.xlane.xlu1 %1763  ;;  %v2106_v56 = vand.u32 2147483647, %v1978_v30 }
 0x36b   :  { %v1758_v33 = vpop.xlane.xlu0 %1757  ;;  %v2165_v32 = vadd.f32 %v2164_v25, %v2102_v2  ;;  %2039 = vst [vmem:[%s5332_s2 + $0xb0] sm:$0xff] %v1975_v53  ;;  %v2103_v10 = vand.u32 2147483647, %v1975_v53  ;;  %v1913_v37 = vmul.f32 %v2916_v40, %v4885_v60  ;;  %2925 = vrcp.f32 %v1764_v58 }
 0x36c   :  { %v1980_v35 = vmax.f32 %v1916_v1, 0.0  ;;  %2927 = vrcp.f32 %v1758_v33 }
 0x36d   :  { %v2918_v48 = vpop.eup %2917  ;;  %v2166_v29 = vadd.f32 %v2165_v32, %v2103_v10  ;;  %v1977_v45 = vmax.f32 %v1913_v37, 0.0 }
 0x36e   :  { %v2920_v11 = vpop.eup %2919  ;;  %2044 = vst [vmem:[%s5332_s2 + $0xd8] sm:$0xff] %v1980_v35  ;;  %v1918_v63 = vmul.f32 %v2918_v48, %v4908_v57  ;;  %v1768_v20 = vpop.xlane.xlu1 %1767  ;;  %v2108_v30 = vand.u32 2147483647, %v1980_v35 }
 0x36f   :  { %v1762_v3 = vpop.xlane.xlu0 %1761  ;;  %v2167_v39 = vadd.f32 %v2166_v29, %v2104_v7  ;;  %2041 = vst [vmem:[%s5332_s2 + $0xc0] sm:$0xff] %v1977_v45  ;;  %v2105_v60 = vand.u32 2147483647, %v1977_v45  ;;  %v1915_v18 = vmul.f32 %v2920_v11, %v4901_v22  ;;  %2929 = vrcp.f32 %v1768_v20 }
 0x370   :  { %v1982_v61 = vmax.f32 %v1918_v63, 0.0  ;;  %2931 = vrcp.f32 %v1762_v3 }
 0x371   :  { %v2922_v24 = vpop.eup %2921  ;;  %v2168_v55 = vadd.f32 %v2167_v39, %v2105_v60  ;;  %v1979_v12 = vmax.f32 %v1915_v18, 0.0 }
 0x372   :  { %v2924_v4 = vpop.eup %2923  ;;  %2046 = vst [vmem:[%s5332_s2 + $0xe8] sm:$0xff] %v1982_v61  ;;  %v1920_v57 = vmul.f32 %v2922_v24, %v4920_v5  ;;  %v1772_v49 = vpop.xlane.xlu1 %1771  ;;  %v2110_v10 = vand.u32 2147483647, %v1982_v61 }
 0x373   :  { %v1766_v38 = vpop.xlane.xlu0 %1765  ;;  %v2169_v44 = vadd.f32 %v2168_v55, %v2106_v56  ;;  %2043 = vst [vmem:[%s5332_s2 + $0xd0] sm:$0xff] %v1979_v12  ;;  %v2107_v22 = vand.u32 2147483647, %v1979_v12  ;;  %v1917_v36 = vmul.f32 %v2924_v4, %v4918_v17  ;;  %2933 = vrcp.f32 %v1772_v49 }
 0x374   :  { %v1984_v23 = vmax.f32 %v1920_v57, 0.0  ;;  %2935 = vrcp.f32 %v1766_v38 }
 0x375   :  { %v2926_v31 = vpop.eup %2925  ;;  %v2170_v6 = vadd.f32 %v2169_v44, %v2107_v22  ;;  %v1981_v2 = vmax.f32 %v1917_v36, 0.0 }
 0x376   :  { %v2928_v25 = vpop.eup %2927  ;;  %2048 = vst [vmem:[%s5332_s2 + $0xf8] sm:$0xff] %v1984_v23  ;;  %v1922_v5 = vmul.f32 %v2926_v31, %v4930_v19  ;;  %v1776_v53 = vpop.xlane.xlu1 %1775  ;;  %v2112_v3 = vand.u32 2147483647, %v1984_v23 }
 0x377   :  { %v1770_v40 = vpop.xlane.xlu0 %1769  ;;  %v2171_v1 = vadd.f32 %v2170_v6, %v2108_v30  ;;  %2045 = vst [vmem:[%s5332_s2 + $0xe0] sm:$0xff] %v1981_v2  ;;  %v2109_v17 = vand.u32 2147483647, %v1981_v2  ;;  %v1919_v58 = vmul.f32 %v2928_v25, %v4932_v28  ;;  %2937 = vrcp.f32 %v1776_v53 }
 0x378   :  { %v1986_v33 = vmax.f32 %v1922_v5, 0.0  ;;  %2939 = vrcp.f32 %v1770_v40 }
 0x379   :  { %v2930_v32 = vpop.eup %2929  ;;  %v2172_v37 = vadd.f32 %v2171_v1, %v2109_v17  ;;  %v1983_v35 = vmax.f32 %v1919_v58, 0.0 }
 0x37a   :  { %v2932_v48 = vpop.eup %2931  ;;  %2050 = vst [vmem:[%s5332_s2 + $0x108] sm:$0xff] %v1986_v33  ;;  %v1924_v19 = vmul.f32 %v2930_v32, %v4944_v15  ;;  %v1780_v7 = vpop.xlane.xlu1 %1779  ;;  %v2114_v57 = vand.u32 2147483647, %v1986_v33 }
 0x37b   :  { %v1774_v29 = vpop.xlane.xlu0 %1773  ;;  %v2173_v45 = vadd.f32 %v2172_v37, %v2110_v10  ;;  %2047 = vst [vmem:[%s5332_s2 + $0xf0] sm:$0xff] %v1983_v35  ;;  %v2111_v28 = vand.u32 2147483647, %v1983_v35  ;;  %v1921_v11 = vmul.f32 %v2932_v48, %v4942_v59  ;;  %2941 = vrcp.f32 %v1780_v7 }
 0x37c   :  { %v1988_v63 = vmax.f32 %v1924_v19, 0.0  ;;  %2943 = vrcp.f32 %v1774_v29 }
 0x37d   :  { %v2934_v20 = vpop.eup %2933  ;;  %v2174_v39 = vadd.f32 %v2173_v45, %v2111_v28  ;;  %v1985_v60 = vmax.f32 %v1921_v11, 0.0 }
 0x37e   :  { %v2936_v18 = vpop.eup %2935  ;;  %2052 = vst [vmem:[%s5332_s2 + $0x118] sm:$0xff] %v1988_v63  ;;  %v1926_v15 = vmul.f32 %v2934_v20, %v4956_v13  ;;  %v1784_v61 = vpop.xlane.xlu1 %1783  ;;  %v2116_v2 = vand.u32 2147483647, %v1988_v63 }
 0x37f   :  { %v1778_v24 = vpop.xlane.xlu0 %1777  ;;  %v2175_v56 = vadd.f32 %v2174_v39, %v2112_v3  ;;  %2049 = vst [vmem:[%s5332_s2 + $0x100] sm:$0xff] %v1985_v60  ;;  %v2113_v59 = vand.u32 2147483647, %v1985_v60  ;;  %v1923_v55 = vmul.f32 %v2936_v18, %v4954_v42  ;;  %2945 = vrcp.f32 %v1784_v61 }
 0x380   :  { %v1990_v12 = vmax.f32 %v1926_v15, 0.0  ;;  %2947 = vrcp.f32 %v1778_v24 }
 0x381   :  { %v2938_v4 = vpop.eup %2937  ;;  %v2176_v49 = vadd.f32 %v2175_v56, %v2113_v59  ;;  %v1987_v38 = vmax.f32 %v1923_v55, 0.0 }
 0x382   :  { %v2940_v44 = vpop.eup %2939  ;;  %2054 = vst [vmem:[%s5332_s2 + $0x128] sm:$0xff] %v1990_v12  ;;  %v1928_v13 = vmul.f32 %v2938_v4, %v4966_v14  ;;  %v1788_v22 = vpop.xlane.xlu1 %1787  ;;  %v2118_v10 = vand.u32 2147483647, %v1990_v12 }
 0x383   :  { %v1782_v36 = vpop.xlane.xlu0 %1781  ;;  %v2177_v23 = vadd.f32 %v2176_v49, %v2114_v57  ;;  %2051 = vst [vmem:[%s5332_s2 + $0x110] sm:$0xff] %v1987_v38  ;;  %v2115_v42 = vand.u32 2147483647, %v1987_v38  ;;  %v1925_v31 = vmul.f32 %v2940_v44, %v4964_v9  ;;  %2949 = vrcp.f32 %v1788_v22 }
 0x384   :  { %v1992_v30 = vmax.f32 %v1928_v13, 0.0  ;;  %2951 = vrcp.f32 %v1782_v36 }
 0x385   :  { %v2942_v6 = vpop.eup %2941  ;;  %v2178_v25 = vadd.f32 %v2177_v23, %v2115_v42  ;;  %v1989_v5 = vmax.f32 %v1925_v31, 0.0 }
 0x386   :  { %v2944_v53 = vpop.eup %2943  ;;  %2056 = vst [vmem:[%s5332_s2 + $0x138] sm:$0xff] %v1992_v30  ;;  %v1930_v14 = vmul.f32 %v2942_v6, %v4976_v16  ;;  %v1792_v40 = vpop.xlane.xlu1 %1791  ;;  %v2120_v63 = vand.u32 2147483647, %v1992_v30 }
 0x387   :  { %v1786_v1 = vpop.xlane.xlu0 %1785  ;;  %v2179_v17 = vadd.f32 %v2178_v25, %v2116_v2  ;;  %2053 = vst [vmem:[%s5332_s2 + $0x120] sm:$0xff] %v1989_v5  ;;  %v2117_v9 = vand.u32 2147483647, %v1989_v5  ;;  %v1927_v58 = vmul.f32 %v2944_v53, %v4974_v46  ;;  %2953 = vrcp.f32 %v1792_v40 }
 0x388   :  { %v1994_v33 = vmax.f32 %v1930_v14, 0.0  ;;  %2955 = vrcp.f32 %v1786_v1 }
 0x389   :  { %v2946_v32 = vpop.eup %2945  ;;  %v2180_v37 = vadd.f32 %v2179_v17, %v2117_v9  ;;  %v1991_v35 = vmax.f32 %v1927_v58, 0.0 }
 0x38a   :  { %v2948_v48 = vpop.eup %2947  ;;  %2058 = vst [vmem:[%s5332_s2 + $0x148] sm:$0xff] %v1994_v33  ;;  %v1932_v16 = vmul.f32 %v2946_v32, %v4986_v47  ;;  %v1796_v19 = vpop.xlane.xlu1 %1795  ;;  %v2122_v59 = vand.u32 2147483647, %v1994_v33 }
 0x38b   :  { %v1790_v7 = vpop.xlane.xlu0 %1789  ;;  %v2181_v29 = vadd.f32 %v2180_v37, %v2118_v10  ;;  %2055 = vst [vmem:[%s5332_s2 + $0x130] sm:$0xff] %v1991_v35  ;;  %v2119_v46 = vand.u32 2147483647, %v1991_v35  ;;  %v1929_v45 = vmul.f32 %v2948_v48, %v4984_v62  ;;  %2957 = vrcp.f32 %v1796_v19 }
 0x38c   :  { %v1996_v28 = vmax.f32 %v1932_v16, 0.0  ;;  %2959 = vrcp.f32 %v1790_v7 }
 0x38d   :  { %v2950_v11 = vpop.eup %2949  ;;  %v2182_v20 = vadd.f32 %v2181_v29, %v2119_v46  ;;  %v1993_v3 = vmax.f32 %v1929_v45, 0.0 }
 0x38e   :  { %v2952_v39 = vpop.eup %2951  ;;  %2060 = vst [vmem:[%s5332_s2 + $0x158] sm:$0xff] %v1996_v28  ;;  %v1934_v47 = vmul.f32 %v2950_v11, %v4997_v54  ;;  %v1800_v60 = vpop.xlane.xlu1 %1799  ;;  %v2124_v36 = vand.u32 2147483647, %v1996_v28 }
 0x38f   :  { %v1794_v18 = vpop.xlane.xlu0 %1793  ;;  %v2183_v15 = vadd.f32 %v2182_v20, %v2120_v63  ;;  %2057 = vst [vmem:[%s5332_s2 + $0x140] sm:$0xff] %v1993_v3  ;;  %v2121_v62 = vand.u32 2147483647, %v1993_v3  ;;  %v1931_v61 = vmul.f32 %v2952_v39, %v4995_v50  ;;  %2961 = vrcp.f32 %v1800_v60 }
 0x390   :  { %v1998_v24 = vmax.f32 %v1934_v47, 0.0  ;;  %2963 = vrcp.f32 %v1794_v18 }
 0x391   :  { %v2954_v56 = vpop.eup %2953  ;;  %v2184_v55 = vadd.f32 %v2183_v15, %v2121_v62  ;;  %v1995_v12 = vmax.f32 %v1931_v61, 0.0 }
 0x392   :  { %v2956_v4 = vpop.eup %2955  ;;  %2062 = vst [vmem:[%s5332_s2 + $0x168] sm:$0xff] %v1998_v24  ;;  %v1936_v54 = vmul.f32 %v2954_v56, %v5011_v8  ;;  %v1804_v57 = vpop.xlane.xlu1 %1803  ;;  %v2126_v14 = vand.u32 2147483647, %v1998_v24 }
 0x393   :  { %v1798_v49 = vpop.xlane.xlu0 %1797  ;;  %v2185_v38 = vadd.f32 %v2184_v55, %v2122_v59  ;;  %2059 = vst [vmem:[%s5332_s2 + $0x150] sm:$0xff] %v1995_v12  ;;  %v2123_v50 = vand.u32 2147483647, %v1995_v12  ;;  %v1933_v44 = vmul.f32 %v2956_v4, %v5009_v52  ;;  %2965 = vrcp.f32 %v1804_v57 }
 0x394   :  { %v2000_v13 = vmax.f32 %v1936_v54, 0.0  ;;  %2967 = vrcp.f32 %v1798_v49  ;;  %v5446_v49 = vld [vmem:[#allocation2_spill] sm:$0xff] }
 0x395   :  { %v2958_v22 = vpop.eup %2957  ;;  %v2186_v23 = vadd.f32 %v2185_v38, %v2123_v50  ;;  %v1997_v42 = vmax.f32 %v1933_v44, 0.0 }
 0x396   :  { %v2960_v31 = vpop.eup %2959  ;;  %2064 = vst [vmem:[%s5332_s2 + $0x178] sm:$0xff] %v2000_v13  ;;  %v1938_v8 = vmul.f32 %v2958_v22, %v5022_v26  ;;  %v1808_v30 = vpop.xlane.xlu1 %1807  ;;  %v2128_v35 = vand.u32 2147483647, %v2000_v13 }
 0x397   :  { %v1802_v6 = vpop.xlane.xlu0 %1801  ;;  %v2187_v2 = vadd.f32 %v2186_v23, %v2124_v36  ;;  %2061 = vst [vmem:[%s5332_s2 + $0x160] sm:$0xff] %v1997_v42  ;;  %v2125_v52 = vand.u32 2147483647, %v1997_v42  ;;  %v1935_v25 = vmul.f32 %v2960_v31, %v5020_v41  ;;  %2969 = vrcp.f32 %v1808_v30  ;;  %v5447_v42 = vld [vmem:[#allocation5_spill] sm:$0xff] }
 0x398   :  { %v2002_v5 = vmax.f32 %v1938_v8, 0.0  ;;  %2971 = vrcp.f32 %v1802_v6 }
 0x399   :  { %v2962_v53 = vpop.eup %2961  ;;  %v2188_v40 = vadd.f32 %v2187_v2, %v2125_v52  ;;  %v1999_v1 = vmax.f32 %v1935_v25, 0.0  ;;  %v5448_v2 = vld [vmem:[#allocation4_spill] sm:$0xff] }
 0x39a   :  { %v2964_v17 = vpop.eup %2963  ;;  %2066 = vst [vmem:[%s5332_s2 + $0x188] sm:$0xff] %v2002_v5  ;;  %v1940_v26 = vmul.f32 %v2962_v53, %v5030_v51  ;;  %v1812_v9 = vpop.xlane.xlu1 %1811  ;;  %v2130_v63 = vand.u32 2147483647, %v2002_v5 }
 0x39b   :  { %v1806_v58 = vpop.xlane.xlu0 %1805  ;;  %v2189_v33 = vadd.f32 %v2188_v40, %v2126_v14  ;;  %2063 = vst [vmem:[%s5332_s2 + $0x170] sm:$0xff] %v1999_v1  ;;  %v2127_v41 = vand.u32 2147483647, %v1999_v1  ;;  %v1937_v32 = vmul.f32 %v2964_v17, %v5028_v43  ;;  %2973 = vrcp.f32 %v1812_v9  ;;  %v5449_v17 = vld [vmem:[#allocation7_spill] sm:$0xff] }
 0x39c   :  { %v2004_v10 = vmax.f32 %v1940_v26, 0.0  ;;  %2975 = vrcp.f32 %v1806_v58 }
 0x39d   :  { %v2966_v37 = vpop.eup %2965  ;;  %v2190_v48 = vadd.f32 %v2189_v33, %v2127_v41  ;;  %v2001_v16 = vmax.f32 %v1937_v32, 0.0  ;;  %v5450_v33 = vld [vmem:[#allocation6_spill] sm:$0xff] }
 0x39e   :  { %v2968_v19 = vpop.eup %2967  ;;  %2068 = vst [vmem:[%s5332_s2 + $0x198] sm:$0xff] %v2004_v10  ;;  %v1942_v51 = vmul.f32 %v2966_v37, %v5038_v21  ;;  %v1816_v7 = vpop.xlane.xlu1 %1815  ;;  %v2132_v24 = vand.u32 2147483647, %v2004_v10 }
 0x39f   :  { %v1810_v29 = vpop.xlane.xlu0 %1809  ;;  %v2191_v46 = vadd.f32 %v2190_v48, %v2128_v35  ;;  %2065 = vst [vmem:[%s5332_s2 + $0x180] sm:$0xff] %v2001_v16  ;;  %v2129_v43 = vand.u32 2147483647, %v2001_v16  ;;  %v1939_v45 = vmul.f32 %v2968_v19, %v5036_v27  ;;  %2977 = vrcp.f32 %v1816_v7  ;;  %v5451_v19 = vld [vmem:[#allocation9_spill] sm:$0xff] }
 0x3a0   :  { %v2006_v28 = vmax.f32 %v1942_v51, 0.0  ;;  %2979 = vrcp.f32 %v1810_v29 }
 0x3a1   :  { %v2970_v11 = vpop.eup %2969  ;;  %v2192_v20 = vadd.f32 %v2191_v46, %v2129_v43  ;;  %v2003_v3 = vmax.f32 %v1939_v45, 0.0  ;;  %v5452_v46 = vld [vmem:[#allocation8_spill] sm:$0xff] }
 0x3a2   :  { %v2972_v39 = vpop.eup %2971  ;;  %2070 = vst [vmem:[%s5332_s2 + $0x1a8] sm:$0xff] %v2006_v28  ;;  %v1944_v21 = vmul.f32 %v2970_v11, %v5045_v34  ;;  %v1820_v47 = vpop.xlane.xlu1 %1819  ;;  %v5445_v34 = vld [vmem:[#allocation3_spill] sm:$0xff]  ;;  %v2134_v13 = vand.u32 2147483647, %v2006_v28 }
 0x3a3   :  { %v1814_v60 = vpop.xlane.xlu0 %1813  ;;  %v2193_v18 = vadd.f32 %v2192_v20, %v2130_v63  ;;  %2067 = vst [vmem:[%s5332_s2 + $0x190] sm:$0xff] %v2003_v3  ;;  %v2131_v27 = vand.u32 2147483647, %v2003_v3  ;;  %v1941_v15 = vmul.f32 %v2972_v39, %v5043_v0  ;;  %2981 = vrcp.f32 %v1820_v47  ;;  %v5453_v3 = vld [vmem:[#allocation11_spill] sm:$0xff] }
 0x3a4   :  { %v2008_v62 = vmax.f32 %v1944_v21, 0.0  ;;  %2983 = vrcp.f32 %v1814_v60 }
 0x3a5   :  { %v2974_v61 = vpop.eup %2973  ;;  %v2194_v56 = vadd.f32 %v2193_v18, %v2131_v27  ;;  %v2005_v59 = vmax.f32 %v1941_v15, 0.0 }
 0x3a6   :  { %v2976_v55 = vpop.eup %2975  ;;  %2072 = vst [vmem:[%s5332_s2 + $0x1b8] sm:$0xff] %v2008_v62  ;;  %v1946_v12 = vmul.f32 %v2974_v61, %v5445_v34  ;;  %v1824_v4 = vpop.xlane.xlu1 %1823  ;;  %v2136_v53 = vand.u32 2147483647, %v2008_v62 }
 0x3a7   :  { %v1818_v54 = vpop.xlane.xlu0 %1817  ;;  %v2195_v57 = vadd.f32 %v2194_v56, %v2132_v24  ;;  %2069 = vst [vmem:[%s5332_s2 + $0x1a0] sm:$0xff] %v2005_v59  ;;  %v2133_v0 = vand.u32 2147483647, %v2005_v59  ;;  %v1943_v38 = vmul.f32 %v2976_v55, %v5446_v49  ;;  %2985 = vrcp.f32 %v1824_v4 }
 0x3a8   :  { %v2010_v50 = vmax.f32 %v1946_v12, 0.0  ;;  %2987 = vrcp.f32 %v1818_v54 }
 0x3a9   :  { %v2978_v44 = vpop.eup %2977  ;;  %v2196_v22 = vadd.f32 %v2195_v57, %v2133_v0  ;;  %v2007_v36 = vmax.f32 %v1943_v38, 0.0 }
 0x3aa   :  { %v2980_v23 = vpop.eup %2979  ;;  %2074 = vst [vmem:[%s5332_s2 + $0x1c8] sm:$0xff] %v2010_v50  ;;  %v1948_v31 = vmul.f32 %v2978_v44, %v5447_v42  ;;  %v2138_v37 = vand.u32 2147483647, %v2010_v50 }
 0x3ab   :  { %v1822_v8 = vpop.xlane.xlu0 %1821  ;;  %v2197_v30 = vadd.f32 %v2196_v22, %v2134_v13  ;;  %2071 = vst [vmem:[%s5332_s2 + $0x1b0] sm:$0xff] %v2007_v36  ;;  %v2135_v6 = vand.u32 2147483647, %v2007_v36  ;;  %v1945_v52 = vmul.f32 %v2980_v23, %v5448_v2 }
 0x3ac   :  { %2989 = vrcp.f32 %v1822_v8  ;;  %v2012_v25 = vmax.f32 %v1948_v31, 0.0 }
 0x3ad   :  { %v2982_v5 = vpop.eup %2981  ;;  %v2198_v14 = vadd.f32 %v2197_v30, %v2135_v6  ;;  %v2009_v40 = vmax.f32 %v1945_v52, 0.0 }
 0x3ae   :  { %v2984_v1 = vpop.eup %2983  ;;  %2076 = vst [vmem:[%s5332_s2 + $0x1d8] sm:$0xff] %v2012_v25  ;;  %v1950_v26 = vmul.f32 %v2982_v5, %v5449_v17  ;;  %v2140_v11 = vand.u32 2147483647, %v2012_v25 }
 0x3af   :  { %v2199_v9 = vadd.f32 %v2198_v14, %v2136_v53  ;;  %2073 = vst [vmem:[%s5332_s2 + $0x1c0] sm:$0xff] %v2009_v40  ;;  %v2137_v58 = vand.u32 2147483647, %v2009_v40  ;;  %v1947_v41 = vmul.f32 %v2984_v1, %v5450_v33 }
 0x3b0   :  { %v2014_v32 = vmax.f32 %v1950_v26, 0.0 }
 0x3b1   :  { %v2986_v10 = vpop.eup %2985  ;;  %v2200_v35 = vadd.f32 %v2199_v9, %v2137_v58  ;;  %v2011_v48 = vmax.f32 %v1947_v41, 0.0 }
 0x3b2   :  { %v2988_v16 = vpop.eup %2987  ;;  %2078 = vst [vmem:[%s5332_s2 + $0x1e8] sm:$0xff] %v2014_v32  ;;  %v1952_v51 = vmul.f32 %v2986_v10, %v5451_v19  ;;  %v2142_v18 = vand.u32 2147483647, %v2014_v32 }
 0x3b3   :  { %v2201_v7 = vadd.f32 %v2200_v35, %v2138_v37  ;;  %2075 = vst [vmem:[%s5332_s2 + $0x1d0] sm:$0xff] %v2011_v48  ;;  %v2139_v29 = vand.u32 2147483647, %v2011_v48  ;;  %v1949_v43 = vmul.f32 %v2988_v16, %v5452_v46 }
 0x3b4   :  { %v2016_v45 = vmax.f32 %v1952_v51, 0.0 }
 0x3b5   :  { %v2202_v63 = vadd.f32 %v2201_v7, %v2139_v29  ;;  %v2013_v20 = vmax.f32 %v1949_v43, 0.0 }
 0x3b6   :  { %v2990_v28 = vpop.eup %2989  ;;  %2080 = vst [vmem:[%s5332_s2 + $0x1f8] sm:$0xff] %v2016_v45  ;;  %v2144_v61 = vand.u32 2147483647, %v2016_v45 }
 0x3b7   :  { %v1951_v39 = vmul.f32 %v2990_v28, %v5453_v3  ;;  %v2203_v21 = vadd.f32 %v2202_v63, %v2140_v11  ;;  %2077 = vst [vmem:[%s5332_s2 + $0x1e0] sm:$0xff] %v2013_v20  ;;  %v2141_v47 = vand.u32 2147483647, %v2013_v20 }
 0x3b9   :  { %v2015_v60 = vmax.f32 %v1951_v39, 0.0  ;;  %v2204_v27 = vadd.f32 %v2203_v21, %v2141_v47 }
 0x3bb   :  { %2079 = vst [vmem:[%s5332_s2 + $0x1f0] sm:$0xff] %v2015_v60  ;;  %v2143_v15 = vand.u32 2147483647, %v2015_v60  ;;  %v2205_v62 = vadd.f32 %v2204_v27, %v2142_v18 }
 0x3bd   :  { %v2206_v24 = vadd.f32 %v2205_v62, %v2143_v15 }
 0x3bf   :  { %v2207_v56 = vadd.f32 %v2206_v24, %v2144_v61 }
 0x3c1   :  { %v2208_v59 = vrot.slane %v2207_v56, 4 }
 0x3c3   :  { %v2209_v55 = vadd.f32 %v2208_v59, %v2207_v56 }
 0x3c5   :  { %v2210_v34 = vrot.slane %v2209_v55, 2 }
 0x3c7   :  { %v2211_v12 = vadd.f32 %v2210_v34, %v2209_v55 }
 0x3c9   :  { %v2212_v4 = vrot.slane %v2211_v12, 1 }
 0x3cb   :  { %v2213_v54 = vadd.f32 %v2212_v4, %v2211_v12 }
 0x3cd   :  { %2214 = vst [vmem:[%s5333_s3] sm:$0x1] %v2213_v54 }

</bundles_post_ra>
